<compile_context>
chip_gen: v7x
topology: tpu7x:2x2x1
jax: 0.10.0
libtpu: 0.0.40
codegen_flags: <defaults>
</compile_context>

<pallas_src>
import functools

import jax
import jax.numpy as jnp
from jax.experimental import pallas as pl
from jax.experimental.pallas import tpu as pltpu

HIDDEN_UNITS = 32    # hidden_units
HIDDEN_DEPTH = 5     # hidden_depth
BLOCK_N = 2048       # batch rows (lanes) per grid step
CHUNK = 512          # lane chunk processed per inner iteration


def fold_params(params):
    """Fold sigmoid(z) = 0.5*tanh(0.5*z) + 0.5 into the weights.

    After folding, the network is exactly:
        g0  = tanh(W0' @ xyt + b0')
        g_d = tanh(Wd' @ g_{d-1} + bd')        d = 1..depth
        out = Wo' @ g_depth + bo'
    which matches sigmoid-MLP forward bit-for-bit up to f32 rounding.
    Runs once (O(depth * H^2)); keep outside the hot loop for repeated calls.
    """
    w0, b0, wh, bh, wo, bo = params
    w0f = 0.5 * w0
    b0f = 0.5 * b0
    whf = 0.25 * wh
    bhf = 0.25 * jnp.sum(wh, axis=2, keepdims=True) + 0.5 * bh
    wof = 0.5 * wo
    bof = 0.5 * jnp.sum(wo, axis=1, keepdims=True) + bo
    return (w0f, b0f, whf, bhf, wof, bof)


def _mlp_kernel(x_ref, y_ref, t_ref, w0_ref, b0_ref, wh_ref, bh_ref,
                wo_ref, bo_ref, out_ref, *, depth, n_chunks, chunk):
    # Hoist the tiny per-step-invariant loads / column splats out of the
    # chunk loop (built once per grid step, not per chunk).
    w0x = w0_ref[:, 0:1]          # (H, 1)
    w0y = w0_ref[:, 1:2]          # (H, 1)
    w0t = w0_ref[:, 2:3]          # (H, 1)
    b0 = b0_ref[...]              # (H, 1)
    wo = wo_ref[...]              # (1, H)
    bo = bo_ref[...]              # (1, 1)

    # Static unroll over lane chunks: c is a Python int, so every slice is a
    # static (zero-cost) slice and each chunk's working set (~32 vregs) dies
    # at its lane-dense store.
    for c in range(n_chunks):
        sl = pl.ds(c * chunk, chunk)
        xr = x_ref[:, sl]         # (1, chunk)
        yr = y_ref[:, sl]
        tr = t_ref[:, sl]

        # Input layer: K = 3 matmul done as 3 broadcast FMAs on the VPU.
        # Sigmoid affine already folded into the weights -> bare tanh (EUP).
        g = jnp.tanh(w0x * xr + w0y * yr + w0t * tr + b0)      # (H, chunk)

        # Hidden layers (static unroll): g <- tanh(W'_d @ g + b'_d)
        for d in range(depth):
            g = jnp.tanh(
                jnp.dot(wh_ref[d], g, preferred_element_type=jnp.float32)
                + bh_ref[d])                                    # (H, chunk)

        # Output layer: (1, H) @ (H, chunk) + (1, 1) -> lane-dense store.
        out_ref[:, sl] = (
            jnp.dot(wo, g, preferred_element_type=jnp.float32) + bo)


def net_forward_folded(x, y, t, folded, *, block_n=BLOCK_N, chunk=CHUNK):
    """x, y, t: (N, 1) float32; `folded` from fold_params. Returns (N, 1)."""
    w0, b0, wh, bh, wo, bo = folded
    N = x.shape[0]
    H = w0.shape[0]
    D = wh.shape[0]

    # Clamp block size for tiny N so we don't pad to a full 2048-lane block.
    block_n = max(chunk, min(block_n, pl.cdiv(N, chunk) * chunk))
    n_chunks = block_n // chunk
    n_pad = pl.cdiv(N, block_n) * block_n

    # Three separate lane-dense rows (pure reshape, no concat / extra HBM
    # round trip of a stacked (3, N) buffer).
    xr = x.reshape(1, N)
    yr = y.reshape(1, N)
    tr = t.reshape(1, N)
    if n_pad != N:
        pad = ((0, 0), (0, n_pad - N))
        xr = jnp.pad(xr, pad)
        yr = jnp.pad(yr, pad)
        tr = jnp.pad(tr, pad)

    kernel = functools.partial(_mlp_kernel, depth=D, n_chunks=n_chunks,
                               chunk=chunk)
    out_t = pl.pallas_call(
        kernel,
        out_shape=jax.ShapeDtypeStruct((1, n_pad), jnp.float32),
        grid_spec=pltpu.PrefetchScalarGridSpec(
            num_scalar_prefetch=0,
            grid=(n_pad // block_n,),
            in_specs=[
                pl.BlockSpec((1, block_n), lambda i: (0, i)),   # x row
                pl.BlockSpec((1, block_n), lambda i: (0, i)),   # y row
                pl.BlockSpec((1, block_n), lambda i: (0, i)),   # t row
                pl.BlockSpec((H, 3), lambda i: (0, 0)),         # W0'  (out,in)
                pl.BlockSpec((H, 1), lambda i: (0, 0)),         # b0'
                pl.BlockSpec((D, H, H), lambda i: (0, 0, 0)),   # hidden W'
                pl.BlockSpec((D, H, 1), lambda i: (0, 0, 0)),   # hidden b'
                pl.BlockSpec((1, H), lambda i: (0, 0)),         # Wout'
                pl.BlockSpec((1, 1), lambda i: (0, 0)),         # bout'
            ],
            out_specs=pl.BlockSpec((1, block_n), lambda i: (0, i)),
        ),
        compiler_params=pltpu.CompilerParams(
            dimension_semantics=("parallel",)),
    )(xr, yr, tr, w0, b0, wh, bh, wo, bo)

    return out_t[:, :N].T                                       # (N, 1)


def net_forward(x, y, t, params, *, block_n=BLOCK_N, chunk=CHUNK):
    """Convenience wrapper taking PyTorch-layout params (folds once)."""
    return net_forward_folded(x, y, t, fold_params(params),
                              block_n=block_n, chunk=chunk)


def init_params(key, hidden_units=HIDDEN_UNITS, hidden_depth=HIDDEN_DEPTH):
    """Deterministic synthetic parameters in PyTorch (out, in) layout."""
    ks = jax.random.split(key, 6)
    scale = 0.5
    w0 = scale * jax.random.normal(ks[0], (hidden_units, 3), jnp.float32)
    b0 = scale * jax.random.normal(ks[1], (hidden_units, 1), jnp.float32)
    wh = scale * jax.random.normal(
        ks[2], (hidden_depth, hidden_units, hidden_units), jnp.float32)
    bh = scale * jax.random.normal(
        ks[3], (hidden_depth, hidden_units, 1), jnp.float32)
    wo = scale * jax.random.normal(ks[4], (1, hidden_units), jnp.float32)
    bo = scale * jax.random.normal(ks[5], (1, 1), jnp.float32)
    return (w0, b0, wh, bh, wo, bo)


def _reference_forward(x, y, t, params):
    """Pure-JAX reference following the PyTorch row-major math exactly."""
    w0, b0, wh, bh, wo, bo = params
    inp = jnp.concatenate([x, y, t], axis=1)               # (N, 3)
    h = jax.nn.sigmoid(inp @ w0.T + b0[:, 0])              # (N, H)
    for d in range(wh.shape[0]):
        h = jax.nn.sigmoid(h @ wh[d].T + bh[d, :, 0])
    return h @ wo.T + bo[:, 0]                             # (N, 1)


# TODO(synk): Net.pde (autograd PDE residual) and analytic_sol are training /
# analysis utilities, not part of the forward pass, and are not translated.

if __name__ == "__main__":
    key = jax.random.PRNGKey(0)
    kx, ky, kt, kp = jax.random.split(key, 4)
    # N chosen non-multiple of the block to exercise the ragged-tail path;
    # with BLOCK_N=2048 this gives 2 grid steps (one per v7x TensorCore).
    N = 3000
    x = jax.random.uniform(kx, (N, 1), jnp.float32)
    y = jax.random.uniform(ky, (N, 1), jnp.float32)
    t = jax.random.uniform(kt, (N, 1), jnp.float32)
    params = init_params(kp)

    # Fold the sigmoid affine into the weights once, then run the kernel.
    folded = fold_params(params)
    fwd = jax.jit(net_forward_folded)
    out = fwd(x, y, t, folded)
    out = jax.block_until_ready(out)

    ref = _reference_forward(x, y, t, params)
    assert out.shape == (N, 1)
    assert jnp.allclose(out, ref, atol=5e-5, rtol=1e-5), (
        float(jnp.max(jnp.abs(out - ref))))
    print("KERNEL_OK")
</pallas_src>

<mosaic_0001>
module attributes {stable_mosaic.version = 11 : i64} {
  func.func @_mlp_kernel(%arg0: i32, %arg1: memref<1x2048xf32, #tpu.memory_space<vmem>>, %arg2: memref<1x2048xf32, #tpu.memory_space<vmem>>, %arg3: memref<1x2048xf32, #tpu.memory_space<vmem>>, %arg4: memref<32x3xf32, #tpu.memory_space<vmem>>, %arg5: memref<32x1xf32, #tpu.memory_space<vmem>>, %arg6: memref<5x32x32xf32, #tpu.memory_space<vmem>>, %arg7: memref<5x32x1xf32, #tpu.memory_space<vmem>>, %arg8: memref<1x32xf32, #tpu.memory_space<vmem>>, %arg9: memref<1x1xf32, #tpu.memory_space<vmem>>, %arg10: memref<1x2048xf32, #tpu.memory_space<vmem>>) attributes {dimension_semantics = [#tpu.dimension_semantics<parallel>], iteration_bounds = array<i64: 2>, scalar_prefetch = 0 : i64, scratch_operands = 0 : i64, tpu.core_type = #tpu.core_type<tc>, window_params = [{transform_indices = @transform_0, window_bounds = array<i64: 1, 2048>}, {transform_indices = @transform_1, window_bounds = array<i64: 1, 2048>}, {transform_indices = @transform_2, window_bounds = array<i64: 1, 2048>}, {pipeline_mode = #tpu.pipeline_mode<synchronous>, transform_indices = @transform_3, window_bounds = array<i64: 32, 3>}, {pipeline_mode = #tpu.pipeline_mode<synchronous>, transform_indices = @transform_4, window_bounds = array<i64: 32, 1>}, {pipeline_mode = #tpu.pipeline_mode<synchronous>, transform_indices = @transform_5, window_bounds = array<i64: 5, 32, 32>}, {pipeline_mode = #tpu.pipeline_mode<synchronous>, transform_indices = @transform_6, window_bounds = array<i64: 5, 32, 1>}, {pipeline_mode = #tpu.pipeline_mode<synchronous>, transform_indices = @transform_7, window_bounds = array<i64: 1, 32>}, {pipeline_mode = #tpu.pipeline_mode<synchronous>, transform_indices = @transform_8, window_bounds = array<i64: 1, 1>}, {transform_indices = @transform_9, window_bounds = array<i64: 1, 2048>}]} {
    %c0 = arith.constant 0 : index
    %c0_0 = arith.constant 0 : index
    %0 = vector.load %arg4[%c0, %c0_0] : memref<32x3xf32, #tpu.memory_space<vmem>>, vector<32x1xf32>
    %c0_1 = arith.constant 0 : index
    %c1 = arith.constant 1 : index
    %1 = vector.load %arg4[%c0_1, %c1] : memref<32x3xf32, #tpu.memory_space<vmem>>, vector<32x1xf32>
    %c0_2 = arith.constant 0 : index
    %c2 = arith.constant 2 : index
    %2 = vector.load %arg4[%c0_2, %c2] : memref<32x3xf32, #tpu.memory_space<vmem>>, vector<32x1xf32>
    %c0_3 = arith.constant 0 : index
    %c0_4 = arith.constant 0 : index
    %3 = vector.load %arg5[%c0_3, %c0_4] : memref<32x1xf32, #tpu.memory_space<vmem>>, vector<32x1xf32>
    %c0_5 = arith.constant 0 : index
    %c0_6 = arith.constant 0 : index
    %4 = vector.load %arg8[%c0_5, %c0_6] : memref<1x32xf32, #tpu.memory_space<vmem>>, vector<1x32xf32>
    %c0_7 = arith.constant 0 : index
    %c0_8 = arith.constant 0 : index
    %5 = vector.load %arg9[%c0_7, %c0_8] : memref<1x1xf32, #tpu.memory_space<vmem>>, vector<1x1xf32>
    %c0_9 = arith.constant 0 : index
    %c0_10 = arith.constant 0 : index
    %6 = vector.load %arg1[%c0_9, %c0_10] : memref<1x2048xf32, #tpu.memory_space<vmem>>, vector<1x512xf32>
    %c0_11 = arith.constant 0 : index
    %c0_12 = arith.constant 0 : index
    %7 = vector.load %arg2[%c0_11, %c0_12] : memref<1x2048xf32, #tpu.memory_space<vmem>>, vector<1x512xf32>
    %c0_13 = arith.constant 0 : index
    %c0_14 = arith.constant 0 : index
    %8 = vector.load %arg3[%c0_13, %c0_14] : memref<1x2048xf32, #tpu.memory_space<vmem>>, vector<1x512xf32>
    %9 = vector.broadcast %0 : vector<32x1xf32> to vector<32x512xf32>
    %10 = vector.broadcast %6 : vector<1x512xf32> to vector<32x512xf32>
    %11 = arith.mulf %9, %10 : vector<32x512xf32>
    %12 = vector.broadcast %1 : vector<32x1xf32> to vector<32x512xf32>
    %13 = vector.broadcast %7 : vector<1x512xf32> to vector<32x512xf32>
    %14 = arith.mulf %12, %13 : vector<32x512xf32>
    %15 = arith.addf %11, %14 : vector<32x512xf32>
    %16 = vector.broadcast %2 : vector<32x1xf32> to vector<32x512xf32>
    %17 = vector.broadcast %8 : vector<1x512xf32> to vector<32x512xf32>
    %18 = arith.mulf %16, %17 : vector<32x512xf32>
    %19 = arith.addf %15, %18 : vector<32x512xf32>
    %20 = vector.broadcast %3 : vector<32x1xf32> to vector<32x512xf32>
    %21 = arith.addf %19, %20 : vector<32x512xf32>
    %22 = math.tanh %21 : vector<32x512xf32>
    %c0_15 = arith.constant 0 : index
    %c0_16 = arith.constant 0 : index
    %c0_17 = arith.constant 0 : index
    %23 = vector.load %arg6[%c0_15, %c0_16, %c0_17] : memref<5x32x32xf32, #tpu.memory_space<vmem>>, vector<1x32x32xf32>
    %24 = vector.shape_cast %23 : vector<1x32x32xf32> to vector<32x32xf32>
    %cst = arith.constant dense<0.000000e+00> : vector<32x512xf32>
    %25 = tpu.matmul %24, %22, %cst {dimension_numbers = #tpu.dot_dimension_numbers<[1], [0], [0], [1], [0, 0, 1, 1], [], []>} : vector<32x32xf32>, vector<32x512xf32>, vector<32x512xf32> -> vector<32x512xf32>
    %c0_18 = arith.constant 0 : index
    %c0_19 = arith.constant 0 : index
    %c0_20 = arith.constant 0 : index
    %26 = vector.load %arg7[%c0_18, %c0_19, %c0_20] : memref<5x32x1xf32, #tpu.memory_space<vmem>>, vector<1x32x1xf32>
    %27 = vector.shape_cast %26 : vector<1x32x1xf32> to vector<32x1xf32>
    %28 = vector.broadcast %27 : vector<32x1xf32> to vector<32x512xf32>
    %29 = arith.addf %25, %28 : vector<32x512xf32>
    %30 = math.tanh %29 : vector<32x512xf32>
    %c1_21 = arith.constant 1 : index
    %c0_22 = arith.constant 0 : index
    %c0_23 = arith.constant 0 : index
    %31 = vector.load %arg6[%c1_21, %c0_22, %c0_23] : memref<5x32x32xf32, #tpu.memory_space<vmem>>, vector<1x32x32xf32>
    %32 = vector.shape_cast %31 : vector<1x32x32xf32> to vector<32x32xf32>
    %cst_24 = arith.constant dense<0.000000e+00> : vector<32x512xf32>
    %33 = tpu.matmul %32, %30, %cst_24 {dimension_numbers = #tpu.dot_dimension_numbers<[1], [0], [0], [1], [0, 0, 1, 1], [], []>} : vector<32x32xf32>, vector<32x512xf32>, vector<32x512xf32> -> vector<32x512xf32>
    %c1_25 = arith.constant 1 : index
    %c0_26 = arith.constant 0 : index
    %c0_27 = arith.constant 0 : index
    %34 = vector.load %arg7[%c1_25, %c0_26, %c0_27] : memref<5x32x1xf32, #tpu.memory_space<vmem>>, vector<1x32x1xf32>
    %35 = vector.shape_cast %34 : vector<1x32x1xf32> to vector<32x1xf32>
    %36 = vector.broadcast %35 : vector<32x1xf32> to vector<32x512xf32>
    %37 = arith.addf %33, %36 : vector<32x512xf32>
    %38 = math.tanh %37 : vector<32x512xf32>
    %c2_28 = arith.constant 2 : index
    %c0_29 = arith.constant 0 : index
    %c0_30 = arith.constant 0 : index
    %39 = vector.load %arg6[%c2_28, %c0_29, %c0_30] : memref<5x32x32xf32, #tpu.memory_space<vmem>>, vector<1x32x32xf32>
    %40 = vector.shape_cast %39 : vector<1x32x32xf32> to vector<32x32xf32>
    %cst_31 = arith.constant dense<0.000000e+00> : vector<32x512xf32>
    %41 = tpu.matmul %40, %38, %cst_31 {dimension_numbers = #tpu.dot_dimension_numbers<[1], [0], [0], [1], [0, 0, 1, 1], [], []>} : vector<32x32xf32>, vector<32x512xf32>, vector<32x512xf32> -> vector<32x512xf32>
    %c2_32 = arith.constant 2 : index
    %c0_33 = arith.constant 0 : index
    %c0_34 = arith.constant 0 : index
    %42 = vector.load %arg7[%c2_32, %c0_33, %c0_34] : memref<5x32x1xf32, #tpu.memory_space<vmem>>, vector<1x32x1xf32>
    %43 = vector.shape_cast %42 : vector<1x32x1xf32> to vector<32x1xf32>
    %44 = vector.broadcast %43 : vector<32x1xf32> to vector<32x512xf32>
    %45 = arith.addf %41, %44 : vector<32x512xf32>
    %46 = math.tanh %45 : vector<32x512xf32>
    %c3 = arith.constant 3 : index
    %c0_35 = arith.constant 0 : index
    %c0_36 = arith.constant 0 : index
    %47 = vector.load %arg6[%c3, %c0_35, %c0_36] : memref<5x32x32xf32, #tpu.memory_space<vmem>>, vector<1x32x32xf32>
    %48 = vector.shape_cast %47 : vector<1x32x32xf32> to vector<32x32xf32>
    %cst_37 = arith.constant dense<0.000000e+00> : vector<32x512xf32>
    %49 = tpu.matmul %48, %46, %cst_37 {dimension_numbers = #tpu.dot_dimension_numbers<[1], [0], [0], [1], [0, 0, 1, 1], [], []>} : vector<32x32xf32>, vector<32x512xf32>, vector<32x512xf32> -> vector<32x512xf32>
    %c3_38 = arith.constant 3 : index
    %c0_39 = arith.constant 0 : index
    %c0_40 = arith.constant 0 : index
    %50 = vector.load %arg7[%c3_38, %c0_39, %c0_40] : memref<5x32x1xf32, #tpu.memory_space<vmem>>, vector<1x32x1xf32>
    %51 = vector.shape_cast %50 : vector<1x32x1xf32> to vector<32x1xf32>
    %52 = vector.broadcast %51 : vector<32x1xf32> to vector<32x512xf32>
    %53 = arith.addf %49, %52 : vector<32x512xf32>
    %54 = math.tanh %53 : vector<32x512xf32>
    %c4 = arith.constant 4 : index
    %c0_41 = arith.constant 0 : index
    %c0_42 = arith.constant 0 : index
    %55 = vector.load %arg6[%c4, %c0_41, %c0_42] : memref<5x32x32xf32, #tpu.memory_space<vmem>>, vector<1x32x32xf32>
    %56 = vector.shape_cast %55 : vector<1x32x32xf32> to vector<32x32xf32>
    %cst_43 = arith.constant dense<0.000000e+00> : vector<32x512xf32>
    %57 = tpu.matmul %56, %54, %cst_43 {dimension_numbers = #tpu.dot_dimension_numbers<[1], [0], [0], [1], [0, 0, 1, 1], [], []>} : vector<32x32xf32>, vector<32x512xf32>, vector<32x512xf32> -> vector<32x512xf32>
    %c4_44 = arith.constant 4 : index
    %c0_45 = arith.constant 0 : index
    %c0_46 = arith.constant 0 : index
    %58 = vector.load %arg7[%c4_44, %c0_45, %c0_46] : memref<5x32x1xf32, #tpu.memory_space<vmem>>, vector<1x32x1xf32>
    %59 = vector.shape_cast %58 : vector<1x32x1xf32> to vector<32x1xf32>
    %60 = vector.broadcast %59 : vector<32x1xf32> to vector<32x512xf32>
    %61 = arith.addf %57, %60 : vector<32x512xf32>
    %62 = math.tanh %61 : vector<32x512xf32>
    %cst_47 = arith.constant dense<0.000000e+00> : vector<1x512xf32>
    %63 = tpu.matmul %4, %62, %cst_47 {dimension_numbers = #tpu.dot_dimension_numbers<[1], [0], [0], [1], [0, 0, 1, 1], [], []>} : vector<1x32xf32>, vector<32x512xf32>, vector<1x512xf32> -> vector<1x512xf32>
    %64 = vector.broadcast %5 : vector<1x1xf32> to vector<1x512xf32>
    %65 = arith.addf %63, %64 : vector<1x512xf32>
    %c0_48 = arith.constant 0 : index
    %c0_49 = arith.constant 0 : index
    %66 = vector.load %arg10[%c0_48, %c0_49] : memref<1x2048xf32, #tpu.memory_space<vmem>>, vector<1x512xf32>
    tpu.vector_store %arg10[%c0_48, %c0_49], %65 {strides = array<i32>} : memref<1x2048xf32, #tpu.memory_space<vmem>>, vector<1x512xf32>,
    %c0_50 = arith.constant 0 : index
    %c512 = arith.constant 512 : index
    %67 = vector.load %arg1[%c0_50, %c512] : memref<1x2048xf32, #tpu.memory_space<vmem>>, vector<1x512xf32>
    %c0_51 = arith.constant 0 : index
    %c512_52 = arith.constant 512 : index
    %68 = vector.load %arg2[%c0_51, %c512_52] : memref<1x2048xf32, #tpu.memory_space<vmem>>, vector<1x512xf32>
    %c0_53 = arith.constant 0 : index
    %c512_54 = arith.constant 512 : index
    %69 = vector.load %arg3[%c0_53, %c512_54] : memref<1x2048xf32, #tpu.memory_space<vmem>>, vector<1x512xf32>
    %70 = vector.broadcast %0 : vector<32x1xf32> to vector<32x512xf32>
    %71 = vector.broadcast %67 : vector<1x512xf32> to vector<32x512xf32>
    %72 = arith.mulf %70, %71 : vector<32x512xf32>
    %73 = vector.broadcast %1 : vector<32x1xf32> to vector<32x512xf32>
    %74 = vector.broadcast %68 : vector<1x512xf32> to vector<32x512xf32>
    %75 = arith.mulf %73, %74 : vector<32x512xf32>
    %76 = arith.addf %72, %75 : vector<32x512xf32>
    %77 = vector.broadcast %2 : vector<32x1xf32> to vector<32x512xf32>
    %78 = vector.broadcast %69 : vector<1x512xf32> to vector<32x512xf32>
    %79 = arith.mulf %77, %78 : vector<32x512xf32>
    %80 = arith.addf %76, %79 : vector<32x512xf32>
    %81 = vector.broadcast %3 : vector<32x1xf32> to vector<32x512xf32>
    %82 = arith.addf %80, %81 : vector<32x512xf32>
    %83 = math.tanh %82 : vector<32x512xf32>
    %c0_55 = arith.constant 0 : index
    %c0_56 = arith.constant 0 : index
    %c0_57 = arith.constant 0 : index
    %84 = vector.load %arg6[%c0_55, %c0_56, %c0_57] : memref<5x32x32xf32, #tpu.memory_space<vmem>>, vector<1x32x32xf32>
    %85 = vector.shape_cast %84 : vector<1x32x32xf32> to vector<32x32xf32>
    %cst_58 = arith.constant dense<0.000000e+00> : vector<32x512xf32>
    %86 = tpu.matmul %85, %83, %cst_58 {dimension_numbers = #tpu.dot_dimension_numbers<[1], [0], [0], [1], [0, 0, 1, 1], [], []>} : vector<32x32xf32>, vector<32x512xf32>, vector<32x512xf32> -> vector<32x512xf32>
    %c0_59 = arith.constant 0 : index
    %c0_60 = arith.constant 0 : index
    %c0_61 = arith.constant 0 : index
    %87 = vector.load %arg7[%c0_59, %c0_60, %c0_61] : memref<5x32x1xf32, #tpu.memory_space<vmem>>, vector<1x32x1xf32>
    %88 = vector.shape_cast %87 : vector<1x32x1xf32> to vector<32x1xf32>
    %89 = vector.broadcast %88 : vector<32x1xf32> to vector<32x512xf32>
    %90 = arith.addf %86, %89 : vector<32x512xf32>
    %91 = math.tanh %90 : vector<32x512xf32>
    %c1_62 = arith.constant 1 : index
    %c0_63 = arith.constant 0 : index
    %c0_64 = arith.constant 0 : index
    %92 = vector.load %arg6[%c1_62, %c0_63, %c0_64] : memref<5x32x32xf32, #tpu.memory_space<vmem>>, vector<1x32x32xf32>
    %93 = vector.shape_cast %92 : vector<1x32x32xf32> to vector<32x32xf32>
    %cst_65 = arith.constant dense<0.000000e+00> : vector<32x512xf32>
    %94 = tpu.matmul %93, %91, %cst_65 {dimension_numbers = #tpu.dot_dimension_numbers<[1], [0], [0], [1], [0, 0, 1, 1], [], []>} : vector<32x32xf32>, vector<32x512xf32>, vector<32x512xf32> -> vector<32x512xf32>
    %c1_66 = arith.constant 1 : index
    %c0_67 = arith.constant 0 : index
    %c0_68 = arith.constant 0 : index
    %95 = vector.load %arg7[%c1_66, %c0_67, %c0_68] : memref<5x32x1xf32, #tpu.memory_space<vmem>>, vector<1x32x1xf32>
    %96 = vector.shape_cast %95 : vector<1x32x1xf32> to vector<32x1xf32>
    %97 = vector.broadcast %96 : vector<32x1xf32> to vector<32x512xf32>
    %98 = arith.addf %94, %97 : vector<32x512xf32>
    %99 = math.tanh %98 : vector<32x512xf32>
    %c2_69 = arith.constant 2 : index
    %c0_70 = arith.constant 0 : index
    %c0_71 = arith.constant 0 : index
    %100 = vector.load %arg6[%c2_69, %c0_70, %c0_71] : memref<5x32x32xf32, #tpu.memory_space<vmem>>, vector<1x32x32xf32>
    %101 = vector.shape_cast %100 : vector<1x32x32xf32> to vector<32x32xf32>
    %cst_72 = arith.constant dense<0.000000e+00> : vector<32x512xf32>
    %102 = tpu.matmul %101, %99, %cst_72 {dimension_numbers = #tpu.dot_dimension_numbers<[1], [0], [0], [1], [0, 0, 1, 1], [], []>} : vector<32x32xf32>, vector<32x512xf32>, vector<32x512xf32> -> vector<32x512xf32>
    %c2_73 = arith.constant 2 : index
    %c0_74 = arith.constant 0 : index
    %c0_75 = arith.constant 0 : index
    %103 = vector.load %arg7[%c2_73, %c0_74, %c0_75] : memref<5x32x1xf32, #tpu.memory_space<vmem>>, vector<1x32x1xf32>
    %104 = vector.shape_cast %103 : vector<1x32x1xf32> to vector<32x1xf32>
    %105 = vector.broadcast %104 : vector<32x1xf32> to vector<32x512xf32>
    %106 = arith.addf %102, %105 : vector<32x512xf32>
    %107 = math.tanh %106 : vector<32x512xf32>
    %c3_76 = arith.constant 3 : index
    %c0_77 = arith.constant 0 : index
    %c0_78 = arith.constant 0 : index
    %108 = vector.load %arg6[%c3_76, %c0_77, %c0_78] : memref<5x32x32xf32, #tpu.memory_space<vmem>>, vector<1x32x32xf32>
    %109 = vector.shape_cast %108 : vector<1x32x32xf32> to vector<32x32xf32>
    %cst_79 = arith.constant dense<0.000000e+00> : vector<32x512xf32>
    %110 = tpu.matmul %109, %107, %cst_79 {dimension_numbers = #tpu.dot_dimension_numbers<[1], [0], [0], [1], [0, 0, 1, 1], [], []>} : vector<32x32xf32>, vector<32x512xf32>, vector<32x512xf32> -> vector<32x512xf32>
    %c3_80 = arith.constant 3 : index
    %c0_81 = arith.constant 0 : index
    %c0_82 = arith.constant 0 : index
    %111 = vector.load %arg7[%c3_80, %c0_81, %c0_82] : memref<5x32x1xf32, #tpu.memory_space<vmem>>, vector<1x32x1xf32>
    %112 = vector.shape_cast %111 : vector<1x32x1xf32> to vector<32x1xf32>
    %113 = vector.broadcast %112 : vector<32x1xf32> to vector<32x512xf32>
    %114 = arith.addf %110, %113 : vector<32x512xf32>
    %115 = math.tanh %114 : vector<32x512xf32>
    %c4_83 = arith.constant 4 : index
    %c0_84 = arith.constant 0 : index
    %c0_85 = arith.constant 0 : index
    %116 = vector.load %arg6[%c4_83, %c0_84, %c0_85] : memref<5x32x32xf32, #tpu.memory_space<vmem>>, vector<1x32x32xf32>
    %117 = vector.shape_cast %116 : vector<1x32x32xf32> to vector<32x32xf32>
    %cst_86 = arith.constant dense<0.000000e+00> : vector<32x512xf32>
    %118 = tpu.matmul %117, %115, %cst_86 {dimension_numbers = #tpu.dot_dimension_numbers<[1], [0], [0], [1], [0, 0, 1, 1], [], []>} : vector<32x32xf32>, vector<32x512xf32>, vector<32x512xf32> -> vector<32x512xf32>
    %c4_87 = arith.constant 4 : index
    %c0_88 = arith.constant 0 : index
    %c0_89 = arith.constant 0 : index
    %119 = vector.load %arg7[%c4_87, %c0_88, %c0_89] : memref<5x32x1xf32, #tpu.memory_space<vmem>>, vector<1x32x1xf32>
    %120 = vector.shape_cast %119 : vector<1x32x1xf32> to vector<32x1xf32>
    %121 = vector.broadcast %120 : vector<32x1xf32> to vector<32x512xf32>
    %122 = arith.addf %118, %121 : vector<32x512xf32>
    %123 = math.tanh %122 : vector<32x512xf32>
    %cst_90 = arith.constant dense<0.000000e+00> : vector<1x512xf32>
    %124 = tpu.matmul %4, %123, %cst_90 {dimension_numbers = #tpu.dot_dimension_numbers<[1], [0], [0], [1], [0, 0, 1, 1], [], []>} : vector<1x32xf32>, vector<32x512xf32>, vector<1x512xf32> -> vector<1x512xf32>
    %125 = vector.broadcast %5 : vector<1x1xf32> to vector<1x512xf32>
    %126 = arith.addf %124, %125 : vector<1x512xf32>
    %c0_91 = arith.constant 0 : index
    %c512_92 = arith.constant 512 : index
    %127 = vector.load %arg10[%c0_91, %c512_92] : memref<1x2048xf32, #tpu.memory_space<vmem>>, vector<1x512xf32>
    tpu.vector_store %arg10[%c0_91, %c512_92], %126 {strides = array<i32>} : memref<1x2048xf32, #tpu.memory_space<vmem>>, vector<1x512xf32>,
    %c0_93 = arith.constant 0 : index
    %c1024 = arith.constant 1024 : index
    %128 = vector.load %arg1[%c0_93, %c1024] : memref<1x2048xf32, #tpu.memory_space<vmem>>, vector<1x512xf32>
    %c0_94 = arith.constant 0 : index
    %c1024_95 = arith.constant 1024 : index
    %129 = vector.load %arg2[%c0_94, %c1024_95] : memref<1x2048xf32, #tpu.memory_space<vmem>>, vector<1x512xf32>
    %c0_96 = arith.constant 0 : index
    %c1024_97 = arith.constant 1024 : index
    %130 = vector.load %arg3[%c0_96, %c1024_97] : memref<1x2048xf32, #tpu.memory_space<vmem>>, vector<1x512xf32>
    %131 = vector.broadcast %0 : vector<32x1xf32> to vector<32x512xf32>
    %132 = vector.broadcast %128 : vector<1x512xf32> to vector<32x512xf32>
    %133 = arith.mulf %131, %132 : vector<32x512xf32>
    %134 = vector.broadcast %1 : vector<32x1xf32> to vector<32x512xf32>
    %135 = vector.broadcast %129 : vector<1x512xf32> to vector<32x512xf32>
    %136 = arith.mulf %134, %135 : vector<32x512xf32>
    %137 = arith.addf %133, %136 : vector<32x512xf32>
    %138 = vector.broadcast %2 : vector<32x1xf32> to vector<32x512xf32>
    %139 = vector.broadcast %130 : vector<1x512xf32> to vector<32x512xf32>
    %140 = arith.mulf %138, %139 : vector<32x512xf32>
    %141 = arith.addf %137, %140 : vector<32x512xf32>
    %142 = vector.broadcast %3 : vector<32x1xf32> to vector<32x512xf32>
    %143 = arith.addf %141, %142 : vector<32x512xf32>
    %144 = math.tanh %143 : vector<32x512xf32>
    %c0_98 = arith.constant 0 : index
    %c0_99 = arith.constant 0 : index
    %c0_100 = arith.constant 0 : index
    %145 = vector.load %arg6[%c0_98, %c0_99, %c0_100] : memref<5x32x32xf32, #tpu.memory_space<vmem>>, vector<1x32x32xf32>
    %146 = vector.shape_cast %145 : vector<1x32x32xf32> to vector<32x32xf32>
    %cst_101 = arith.constant dense<0.000000e+00> : vector<32x512xf32>
    %147 = tpu.matmul %146, %144, %cst_101 {dimension_numbers = #tpu.dot_dimension_numbers<[1], [0], [0], [1], [0, 0, 1, 1], [], []>} : vector<32x32xf32>, vector<32x512xf32>, vector<32x512xf32> -> vector<32x512xf32>
    %c0_102 = arith.constant 0 : index
    %c0_103 = arith.constant 0 : index
    %c0_104 = arith.constant 0 : index
    %148 = vector.load %arg7[%c0_102, %c0_103, %c0_104] : memref<5x32x1xf32, #tpu.memory_space<vmem>>, vector<1x32x1xf32>
    %149 = vector.shape_cast %148 : vector<1x32x1xf32> to vector<32x1xf32>
    %150 = vector.broadcast %149 : vector<32x1xf32> to vector<32x512xf32>
    %151 = arith.addf %147, %150 : vector<32x512xf32>
    %152 = math.tanh %151 : vector<32x512xf32>
    %c1_105 = arith.constant 1 : index
    %c0_106 = arith.constant 0 : index
    %c0_107 = arith.constant 0 : index
    %153 = vector.load %arg6[%c1_105, %c0_106, %c0_107] : memref<5x32x32xf32, #tpu.memory_space<vmem>>, vector<1x32x32xf32>
    %154 = vector.shape_cast %153 : vector<1x32x32xf32> to vector<32x32xf32>
    %cst_108 = arith.constant dense<0.000000e+00> : vector<32x512xf32>
    %155 = tpu.matmul %154, %152, %cst_108 {dimension_numbers = #tpu.dot_dimension_numbers<[1], [0], [0], [1], [0, 0, 1, 1], [], []>} : vector<32x32xf32>, vector<32x512xf32>, vector<32x512xf32> -> vector<32x512xf32>
    %c1_109 = arith.constant 1 : index
    %c0_110 = arith.constant 0 : index
    %c0_111 = arith.constant 0 : index
    %156 = vector.load %arg7[%c1_109, %c0_110, %c0_111] : memref<5x32x1xf32, #tpu.memory_space<vmem>>, vector<1x32x1xf32>
    %157 = vector.shape_cast %156 : vector<1x32x1xf32> to vector<32x1xf32>
    %158 = vector.broadcast %157 : vector<32x1xf32> to vector<32x512xf32>
    %159 = arith.addf %155, %158 : vector<32x512xf32>
    %160 = math.tanh %159 : vector<32x512xf32>
    %c2_112 = arith.constant 2 : index
    %c0_113 = arith.constant 0 : index
    %c0_114 = arith.constant 0 : index
    %161 = vector.load %arg6[%c2_112, %c0_113, %c0_114] : memref<5x32x32xf32, #tpu.memory_space<vmem>>, vector<1x32x32xf32>
    %162 = vector.shape_cast %161 : vector<1x32x32xf32> to vector<32x32xf32>
    %cst_115 = arith.constant dense<0.000000e+00> : vector<32x512xf32>
    %163 = tpu.matmul %162, %160, %cst_115 {dimension_numbers = #tpu.dot_dimension_numbers<[1], [0], [0], [1], [0, 0, 1, 1], [], []>} : vector<32x32xf32>, vector<32x512xf32>, vector<32x512xf32> -> vector<32x512xf32>
    %c2_116 = arith.constant 2 : index
    %c0_117 = arith.constant 0 : index
    %c0_118 = arith.constant 0 : index
    %164 = vector.load %arg7[%c2_116, %c0_117, %c0_118] : memref<5x32x1xf32, #tpu.memory_space<vmem>>, vector<1x32x1xf32>
    %165 = vector.shape_cast %164 : vector<1x32x1xf32> to vector<32x1xf32>
    %166 = vector.broadcast %165 : vector<32x1xf32> to vector<32x512xf32>
    %167 = arith.addf %163, %166 : vector<32x512xf32>
    %168 = math.tanh %167 : vector<32x512xf32>
    %c3_119 = arith.constant 3 : index
    %c0_120 = arith.constant 0 : index
    %c0_121 = arith.constant 0 : index
    %169 = vector.load %arg6[%c3_119, %c0_120, %c0_121] : memref<5x32x32xf32, #tpu.memory_space<vmem>>, vector<1x32x32xf32>
    %170 = vector.shape_cast %169 : vector<1x32x32xf32> to vector<32x32xf32>
    %cst_122 = arith.constant dense<0.000000e+00> : vector<32x512xf32>
    %171 = tpu.matmul %170, %168, %cst_122 {dimension_numbers = #tpu.dot_dimension_numbers<[1], [0], [0], [1], [0, 0, 1, 1], [], []>} : vector<32x32xf32>, vector<32x512xf32>, vector<32x512xf32> -> vector<32x512xf32>
    %c3_123 = arith.constant 3 : index
    %c0_124 = arith.constant 0 : index
    %c0_125 = arith.constant 0 : index
    %172 = vector.load %arg7[%c3_123, %c0_124, %c0_125] : memref<5x32x1xf32, #tpu.memory_space<vmem>>, vector<1x32x1xf32>
    %173 = vector.shape_cast %172 : vector<1x32x1xf32> to vector<32x1xf32>
    %174 = vector.broadcast %173 : vector<32x1xf32> to vector<32x512xf32>
    %175 = arith.addf %171, %174 : vector<32x512xf32>
    %176 = math.tanh %175 : vector<32x512xf32>
    %c4_126 = arith.constant 4 : index
    %c0_127 = arith.constant 0 : index
    %c0_128 = arith.constant 0 : index
    %177 = vector.load %arg6[%c4_126, %c0_127, %c0_128] : memref<5x32x32xf32, #tpu.memory_space<vmem>>, vector<1x32x32xf32>
    %178 = vector.shape_cast %177 : vector<1x32x32xf32> to vector<32x32xf32>
    %cst_129 = arith.constant dense<0.000000e+00> : vector<32x512xf32>
    %179 = tpu.matmul %178, %176, %cst_129 {dimension_numbers = #tpu.dot_dimension_numbers<[1], [0], [0], [1], [0, 0, 1, 1], [], []>} : vector<32x32xf32>, vector<32x512xf32>, vector<32x512xf32> -> vector<32x512xf32>
    %c4_130 = arith.constant 4 : index
    %c0_131 = arith.constant 0 : index
    %c0_132 = arith.constant 0 : index
    %180 = vector.load %arg7[%c4_130, %c0_131, %c0_132] : memref<5x32x1xf32, #tpu.memory_space<vmem>>, vector<1x32x1xf32>
    %181 = vector.shape_cast %180 : vector<1x32x1xf32> to vector<32x1xf32>
    %182 = vector.broadcast %181 : vector<32x1xf32> to vector<32x512xf32>
    %183 = arith.addf %179, %182 : vector<32x512xf32>
    %184 = math.tanh %183 : vector<32x512xf32>
    %cst_133 = arith.constant dense<0.000000e+00> : vector<1x512xf32>
    %185 = tpu.matmul %4, %184, %cst_133 {dimension_numbers = #tpu.dot_dimension_numbers<[1], [0], [0], [1], [0, 0, 1, 1], [], []>} : vector<1x32xf32>, vector<32x512xf32>, vector<1x512xf32> -> vector<1x512xf32>
    %186 = vector.broadcast %5 : vector<1x1xf32> to vector<1x512xf32>
    %187 = arith.addf %185, %186 : vector<1x512xf32>
    %c0_134 = arith.constant 0 : index
    %c1024_135 = arith.constant 1024 : index
    %188 = vector.load %arg10[%c0_134, %c1024_135] : memref<1x2048xf32, #tpu.memory_space<vmem>>, vector<1x512xf32>
    tpu.vector_store %arg10[%c0_134, %c1024_135], %187 {strides = array<i32>} : memref<1x2048xf32, #tpu.memory_space<vmem>>, vector<1x512xf32>,
    %c0_136 = arith.constant 0 : index
    %c1536 = arith.constant 1536 : index
    %189 = vector.load %arg1[%c0_136, %c1536] : memref<1x2048xf32, #tpu.memory_space<vmem>>, vector<1x512xf32>
    %c0_137 = arith.constant 0 : index
    %c1536_138 = arith.constant 1536 : index
    %190 = vector.load %arg2[%c0_137, %c1536_138] : memref<1x2048xf32, #tpu.memory_space<vmem>>, vector<1x512xf32>
    %c0_139 = arith.constant 0 : index
    %c1536_140 = arith.constant 1536 : index
    %191 = vector.load %arg3[%c0_139, %c1536_140] : memref<1x2048xf32, #tpu.memory_space<vmem>>, vector<1x512xf32>
    %192 = vector.broadcast %0 : vector<32x1xf32> to vector<32x512xf32>
    %193 = vector.broadcast %189 : vector<1x512xf32> to vector<32x512xf32>
    %194 = arith.mulf %192, %193 : vector<32x512xf32>
    %195 = vector.broadcast %1 : vector<32x1xf32> to vector<32x512xf32>
    %196 = vector.broadcast %190 : vector<1x512xf32> to vector<32x512xf32>
    %197 = arith.mulf %195, %196 : vector<32x512xf32>
    %198 = arith.addf %194, %197 : vector<32x512xf32>
    %199 = vector.broadcast %2 : vector<32x1xf32> to vector<32x512xf32>
    %200 = vector.broadcast %191 : vector<1x512xf32> to vector<32x512xf32>
    %201 = arith.mulf %199, %200 : vector<32x512xf32>
    %202 = arith.addf %198, %201 : vector<32x512xf32>
    %203 = vector.broadcast %3 : vector<32x1xf32> to vector<32x512xf32>
    %204 = arith.addf %202, %203 : vector<32x512xf32>
    %205 = math.tanh %204 : vector<32x512xf32>
    %c0_141 = arith.constant 0 : index
    %c0_142 = arith.constant 0 : index
    %c0_143 = arith.constant 0 : index
    %206 = vector.load %arg6[%c0_141, %c0_142, %c0_143] : memref<5x32x32xf32, #tpu.memory_space<vmem>>, vector<1x32x32xf32>
    %207 = vector.shape_cast %206 : vector<1x32x32xf32> to vector<32x32xf32>
    %cst_144 = arith.constant dense<0.000000e+00> : vector<32x512xf32>
    %208 = tpu.matmul %207, %205, %cst_144 {dimension_numbers = #tpu.dot_dimension_numbers<[1], [0], [0], [1], [0, 0, 1, 1], [], []>} : vector<32x32xf32>, vector<32x512xf32>, vector<32x512xf32> -> vector<32x512xf32>
    %c0_145 = arith.constant 0 : index
    %c0_146 = arith.constant 0 : index
    %c0_147 = arith.constant 0 : index
    %209 = vector.load %arg7[%c0_145, %c0_146, %c0_147] : memref<5x32x1xf32, #tpu.memory_space<vmem>>, vector<1x32x1xf32>
    %210 = vector.shape_cast %209 : vector<1x32x1xf32> to vector<32x1xf32>
    %211 = vector.broadcast %210 : vector<32x1xf32> to vector<32x512xf32>
    %212 = arith.addf %208, %211 : vector<32x512xf32>
    %213 = math.tanh %212 : vector<32x512xf32>
    %c1_148 = arith.constant 1 : index
    %c0_149 = arith.constant 0 : index
    %c0_150 = arith.constant 0 : index
    %214 = vector.load %arg6[%c1_148, %c0_149, %c0_150] : memref<5x32x32xf32, #tpu.memory_space<vmem>>, vector<1x32x32xf32>
    %215 = vector.shape_cast %214 : vector<1x32x32xf32> to vector<32x32xf32>
    %cst_151 = arith.constant dense<0.000000e+00> : vector<32x512xf32>
    %216 = tpu.matmul %215, %213, %cst_151 {dimension_numbers = #tpu.dot_dimension_numbers<[1], [0], [0], [1], [0, 0, 1, 1], [], []>} : vector<32x32xf32>, vector<32x512xf32>, vector<32x512xf32> -> vector<32x512xf32>
    %c1_152 = arith.constant 1 : index
    %c0_153 = arith.constant 0 : index
    %c0_154 = arith.constant 0 : index
    %217 = vector.load %arg7[%c1_152, %c0_153, %c0_154] : memref<5x32x1xf32, #tpu.memory_space<vmem>>, vector<1x32x1xf32>
    %218 = vector.shape_cast %217 : vector<1x32x1xf32> to vector<32x1xf32>
    %219 = vector.broadcast %218 : vector<32x1xf32> to vector<32x512xf32>
    %220 = arith.addf %216, %219 : vector<32x512xf32>
    %221 = math.tanh %220 : vector<32x512xf32>
    %c2_155 = arith.constant 2 : index
    %c0_156 = arith.constant 0 : index
    %c0_157 = arith.constant 0 : index
    %222 = vector.load %arg6[%c2_155, %c0_156, %c0_157] : memref<5x32x32xf32, #tpu.memory_space<vmem>>, vector<1x32x32xf32>
    %223 = vector.shape_cast %222 : vector<1x32x32xf32> to vector<32x32xf32>
    %cst_158 = arith.constant dense<0.000000e+00> : vector<32x512xf32>
    %224 = tpu.matmul %223, %221, %cst_158 {dimension_numbers = #tpu.dot_dimension_numbers<[1], [0], [0], [1], [0, 0, 1, 1], [], []>} : vector<32x32xf32>, vector<32x512xf32>, vector<32x512xf32> -> vector<32x512xf32>
    %c2_159 = arith.constant 2 : index
    %c0_160 = arith.constant 0 : index
    %c0_161 = arith.constant 0 : index
    %225 = vector.load %arg7[%c2_159, %c0_160, %c0_161] : memref<5x32x1xf32, #tpu.memory_space<vmem>>, vector<1x32x1xf32>
    %226 = vector.shape_cast %225 : vector<1x32x1xf32> to vector<32x1xf32>
    %227 = vector.broadcast %226 : vector<32x1xf32> to vector<32x512xf32>
    %228 = arith.addf %224, %227 : vector<32x512xf32>
    %229 = math.tanh %228 : vector<32x512xf32>
    %c3_162 = arith.constant 3 : index
    %c0_163 = arith.constant 0 : index
    %c0_164 = arith.constant 0 : index
    %230 = vector.load %arg6[%c3_162, %c0_163, %c0_164] : memref<5x32x32xf32, #tpu.memory_space<vmem>>, vector<1x32x32xf32>
    %231 = vector.shape_cast %230 : vector<1x32x32xf32> to vector<32x32xf32>
    %cst_165 = arith.constant dense<0.000000e+00> : vector<32x512xf32>
    %232 = tpu.matmul %231, %229, %cst_165 {dimension_numbers = #tpu.dot_dimension_numbers<[1], [0], [0], [1], [0, 0, 1, 1], [], []>} : vector<32x32xf32>, vector<32x512xf32>, vector<32x512xf32> -> vector<32x512xf32>
    %c3_166 = arith.constant 3 : index
    %c0_167 = arith.constant 0 : index
    %c0_168 = arith.constant 0 : index
    %233 = vector.load %arg7[%c3_166, %c0_167, %c0_168] : memref<5x32x1xf32, #tpu.memory_space<vmem>>, vector<1x32x1xf32>
    %234 = vector.shape_cast %233 : vector<1x32x1xf32> to vector<32x1xf32>
    %235 = vector.broadcast %234 : vector<32x1xf32> to vector<32x512xf32>
    %236 = arith.addf %232, %235 : vector<32x512xf32>
    %237 = math.tanh %236 : vector<32x512xf32>
    %c4_169 = arith.constant 4 : index
    %c0_170 = arith.constant 0 : index
    %c0_171 = arith.constant 0 : index
    %238 = vector.load %arg6[%c4_169, %c0_170, %c0_171] : memref<5x32x32xf32, #tpu.memory_space<vmem>>, vector<1x32x32xf32>
    %239 = vector.shape_cast %238 : vector<1x32x32xf32> to vector<32x32xf32>
    %cst_172 = arith.constant dense<0.000000e+00> : vector<32x512xf32>
    %240 = tpu.matmul %239, %237, %cst_172 {dimension_numbers = #tpu.dot_dimension_numbers<[1], [0], [0], [1], [0, 0, 1, 1], [], []>} : vector<32x32xf32>, vector<32x512xf32>, vector<32x512xf32> -> vector<32x512xf32>
    %c4_173 = arith.constant 4 : index
    %c0_174 = arith.constant 0 : index
    %c0_175 = arith.constant 0 : index
    %241 = vector.load %arg7[%c4_173, %c0_174, %c0_175] : memref<5x32x1xf32, #tpu.memory_space<vmem>>, vector<1x32x1xf32>
    %242 = vector.shape_cast %241 : vector<1x32x1xf32> to vector<32x1xf32>
    %243 = vector.broadcast %242 : vector<32x1xf32> to vector<32x512xf32>
    %244 = arith.addf %240, %243 : vector<32x512xf32>
    %245 = math.tanh %244 : vector<32x512xf32>
    %cst_176 = arith.constant dense<0.000000e+00> : vector<1x512xf32>
    %246 = tpu.matmul %4, %245, %cst_176 {dimension_numbers = #tpu.dot_dimension_numbers<[1], [0], [0], [1], [0, 0, 1, 1], [], []>} : vector<1x32xf32>, vector<32x512xf32>, vector<1x512xf32> -> vector<1x512xf32>
    %247 = vector.broadcast %5 : vector<1x1xf32> to vector<1x512xf32>
    %248 = arith.addf %246, %247 : vector<1x512xf32>
    %c0_177 = arith.constant 0 : index
    %c1536_178 = arith.constant 1536 : index
    %249 = vector.load %arg10[%c0_177, %c1536_178] : memref<1x2048xf32, #tpu.memory_space<vmem>>, vector<1x512xf32>
    tpu.vector_store %arg10[%c0_177, %c1536_178], %248 {strides = array<i32>} : memref<1x2048xf32, #tpu.memory_space<vmem>>, vector<1x512xf32>,
    return
  }
  func.func @transform_0(%arg0: i32) -> (i32, i32) {
    %c0_i32 = arith.constant 0 : i32
    %c0_i32_0 = arith.constant 0 : i32
    return %c0_i32, %arg0 : i32, i32
  }
  func.func @transform_1(%arg0: i32) -> (i32, i32) {
    %c0_i32 = arith.constant 0 : i32
    %c0_i32_0 = arith.constant 0 : i32
    return %c0_i32, %arg0 : i32, i32
  }
  func.func @transform_2(%arg0: i32) -> (i32, i32) {
    %c0_i32 = arith.constant 0 : i32
    %c0_i32_0 = arith.constant 0 : i32
    return %c0_i32, %arg0 : i32, i32
  }
  func.func @transform_3(%arg0: i32) -> (i32, i32) {
    %c0_i32 = arith.constant 0 : i32
    %c0_i32_0 = arith.constant 0 : i32
    %c0_i32_1 = arith.constant 0 : i32
    return %c0_i32, %c0_i32_0 : i32, i32
  }
  func.func @transform_4(%arg0: i32) -> (i32, i32) {
    %c0_i32 = arith.constant 0 : i32
    %c0_i32_0 = arith.constant 0 : i32
    %c0_i32_1 = arith.constant 0 : i32
    return %c0_i32, %c0_i32_0 : i32, i32
  }
  func.func @transform_5(%arg0: i32) -> (i32, i32, i32) {
    %c0_i32 = arith.constant 0 : i32
    %c0_i32_0 = arith.constant 0 : i32
    %c0_i32_1 = arith.constant 0 : i32
    %c0_i32_2 = arith.constant 0 : i32
    return %c0_i32, %c0_i32_0, %c0_i32_1 : i32, i32, i32
  }
  func.func @transform_6(%arg0: i32) -> (i32, i32, i32) {
    %c0_i32 = arith.constant 0 : i32
    %c0_i32_0 = arith.constant 0 : i32
    %c0_i32_1 = arith.constant 0 : i32
    %c0_i32_2 = arith.constant 0 : i32
    return %c0_i32, %c0_i32_0, %c0_i32_1 : i32, i32, i32
  }
  func.func @transform_7(%arg0: i32) -> (i32, i32) {
    %c0_i32 = arith.constant 0 : i32
    %c0_i32_0 = arith.constant 0 : i32
    %c0_i32_1 = arith.constant 0 : i32
    return %c0_i32, %c0_i32_0 : i32, i32
  }
  func.func @transform_8(%arg0: i32) -> (i32, i32) {
    %c0_i32 = arith.constant 0 : i32
    %c0_i32_0 = arith.constant 0 : i32
    %c0_i32_1 = arith.constant 0 : i32
    return %c0_i32, %c0_i32_0 : i32, i32
  }
  func.func @transform_9(%arg0: i32) -> (i32, i32) {
    %c0_i32 = arith.constant 0 : i32
    %c0_i32_0 = arith.constant 0 : i32
    return %c0_i32, %arg0 : i32, i32
  }
}

</mosaic_0001>

<bundles_post_ra>
// kernel: net_forward_folded.1
= control target key start
LH: loop header
LB: loop body
LE: loop exit
PB: predicated region body
PF: predicated region fallthrough
CT: control target
= control target key end

     0   :  { %s8172_s11 = smov 0   ;;  %s9978_s0 = inlined_call_operand.vmem [shape: f32[1,4096], index: 0, kind: input, shape index: {}]   ;;  %s9979_s1 = inlined_call_operand.vmem [shape: f32[1,4096], index: 1, kind: input, shape index: {}]   ;;  %s9980_s2 = inlined_call_operand.vmem [shape: f32[1,4096], index: 2, kind: input, shape index: {}]   ;;  %s9981_s3 = inlined_call_operand.vmem [shape: f32[32,3], index: 3, kind: input, shape index: {}]   ;;  %s9982_s4 = inlined_call_operand.vmem [shape: f32[32,1], index: 4, kind: input, shape index: {}]   ;;  %s9983_s5 = inlined_call_operand.vmem [shape: f32[5,32,32], index: 5, kind: input, shape index: {}]   ;;  %s9984_s6 = inlined_call_operand.vmem [shape: f32[5,32,1], index: 6, kind: input, shape index: {}]   ;;  %s9985_s7 = inlined_call_operand.vmem [shape: f32[1,32], index: 7, kind: input, shape index: {}]   ;;  %s9986_s8 = inlined_call_operand.<no memory space> [shape: f32[1,1], index: 8, kind: input, shape index: {}]   ;;  %s9987_s9 = inlined_call_operand.vmem [shape: f32[1,4096], index: 9, kind: output, shape index: {}]  }
   0x1   :  { %v14_v0 = vstv %s9986_s8 }
   0x2   :  { %15 = vst [vmem:[#allocation2] sm:$0x1] %v14_v0 }
   0x3 LB: > { %s6623_s12 = sadd.s32 4294967295, %s8112_s11   ;;  %p6627_p0 = scmp.ge.s32.totalorder %s8112_s11, 1  ;;  %s8112_s11 = sphi %s8172_s11, %s21_s11  }
   0x4   : > { %p309_p1 = scmp.lt.s32.totalorder %s8112_s11, 3 }
   0x6   : > { %p310_p2 = pnand %p6627_p0, %p309_p1 }
   0x8   : > { %313 = sbr.rel (%p310_p2) target bundleno = 5355 (0x14eb), region = 56 }
   0xf   : > { %v371_v1 = vld [vmem:[%s9981_s3] sm:$0xff]  ;;  %v8114_v2 = vmov 2   ;;  %v8115_v3 = vmov 1   ;;  %v373_v4 = vld [vmem:[%s9981_s3 + $0x10] sm:$0xff]  ;;  %v372_v5 = vld [vmem:[%s9981_s3 + $0x8] sm:$0xff]  ;;  %v8116_v6 = vmov 0   ;;  %v9988_v33 = vlaneseq }
  0x10   : > { %7328 = vset.pattern.permute.xlu0 %v8114_v2  ;;  %7327 = vset.pattern.permute.xlu1 %v8115_v3  ;;  %v374_v7 = vld [vmem:[%s9981_s3 + $0x18] sm:$0xff]  ;;  %v376_v8 = vld [vmem:[%s9982_s4 + $0x8] sm:$0xff]  ;;  %v8198_v9 = vld [vmem:[%s9984_s6] sm:$0xff]  ;;  %v9989_v27 = vmov 0.0   ;;  %s6628_s28 = sshll.u32 %s6623_s12, 4  ;;  %vm659_vm0 = vcmask 261120  }
  0x11   : > { %511 = vperm.xlu0 %7328, %v371_v1   ;;  %442 = vperm.xlu1 %7327, %v371_v1   ;;  %v8204_v10 = vld [vmem:[%s9984_s6 + $0x10] sm:$0xff]  ;;  %v8210_v11 = vld [vmem:[%s9984_s6 + $0x20] sm:$0xff]  ;;  %v378_v16 = vld [vmem:[%s9982_s4 + $0x18] sm:$0xff]  ;;  %p352_p3 = scmp.lt.s32.totalorder %s6628_s28, 31  ;;  %v8364_v36 = vshrl.u32 %v9988_v33, 7 }
  0x12   : > { %v375_v12 = vld [vmem:[%s9982_s4] sm:$0xff]  ;;  %v8219_v13 = vld [vmem:[%s9984_s6 + $0x30] sm:$0xff]  ;;  %v8242_v18 = vld [vmem:[%s9984_s6 + $0x8] sm:$0xff]  ;;  %736 = vmatprep.mubr.f32.mxu0 %v9989_v27  ;;  %825 = vmatprep.mubr.f32.mxu1 %v9989_v27 }
  0x13   : > { %v377_v14 = vld [vmem:[%s9982_s4 + $0x10] sm:$0xff]  ;;  %v8228_v15 = vld [vmem:[%s9984_s6 + $0x40] sm:$0xff]  ;;  %v8254_v20 = vld [vmem:[%s9984_s6 + $0x18] sm:$0xff]  ;;  %s10133_s28 = smov (!%p352_p3, %s6628_s28), 31  ;;  %10056 = vst [vmem:[#allocation7_spill] sm:$0xff] %v8364_v36  ;;  %v8385_v39 = vsub.s32 1, %v8364_v36 }
  0x14   : > { %v8237_v17 = vld [vmem:[%s9984_s6 + $0x50] sm:$0xff]  ;;  %v8249_v19 = vld [vmem:[%s9984_s6 + $0x60] sm:$0xff]  ;;  %v8266_v22 = vld [vmem:[%s9984_s6 + $0x28] sm:$0xff]  ;;  %s8374_s30 = scalar_lea.vmem %s9979_s1, %s10133_s28  ;;  %s8380_s14 = scalar_lea.vmem %s9978_s0, %s10133_s28  ;;  %v8395_v41 = vsub.s32 3, %v8364_v36  ;;  %v8399_v43 = vsub.s32 0, %v8364_v36  ;;  %v8402_v44 = vsub.s32 2, %v8364_v36 }
  0x15   : > { %519 = vperm.xlu0 %7328, %v373_v4   ;;  %446 = vperm.xlu1 %7327, %v372_v5   ;;  %v8261_v21 = vld [vmem:[%s9984_s6 + $0x70] sm:$0xff]  ;;  %v8273_v23 = vld [vmem:[%s9984_s6 + $0x80] sm:$0xff]  ;;  %v8278_v24 = vld [vmem:[%s9984_s6 + $0x38] sm:$0xff]  ;;  %10059 = vst [vmem:[#allocation10_spill] sm:$0xff] %v8385_v39  ;;  %s8391_s16 = scalar_lea.vmem %s9980_s2, %s10133_s28  ;;  %s9045_s18 = scalar_lea.vmem %s9987_s9, %s10133_s28 }
  0x16   : > { %v8285_v25 = vld [vmem:[%s9984_s6 + $0x90] sm:$0xff]  ;;  %v8290_v26 = vld [vmem:[%s9984_s6 + $0x48] sm:$0xff]  ;;  %v8299_v28 = vld [vmem:[%s9984_s6 + $0x58] sm:$0xff]  ;;  %10060 = vst [vmem:[#allocation11_spill] sm:$0xff] %v8395_v41 }
  0x17   : > { %10052 = vst [vmem:[#allocation3_spill] sm:$0xff] %v8299_v28  ;;  %v8306_v29 = vld [vmem:[%s9984_s6 + $0x68] sm:$0xff]  ;;  %v8313_v30 = vld [vmem:[%s9984_s6 + $0x78] sm:$0xff]  ;;  %v382_v40 = vld [vmem:[%s8374_s30] sm:$0xf] }
  0x18   : > { %10053 = vst [vmem:[#allocation4_spill] sm:$0xff] %v8306_v29  ;;  %v8320_v31 = vld [vmem:[%s9984_s6 + $0x88] sm:$0xff]  ;;  %v8327_v32 = vld [vmem:[%s9984_s6 + $0x98] sm:$0xff]  ;;  %v381_v42 = vld [vmem:[%s8380_s14] sm:$0xf]  ;;  %v8412_v48 = vrot.slane %v382_v40, %v8385_v39  ;;  %v8418_v50 = vrot.slane %v382_v40, %v8395_v41  ;;  %v8424_v52 = vrot.slane %v382_v40, %v8399_v43  ;;  %v8427_v53 = vrot.slane %v382_v40, %v8402_v44 }
  0x19   : > { %7332 = vset.pattern.permute.xlu0 %v8116_v6  ;;  %7329 = vset.pattern.permute.xlu1 %v8114_v2  ;;  %10061 = vst [vmem:[#allocation12_spill] sm:$0xff] %v8399_v43  ;;  %10062 = vst [vmem:[#allocation13_spill] sm:$0xff] %v8402_v44  ;;  %v383_v47 = vld [vmem:[%s8391_s16] sm:$0xf]  ;;  %v8415_v49 = vrot.slane %v381_v42, %v8385_v39  ;;  %v8421_v51 = vrot.slane %v381_v42, %v8395_v41 }
  0x1a   : > { %386 = vperm.xlu0 %7332, %v371_v1   ;;  %515 = vperm.xlu1 %7329, %v372_v5   ;;  %v8432_v55 = vrot.slane %v383_v47, %v8385_v39  ;;  %v8435_v56 = vrot.slane %v383_v47, %v8395_v41  ;;  %v8438_v57 = vrot.slane %v381_v42, %v8399_v43 }
  0x1b   : > { %v8441_v58 = vrot.slane %v383_v47, %v8399_v43  ;;  %v8450_v61 = vrot.slane %v381_v42, %v8402_v44  ;;  %v8453_v62 = vrot.slane %v383_v47, %v8402_v44 }
  0x1e   : > { %391 = vperm.xlu0 %7332, %v372_v5   ;;  %7330 = vset.pattern.permute.xlu1 %v8116_v6 }
  0x1f   : > { %396 = vperm.xlu1 %7330, %v373_v4  }
  0x22   : > { %401 = vperm.xlu0 %7332, %v374_v7  }
  0x23   : > { %7331 = vset.pattern.permute.xlu1 %v8115_v3 }
  0x24   : > { %450 = vperm.xlu1 %7331, %v373_v4  }
  0x26   : > { %586 = vperm.xlu0 %7332, %v376_v8  }
  0x28   : > { %454 = vperm.xlu1 %7331, %v374_v7  }
  0x2a   : > { %641 = vperm.xlu0 %7332, %v8198_v9  }
  0x2c   : > { %7333 = vset.pattern.permute.xlu1 %v8114_v2 }
  0x2d   : > { %523 = vperm.xlu1 %7333, %v374_v7  }
  0x2e   : > { %651 = vperm.xlu0 %7332, %v8204_v10  }
  0x31   : > { %7334 = vset.pattern.permute.xlu1 %v8116_v6 }
  0x32   : > { %878 = vperm.xlu0 %7332, %v8210_v11   ;;  %581 = vperm.xlu1 %7334, %v375_v12  }
  0x36   : > { %888 = vperm.xlu0 %7332, %v8219_v13   ;;  %591 = vperm.xlu1 %7334, %v377_v14  }
  0x3a   : > { %1114 = vperm.xlu0 %7332, %v8228_v15   ;;  %596 = vperm.xlu1 %7334, %v378_v16  }
  0x3e   : > { %1124 = vperm.xlu0 %7332, %v8237_v17   ;;  %646 = vperm.xlu1 %7334, %v8242_v18  }
  0x42   : > { %1350 = vperm.xlu0 %7332, %v8249_v19   ;;  %656 = vperm.xlu1 %7334, %v8254_v20  }
  0x46   : > { %1360 = vperm.xlu0 %7332, %v8261_v21   ;;  %883 = vperm.xlu1 %7334, %v8266_v22  }
  0x4a   : > { %1586 = vperm.xlu0 %7332, %v8273_v23   ;;  %893 = vperm.xlu1 %7334, %v8278_v24  }
  0x4e   : > { %1596 = vperm.xlu0 %7332, %v8285_v25   ;;  %1119 = vperm.xlu1 %7334, %v8290_v26  }
  0x52   : > { %2186 = vperm.xlu0 %7332, %v8198_v9   ;;  %1129 = vperm.xlu1 %7334, %v8299_v28  }
  0x56   : > { %2196 = vperm.xlu0 %7332, %v8204_v10   ;;  %1355 = vperm.xlu1 %7334, %v8306_v29  }
  0x5a   : > { %2420 = vperm.xlu0 %7332, %v8210_v11   ;;  %1365 = vperm.xlu1 %7334, %v8313_v30  }
  0x5e   : > { %2430 = vperm.xlu0 %7332, %v8219_v13   ;;  %1591 = vperm.xlu1 %7334, %v8320_v31  }
  0x62   : > { %2654 = vperm.xlu0 %7332, %v8228_v15   ;;  %1601 = vperm.xlu1 %7334, %v8327_v32  }
  0x66   : > { %2664 = vperm.xlu0 %7332, %v8237_v17   ;;  %2191 = vperm.xlu1 %7334, %v8242_v18  }
  0x6a   : > { %2888 = vperm.xlu0 %7332, %v8249_v19   ;;  %2201 = vperm.xlu1 %7334, %v8254_v20  }
  0x6e   : > { %2898 = vperm.xlu0 %7332, %v8261_v21   ;;  %2425 = vperm.xlu1 %7334, %v8266_v22  }
  0x72   : > { %3122 = vperm.xlu0 %7332, %v8273_v23   ;;  %2435 = vperm.xlu1 %7334, %v8278_v24  }
  0x76   : > { %3132 = vperm.xlu0 %7332, %v8285_v25   ;;  %2659 = vperm.xlu1 %7334, %v8290_v26  }
  0x7a   : > { %3706 = vperm.xlu0 %7332, %v8198_v9   ;;  %2669 = vperm.xlu1 %7334, %v8299_v28  }
  0x7e   : > { %3716 = vperm.xlu0 %7332, %v8204_v10   ;;  %2893 = vperm.xlu1 %7334, %v8306_v29  }
  0x82   : > { %3940 = vperm.xlu0 %7332, %v8210_v11   ;;  %2903 = vperm.xlu1 %7334, %v8313_v30  }
  0x86   : > { %3950 = vperm.xlu0 %7332, %v8219_v13   ;;  %3127 = vperm.xlu1 %7334, %v8320_v31  }
  0x8a   : > { %4174 = vperm.xlu0 %7332, %v8228_v15   ;;  %3137 = vperm.xlu1 %7334, %v8327_v32  }
  0x8e   : > { %4184 = vperm.xlu0 %7332, %v8237_v17   ;;  %3711 = vperm.xlu1 %7334, %v8242_v18  }
  0x90   : > { %v8355_v34 = vpop.permute.xlu1 %442  ;;  %v8357_v35 = vpop.permute.xlu0 %511 }
  0x91   : > { %10054 = vst [vmem:[#allocation5_spill] sm:$0xff] %v8355_v34  ;;  %10055 = vst [vmem:[#allocation6_spill] sm:$0xff] %v8357_v35  ;;  %v479_v60 = vmul.f32 %v8412_v48, %v8355_v34  ;;  %v548_v0 = vmul.f32 %v8432_v55, %v8357_v35  ;;  %v481_v1 = vmul.f32 %v8418_v50, %v8355_v34 }
  0x92   : > { %4408 = vperm.xlu0 %7332, %v8249_v19   ;;  %3721 = vperm.xlu1 %7334, %v8254_v20   ;;  %v550_v2 = vmul.f32 %v8435_v56, %v8357_v35  ;;  %v478_v4 = vmul.f32 %v8424_v52, %v8355_v34  ;;  %v547_v5 = vmul.f32 %v8441_v58, %v8357_v35 }
  0x93   : > { %v480_v6 = vmul.f32 %v8427_v53, %v8355_v34  ;;  %v549_v14 = vmul.f32 %v8453_v62, %v8357_v35 }
  0x94   : > { %v8366_v37 = vpop.permute.xlu1 %446  ;;  %v8368_v38 = vpop.permute.xlu0 %519 }
  0x95   : > { %10057 = vst [vmem:[#allocation8_spill] sm:$0xff] %v8366_v37  ;;  %10058 = vst [vmem:[#allocation9_spill] sm:$0xff] %v8368_v38  ;;  %v483_v8 = vmul.f32 %v8412_v48, %v8366_v37  ;;  %v485_v42 = vmul.f32 %v8418_v50, %v8366_v37  ;;  %v482_v36 = vmul.f32 %v8424_v52, %v8366_v37 }
  0x96   : > { %4418 = vperm.xlu0 %7332, %v8261_v21   ;;  %3945 = vperm.xlu1 %7334, %v8266_v22   ;;  %v556_v35 = vmul.f32 %v8432_v55, %v8368_v38  ;;  %v555_v41 = vmul.f32 %v8441_v58, %v8368_v38 }
  0x99   : > { %v8404_v45 = vpop.permute.xlu0 %386  ;;  %v8406_v46 = vpop.permute.xlu1 %515 }
  0x9a   : > { %10063 = vst [vmem:[#allocation14_spill] sm:$0xff] %v8404_v45  ;;  %10064 = vst [vmem:[#allocation15_spill] sm:$0xff] %v8406_v46  ;;  %4642 = vperm.xlu0 %7332, %v8273_v23   ;;  %3955 = vperm.xlu1 %7334, %v8278_v24   ;;  %v426_v63 = vmul.f32 %v8415_v49, %v8404_v45  ;;  %v428_v3 = vmul.f32 %v8421_v51, %v8404_v45 }
  0x9b   : > { %v425_v12 = vmul.f32 %v8438_v57, %v8404_v45  ;;  %v427_v47 = vmul.f32 %v8450_v61, %v8404_v45  ;;  %v558_v45 = vmul.f32 %v8435_v56, %v8368_v38 }
  0x9c   : > { %v495_v27 = vadd.f32 %v479_v60, %v426_v63  ;;  %v497_v34 = vadd.f32 %v481_v1, %v428_v3  ;;  %v552_v1 = vmul.f32 %v8432_v55, %v8406_v46 }
  0x9d   : > { %v8429_v54 = vpop.permute.xlu0 %391  ;;  %v494_v63 = vadd.f32 %v478_v4, %v425_v12  ;;  %v554_v4 = vmul.f32 %v8435_v56, %v8406_v46  ;;  %v553_v12 = vmul.f32 %v8453_v62, %v8406_v46 }
  0x9e   : > { %10065 = vst [vmem:[#allocation16_spill] sm:$0xff] %v8429_v54  ;;  %4652 = vperm.xlu0 %7332, %v8285_v25   ;;  %4179 = vperm.xlu1 %7334, %v8290_v26   ;;  %v8445_v59 = vpop.permute.xlu1 %396  ;;  %v430_v7 = vmul.f32 %v8415_v49, %v8429_v54  ;;  %v432_v40 = vmul.f32 %v8421_v51, %v8429_v54 }
  0x9f   : > { %10066 = vst [vmem:[#allocation17_spill] sm:$0xff] %v8445_v59  ;;  %v429_v44 = vmul.f32 %v8438_v57, %v8429_v54  ;;  %v431_v43 = vmul.f32 %v8450_v61, %v8429_v54  ;;  %v496_v54 = vadd.f32 %v480_v6, %v427_v47 }
  0xa0   : > { %v499_v60 = vadd.f32 %v483_v8, %v430_v7  ;;  %v501_v3 = vadd.f32 %v485_v42, %v432_v40  ;;  %v564_v7 = vadd.f32 %v548_v0, %v495_v27  ;;  %v551_v8 = vmul.f32 %v8441_v58, %v8406_v46 }
  0xa1   : > { %v8479_v16 = vpop.permute.xlu0 %401  ;;  %v563_v42 = vadd.f32 %v547_v5, %v494_v63  ;;  %v565_v46 = vadd.f32 %v549_v14, %v496_v54 }
  0xa2   : > { %10067 = vst [vmem:[#allocation18_spill] sm:$0xff] %v8479_v16  ;;  %5226 = vperm.xlu0 %7332, %v8198_v9   ;;  %4189 = vperm.xlu1 %7334, %v8299_v28   ;;  %v484_v9 = vmul.f32 %v8427_v53, %v8366_v37  ;;  %v8507_v37 = vmul.f32 %v8453_v62, %v8368_v38 }
  0xa3   : > { %v8489_v33 = vpop.permute.xlu1 %450  ;;  %v566_v38 = vadd.f32 %v550_v2, %v497_v34  ;;  %v568_v40 = vadd.f32 %v552_v1, %v499_v60  ;;  %v570_v47 = vadd.f32 %v554_v4, %v501_v3  ;;  %v434_v34 = vmul.f32 %v8415_v49, %v8445_v59 }
  0xa4   : > { %10068 = vst [vmem:[#allocation19_spill] sm:$0xff] %v8489_v33  ;;  %v500_v28 = vadd.f32 %v484_v9, %v431_v43  ;;  %v487_v6 = vmul.f32 %v8412_v48, %v8489_v33  ;;  %v489_v27 = vmul.f32 %v8418_v50, %v8489_v33  ;;  %v486_v0 = vmul.f32 %v8424_v52, %v8489_v33 }
  0xa5   : > { %v438_v43 = vmul.f32 %v8415_v49, %v8479_v16  ;;  %v433_v2 = vmul.f32 %v8438_v57, %v8445_v59  ;;  %v488_v49 = vmul.f32 %v8427_v53, %v8489_v33  ;;  %v440_v4 = vmul.f32 %v8421_v51, %v8479_v16 }
  0xa6   : > { %5236 = vperm.xlu0 %7332, %v8204_v10   ;;  %4413 = vperm.xlu1 %7334, %v8306_v29   ;;  %v8521_v10 = vpop.permute.xlu0 %586  ;;  %v498_v29 = vadd.f32 %v482_v36, %v429_v44  ;;  %v436_v44 = vmul.f32 %v8421_v51, %v8445_v59  ;;  %v569_v54 = vadd.f32 %v553_v12, %v500_v28 }
  0xa7   : > { %v8513_v39 = vpop.permute.xlu1 %454  ;;  %10070 = vst [vmem:[#allocation21_spill] sm:$0xff] %v8521_v10  ;;  %v604_v36 = vadd.f32 %v8521_v10, %v568_v40  ;;  %v503_v14 = vadd.f32 %v487_v6, %v434_v34  ;;  %v502_v1 = vadd.f32 %v486_v0, %v433_v2  ;;  %v437_v28 = vmul.f32 %v8438_v57, %v8479_v16 }
  0xa8   : > { %10069 = vst [vmem:[#allocation20_spill] sm:$0xff] %v8513_v39  ;;  %v567_v9 = vadd.f32 %v551_v8, %v498_v29  ;;  %v491_v60 = vmul.f32 %v8412_v48, %v8513_v39  ;;  %v505_v63 = vadd.f32 %v489_v27, %v436_v44  ;;  %v605_v29 = vadd.f32 %v8521_v10, %v569_v54 }
  0xa9   : > { %7335 = vtanh.f32 %v604_v36  ;;  %v493_v48 = vmul.f32 %v8418_v50, %v8513_v39  ;;  %v435_v8 = vmul.f32 %v8450_v61, %v8445_v59  ;;  %v490_v12 = vmul.f32 %v8424_v52, %v8513_v39 }
  0xaa   : > { %5460 = vperm.xlu0 %7332, %v8210_v11   ;;  %4423 = vperm.xlu1 %7334, %v8313_v30   ;;  %v606_v11 = vadd.f32 %v8521_v10, %v570_v47  ;;  %v603_v3 = vadd.f32 %v8521_v10, %v567_v9  ;;  %v439_v51 = vmul.f32 %v8450_v61, %v8479_v16 }
  0xab   : > { %v507_v57 = vadd.f32 %v491_v60, %v438_v43  ;;  %v574_v40 = vadd.f32 %v558_v45, %v505_v63  ;;  %v571_v27 = vadd.f32 %v555_v41, %v502_v1  ;;  %v504_v0 = vadd.f32 %v488_v49, %v435_v8 }
  0xac   : > { %v8540_v5 = vpop.permute.xlu1 %523  ;;  %7337 = vtanh.f32 %v606_v11  ;;  %v509_v61 = vadd.f32 %v493_v48, %v440_v4  ;;  %v492_v45 = vmul.f32 %v8427_v53, %v8513_v39 }
  0xad   : > { %10071 = vst [vmem:[#allocation22_spill] sm:$0xff] %v8540_v5  ;;  %7339 = vtanh.f32 %v603_v3  ;;  %v562_v41 = vmul.f32 %v8435_v56, %v8540_v5  ;;  %v573_v34 = vadd.f32 %v8507_v37, %v504_v0 }
  0xae   : > { %5470 = vperm.xlu0 %7332, %v8219_v13   ;;  %4647 = vperm.xlu1 %7334, %v8320_v31   ;;  %v572_v13 = vadd.f32 %v556_v35, %v503_v14  ;;  %7341 = vtanh.f32 %v605_v29 }
  0xb1   : > { %v8563_v6 = vpop.permute.xlu1 %581 }
  0xb2   : > { %10072 = vst [vmem:[#allocation23_spill] sm:$0xff] %v8563_v6  ;;  %5694 = vperm.xlu0 %7332, %v8228_v15   ;;  %4657 = vperm.xlu1 %7334, %v8327_v32   ;;  %v600_v50 = vadd.f32 %v8563_v6, %v564_v7  ;;  %v602_v35 = vadd.f32 %v8563_v6, %v566_v38 }
  0xb3   : > { %v599_v47 = vadd.f32 %v8563_v6, %v563_v42  ;;  %v601_v52 = vadd.f32 %v8563_v6, %v565_v46  ;;  %v560_v15 = vmul.f32 %v8432_v55, %v8540_v5  ;;  %v559_v38 = vmul.f32 %v8441_v58, %v8540_v5  ;;  %v7336_v37 = vpop.eup %7335 }
  0xb4   : > { %7343 = vtanh.f32 %v600_v50  ;;  %v506_v42 = vadd.f32 %v490_v12, %v437_v28  ;;  %v561_v46 = vmul.f32 %v8453_v62, %v8540_v5  ;;  %v508_v58 = vadd.f32 %v492_v45, %v439_v51  ;;  %v10073_v50 = vld [vmem:[#allocation3_spill] sm:$0xff] }
  0xb5   : > { %v8579_v7 = vpop.permute.xlu1 %591  ;;  %7345 = vtanh.f32 %v602_v35  ;;  %v576_v43 = vadd.f32 %v560_v15, %v507_v57  ;;  %v578_v62 = vadd.f32 %v562_v41, %v509_v61  ;;  %v380_v57 = vld [vmem:[#allocation2] sm:$0x1]  ;;  %v632_v35 = vld [vmem:[%s9983_s5 + $0x8] sm:$0xff]  ;;  %v634_v61 = vld [vmem:[%s9983_s5 + $0x18] sm:$0xff] }
  0xb6   : > { %5704 = vperm.xlu0 %7332, %v8237_v17   ;;  %5231 = vperm.xlu1 %7334, %v8242_v18   ;;  %7347 = vtanh.f32 %v599_v47  ;;  %v608_v53 = vadd.f32 %v8579_v7, %v572_v13  ;;  %v610_v55 = vadd.f32 %v8579_v7, %v574_v40  ;;  %v607_v56 = vadd.f32 %v8579_v7, %v571_v27  ;;  %v7338_v18 = vpop.eup %7337 }
  0xb7   : > { %7349 = vtanh.f32 %v601_v52  ;;  %v609_v36 = vadd.f32 %v8579_v7, %v573_v34  ;;  %v575_v44 = vadd.f32 %v559_v38, %v506_v42  ;;  %v577_v17 = vadd.f32 %v561_v46, %v508_v58  ;;  %v7340_v60 = vpop.eup %7339  ;;  %v633_v52 = vld [vmem:[%s9983_s5 + $0x10] sm:$0xff] }
  0xb8   : > { %7351 = vtanh.f32 %v608_v53  ;;  %v7342_v63 = vpop.eup %7341  ;;  %v10075_v47 = vmov 0.0  }
  0xb9   : > { %v8590_v2 = vpop.permute.xlu1 %596  ;;  %7353 = vtanh.f32 %v610_v55 }
  0xba   : > { %5928 = vperm.xlu0 %7332, %v8249_v19   ;;  %5241 = vperm.xlu1 %7334, %v8254_v20   ;;  %v612_v11 = vadd.f32 %v8590_v2, %v576_v43  ;;  %v614_v9 = vadd.f32 %v8590_v2, %v578_v62  ;;  %v611_v54 = vadd.f32 %v8590_v2, %v575_v44  ;;  %7355 = vtanh.f32 %v607_v56 }
  0xbb   : > { %v613_v14 = vadd.f32 %v8590_v2, %v577_v17  ;;  %7357 = vtanh.f32 %v609_v36 }
  0xbc   : > { %7359 = vtanh.f32 %v612_v11 }
  0xbd   : > { %7361 = vtanh.f32 %v614_v9  ;;  %v647_v53 = vpop.permute.xlu1 %646 }
  0xbe   : > { %v7344_v1 = vpop.eup %7343  ;;  %5938 = vperm.xlu0 %7332, %v8261_v21   ;;  %5465 = vperm.xlu1 %7334, %v8266_v22   ;;  %7363 = vtanh.f32 %v611_v54 }
  0xbf   : > { %v7346_v19 = vpop.eup %7345  ;;  %v6930_v20 = vpack.c.bf16 %v7336_v37, %v7344_v1  ;;  %7365 = vtanh.f32 %v613_v14 }
  0xc0   : > { %v7348_v49 = vpop.eup %7347  ;;  %v6938_v3 = vpack.c.bf16 %v7338_v18, %v7346_v19 }
  0xc1   : > { %v7350_v4 = vpop.eup %7349  ;;  %6931 = vmatprep.subr.bf16.mxu0 %v6930_v20  ;;  %v6932_v28 = vpack.c.bf16 %v7340_v60, %v7348_v49  ;;  %v657_v1 = vpop.permute.xlu1 %656 }
  0xc2   : > { %v7352_v29 = vpop.eup %7351  ;;  %6939 = vmatprep.subr.bf16.mxu1 %v6938_v3  ;;  %6162 = vperm.xlu0 %7332, %v8273_v23   ;;  %v6940_v48 = vpack.c.bf16 %v7342_v63, %v7350_v4 }
  0xc3   : > { %v7354_v8 = vpop.eup %7353  ;;  %5475 = vperm.xlu1 %7334, %v8278_v24   ;;  %6933 = vmatpush1.bf16.msra.mxu0 %v6932_v28 }
  0xc4   : > { %v7356_v21 = vpop.eup %7355  ;;  %6941 = vmatpush1.bf16.msra.mxu1 %v6940_v48 }
  0xc5   : > { %v7358_v22 = vpop.eup %7357 }
  0xc6   : > { %v7360_v13 = vpop.eup %7359  ;;  %6172 = vperm.xlu0 %7332, %v8285_v25   ;;  %v631_v25 = vld [vmem:[%s9983_s5] sm:$0xff] }
  0xc7   : > { %v7362_v12 = vpop.eup %7361  ;;  %5699 = vperm.xlu1 %7334, %v8290_v26   ;;  %v6934_v51 = vpack.c.bf16 %v7360_v13, %v7352_v29  ;;  %v10074_v26 = vld [vmem:[#allocation4_spill] sm:$0xff] }
  0xc8   : > { %v7364_v40 = vpop.eup %7363  ;;  %v6942_v27 = vpack.c.bf16 %v7362_v12, %v7354_v8 }
  0xc9   : > { %v7366_v0 = vpop.eup %7365  ;;  %6935 = vmatprep.subr.bf16.mxu0 %v6934_v51  ;;  %v6936_v23 = vpack.c.bf16 %v7364_v40, %v7356_v21 }
  0xca   : > { %6943 = vmatprep.subr.bf16.mxu1 %v6942_v27  ;;  %1812 = vperm.xlu0 %7332, %v380_v57   ;;  %v6944_v24 = vpack.c.bf16 %v7366_v0, %v7358_v22 }
  0xcb   : > { %5709 = vperm.xlu1 %7334, %v10073_v50   ;;  %6937 = vmatpush1.bf16.msra.mxu0 %v6936_v23 }
  0xcc   : > { %6945 = vmatpush1.bf16.msra.mxu1 %v6944_v24 }
  0xce   : > { %6632 = vmatmul.mubr.msk.f32.vlgmr.msra.gmra.mrb[0].mxu0 %vm659_vm0, %v631_v25 }
  0xcf   : > { %6636 = vmatmul.mubr.msk.f32.vlgmr.msra.gmra.mrb[0].mxu1 %vm659_vm0, %v631_v25  ;;  %5933 = vperm.xlu1 %7334, %v10074_v26  }
  0xd0   : > { %742 = vmatprep.mubr.f32.mxu0 %v10075_v47  ;;  %831 = vmatprep.mubr.f32.mxu1 %v10075_v47 }
  0xd2   : > { %6633 = vmatmul.mubr.msk.f32.gmra.mrb[2].mxu0 %vm659_vm0, %v632_v35 }
  0xd3   : > { %6637 = vmatmul.mubr.msk.f32.gmra.mrb[2].mxu1 %vm659_vm0, %v632_v35  ;;  %5943 = vperm.xlu1 %7334, %v8313_v30   ;;  %v642_v30 = vpop.permute.xlu0 %641 }
  0xd4   : > { %748 = vmatprep.mubr.f32.mxu0 %v10075_v47  ;;  %837 = vmatprep.mubr.f32.mxu1 %v10075_v47 }
  0xd6   : > { %6634 = vmatmul.mubr.msk.f32.gmra.mrb[4].mxu0 %vm659_vm0, %v633_v52 }
  0xd7   : > { %6638 = vmatmul.mubr.msk.f32.gmra.mrb[4].mxu1 %vm659_vm0, %v633_v52  ;;  %6167 = vperm.xlu1 %7334, %v8320_v31   ;;  %v652_v37 = vpop.permute.xlu0 %651 }
  0xd8   : > { %754 = vmatprep.mubr.f32.mxu0 %v10075_v47  ;;  %843 = vmatprep.mubr.f32.mxu1 %v10075_v47 }
  0xda   : > { %6635 = vmatmul.mubr.msk.f32.gmra.mrb[6].mxu0 %vm659_vm0, %v634_v61 }
  0xdb   : > { %6639 = vmatmul.mubr.msk.f32.gmra.mrb[6].mxu1 %vm659_vm0, %v634_v61  ;;  %6177 = vperm.xlu1 %7334, %v8327_v32  }
  0xdc   : > { %972 = vmatprep.mubr.f32.mxu0 %v10075_v47  ;;  %1061 = vmatprep.mubr.f32.mxu1 %v10075_v47 }
 0x1a1   : > { %v738_v31 = vpop.f32.mrb[0].mxu0 }
 0x1a2   : > { %v739_v45 = vadd.f32 %v738_v31, %v642_v30  ;;  %v827_v15 = vpop.f32.mrb[0].mxu1  ;;  %v740_v41 = vpop.f32.mrb[1].mxu0 }
 0x1a3   : > { %v828_v38 = vadd.f32 %v827_v15, %v642_v30  ;;  %v741_v42 = vadd.f32 %v740_v41, %v642_v30  ;;  %v829_v46 = vpop.f32.mrb[1].mxu1 }
 0x1a4   : > { %7367 = vtanh.f32 %v739_v45  ;;  %v830_v34 = vadd.f32 %v829_v46, %v642_v30  ;;  %v6641_v46 = vld [vmem:[%s9983_s5 + $0x28] sm:$0xff] }
 0x1a5   : > { %7369 = vtanh.f32 %v828_v38  ;;  %v744_v55 = vpop.f32.mrb[2].mxu0 }
 0x1a6   : > { %7371 = vtanh.f32 %v741_v42  ;;  %v745_v56 = vadd.f32 %v744_v55, %v647_v53  ;;  %v833_v32 = vpop.f32.mrb[2].mxu1  ;;  %v746_v58 = vpop.f32.mrb[3].mxu0  ;;  %v6640_v42 = vld [vmem:[%s9983_s5 + $0x20] sm:$0xff] }
 0x1a7   : > { %7373 = vtanh.f32 %v830_v34  ;;  %v834_v36 = vadd.f32 %v833_v32, %v647_v53  ;;  %v747_v43 = vadd.f32 %v746_v58, %v647_v53  ;;  %v835_v62 = vpop.f32.mrb[3].mxu1  ;;  %v6642_v34 = vld [vmem:[%s9983_s5 + $0x30] sm:$0xff]  ;;  %v879_v55 = vpop.permute.xlu0 %878 }
 0x1a8   : > { %7375 = vtanh.f32 %v745_v56  ;;  %v836_v44 = vadd.f32 %v835_v62, %v647_v53  ;;  %v6643_v53 = vld [vmem:[%s9983_s5 + $0x38] sm:$0xff] }
 0x1a9   : > { %7377 = vtanh.f32 %v834_v36  ;;  %v750_v17 = vpop.f32.mrb[4].mxu0 }
 0x1aa   : > { %7379 = vtanh.f32 %v747_v43  ;;  %v751_v18 = vadd.f32 %v750_v17, %v652_v37  ;;  %v839_v11 = vpop.f32.mrb[4].mxu1  ;;  %v752_v9 = vpop.f32.mrb[5].mxu0 }
 0x1ab   : > { %7381 = vtanh.f32 %v836_v44  ;;  %v840_v54 = vadd.f32 %v839_v11, %v652_v37  ;;  %v753_v14 = vadd.f32 %v752_v9, %v652_v37  ;;  %v841_v60 = vpop.f32.mrb[5].mxu1  ;;  %v884_v17 = vpop.permute.xlu1 %883 }
 0x1ac   : > { %7383 = vtanh.f32 %v751_v18  ;;  %v842_v63 = vadd.f32 %v841_v60, %v652_v37 }
 0x1ad   : > { %7385 = vtanh.f32 %v840_v54  ;;  %v756_v19 = vpop.f32.mrb[6].mxu0 }
 0x1ae   : > { %v7368_v20 = vpop.eup %7367  ;;  %7387 = vtanh.f32 %v753_v14  ;;  %v757_v49 = vadd.f32 %v756_v19, %v657_v1  ;;  %v845_v3 = vpop.f32.mrb[6].mxu1 }
 0x1af   : > { %v758_v4 = vpop.f32.mrb[7].mxu0  ;;  %v7370_v28 = vpop.eup %7369  ;;  %7389 = vtanh.f32 %v842_v63  ;;  %v846_v29 = vadd.f32 %v845_v3, %v657_v1 }
 0x1b0   : > { %v759_v48 = vadd.f32 %v758_v4, %v657_v1  ;;  %v847_v8 = vpop.f32.mrb[7].mxu1  ;;  %v7372_v21 = vpop.eup %7371  ;;  %7391 = vtanh.f32 %v757_v49 }
 0x1b1   : > { %v848_v22 = vadd.f32 %v847_v8, %v657_v1  ;;  %v7374_v13 = vpop.eup %7373  ;;  %7393 = vtanh.f32 %v846_v29  ;;  %v889_v19 = vpop.permute.xlu0 %888 }
 0x1b2   : > { %v7376_v12 = vpop.eup %7375  ;;  %7395 = vtanh.f32 %v759_v48 }
 0x1b3   : > { %v7378_v51 = vpop.eup %7377  ;;  %7397 = vtanh.f32 %v848_v22  ;;  %v6948_v57 = vpack.c.bf16 %v7376_v12, %v7368_v20 }
 0x1b4   : > { %v7380_v40 = vpop.eup %7379  ;;  %v6956_v27 = vpack.c.bf16 %v7378_v51, %v7370_v28 }
 0x1b5   : > { %v7382_v0 = vpop.eup %7381  ;;  %v6946_v23 = vpack.c.bf16 %v7380_v40, %v7372_v21  ;;  %v894_v21 = vpop.permute.xlu1 %893 }
 0x1b6   : > { %v7384_v24 = vpop.eup %7383  ;;  %v6954_v50 = vpack.c.bf16 %v7382_v0, %v7374_v13 }
 0x1b7   : > { %v7386_v25 = vpop.eup %7385  ;;  %6947 = vmatprep.subr.bf16.mxu0 %v6946_v23 }
 0x1b8   : > { %v7388_v26 = vpop.eup %7387  ;;  %6955 = vmatprep.subr.bf16.mxu1 %v6954_v50  ;;  %6949 = vmatpush1.bf16.msra.mxu0 %v6948_v57 }
 0x1b9   : > { %v7390_v35 = vpop.eup %7389  ;;  %6957 = vmatpush1.bf16.msra.mxu1 %v6956_v27 }
 0x1ba   : > { %v7392_v52 = vpop.eup %7391 }
 0x1bb   : > { %v7394_v61 = vpop.eup %7393  ;;  %v6952_v30 = vpack.c.bf16 %v7392_v52, %v7384_v24 }
 0x1bc   : > { %v7396_v31 = vpop.eup %7395  ;;  %v6960_v45 = vpack.c.bf16 %v7394_v61, %v7386_v25 }
 0x1bd   : > { %v7398_v15 = vpop.eup %7397  ;;  %v6950_v41 = vpack.c.bf16 %v7396_v31, %v7388_v26 }
 0x1be   : > { %v6958_v38 = vpack.c.bf16 %v7398_v15, %v7390_v35 }
 0x1bf   : > { %6951 = vmatprep.subr.bf16.mxu0 %v6950_v41 }
 0x1c0   : > { %6959 = vmatprep.subr.bf16.mxu1 %v6958_v38  ;;  %6953 = vmatpush1.bf16.msra.mxu0 %v6952_v30 }
 0x1c1   : > { %6961 = vmatpush1.bf16.msra.mxu1 %v6960_v45 }
 0x1c3   : > { %6648 = vmatmul.mubr.msk.f32.vlgmr.msra.gmra.mrb[8].mxu0 %vm659_vm0, %v6640_v42 }
 0x1c4   : > { %6652 = vmatmul.mubr.msk.f32.vlgmr.msra.gmra.mrb[8].mxu1 %vm659_vm0, %v6640_v42  ;;  %978 = vmatprep.mubr.f32.mxu0 %v10075_v47 }
 0x1c5   : > { %1067 = vmatprep.mubr.f32.mxu1 %v10075_v47 }
 0x1c7   : > { %6649 = vmatmul.mubr.msk.f32.gmra.mrb[10].mxu0 %vm659_vm0, %v6641_v46 }
 0x1c8   : > { %6653 = vmatmul.mubr.msk.f32.gmra.mrb[10].mxu1 %vm659_vm0, %v6641_v46  ;;  %984 = vmatprep.mubr.f32.mxu0 %v10075_v47 }
 0x1c9   : > { %1073 = vmatprep.mubr.f32.mxu1 %v10075_v47 }
 0x1cb   : > { %6650 = vmatmul.mubr.msk.f32.gmra.mrb[12].mxu0 %vm659_vm0, %v6642_v34 }
 0x1cc   : > { %6654 = vmatmul.mubr.msk.f32.gmra.mrb[12].mxu1 %vm659_vm0, %v6642_v34  ;;  %990 = vmatprep.mubr.f32.mxu0 %v10075_v47 }
 0x1cd   : > { %1079 = vmatprep.mubr.f32.mxu1 %v10075_v47 }
 0x1cf   : > { %6651 = vmatmul.mubr.msk.f32.gmra.mrb[14].mxu0 %vm659_vm0, %v6643_v53 }
 0x1d0   : > { %6655 = vmatmul.mubr.msk.f32.gmra.mrb[14].mxu1 %vm659_vm0, %v6643_v53  ;;  %1208 = vmatprep.mubr.f32.mxu0 %v10075_v47 }
 0x1d1   : > { %1297 = vmatprep.mubr.f32.mxu1 %v10075_v47 }
 0x296   : > { %v974_v56 = vpop.f32.mrb[8].mxu0 }
 0x297   : > { %v975_v32 = vadd.f32 %v974_v56, %v879_v55  ;;  %v1063_v58 = vpop.f32.mrb[8].mxu1  ;;  %v976_v36 = vpop.f32.mrb[9].mxu0 }
 0x298   : > { %v1064_v43 = vadd.f32 %v1063_v58, %v879_v55  ;;  %v977_v62 = vadd.f32 %v976_v36, %v879_v55  ;;  %v1065_v44 = vpop.f32.mrb[9].mxu1 }
 0x299   : > { %7399 = vtanh.f32 %v975_v32  ;;  %v1066_v37 = vadd.f32 %v1065_v44, %v879_v55  ;;  %v6657_v44 = vld [vmem:[%s9983_s5 + $0x48] sm:$0xff] }
 0x29a   : > { %7401 = vtanh.f32 %v1064_v43  ;;  %v980_v18 = vpop.f32.mrb[10].mxu0 }
 0x29b   : > { %7403 = vtanh.f32 %v977_v62  ;;  %v981_v11 = vadd.f32 %v980_v18, %v884_v17  ;;  %v1069_v9 = vpop.f32.mrb[10].mxu1  ;;  %v982_v54 = vpop.f32.mrb[11].mxu0  ;;  %v6656_v62 = vld [vmem:[%s9983_s5 + $0x40] sm:$0xff] }
 0x29c   : > { %7405 = vtanh.f32 %v1066_v37  ;;  %v1070_v14 = vadd.f32 %v1069_v9, %v884_v17  ;;  %v983_v60 = vadd.f32 %v982_v54, %v884_v17  ;;  %v1071_v63 = vpop.f32.mrb[11].mxu1  ;;  %v6658_v37 = vld [vmem:[%s9983_s5 + $0x50] sm:$0xff]  ;;  %v1115_v18 = vpop.permute.xlu0 %1114 }
 0x29d   : > { %7407 = vtanh.f32 %v981_v11  ;;  %v1072_v1 = vadd.f32 %v1071_v63, %v884_v17  ;;  %v6659_v17 = vld [vmem:[%s9983_s5 + $0x58] sm:$0xff] }
 0x29e   : > { %7409 = vtanh.f32 %v1070_v14  ;;  %v986_v20 = vpop.f32.mrb[12].mxu0 }
 0x29f   : > { %7411 = vtanh.f32 %v983_v60  ;;  %v987_v49 = vadd.f32 %v986_v20, %v889_v19  ;;  %v1075_v3 = vpop.f32.mrb[12].mxu1  ;;  %v988_v4 = vpop.f32.mrb[13].mxu0 }
 0x2a0   : > { %7413 = vtanh.f32 %v1072_v1  ;;  %v1076_v28 = vadd.f32 %v1075_v3, %v889_v19  ;;  %v989_v29 = vadd.f32 %v988_v4, %v889_v19  ;;  %v1077_v48 = vpop.f32.mrb[13].mxu1  ;;  %v1120_v20 = vpop.permute.xlu1 %1119 }
 0x2a1   : > { %7415 = vtanh.f32 %v987_v49  ;;  %v1078_v8 = vadd.f32 %v1077_v48, %v889_v19 }
 0x2a2   : > { %7417 = vtanh.f32 %v1076_v28  ;;  %v992_v22 = vpop.f32.mrb[14].mxu0 }
 0x2a3   : > { %v7400_v13 = vpop.eup %7399  ;;  %7419 = vtanh.f32 %v989_v29  ;;  %v993_v12 = vadd.f32 %v992_v22, %v894_v21  ;;  %v1081_v51 = vpop.f32.mrb[14].mxu1 }
 0x2a4   : > { %v994_v57 = vpop.f32.mrb[15].mxu0  ;;  %v7402_v40 = vpop.eup %7401  ;;  %7421 = vtanh.f32 %v1078_v8  ;;  %v1082_v27 = vadd.f32 %v1081_v51, %v894_v21 }
 0x2a5   : > { %v995_v0 = vadd.f32 %v994_v57, %v894_v21  ;;  %v1083_v23 = vpop.f32.mrb[15].mxu1  ;;  %v7404_v24 = vpop.eup %7403  ;;  %7423 = vtanh.f32 %v993_v12 }
 0x2a6   : > { %v1084_v50 = vadd.f32 %v1083_v23, %v894_v21  ;;  %v7406_v25 = vpop.eup %7405  ;;  %7425 = vtanh.f32 %v1082_v27  ;;  %v1125_v22 = vpop.permute.xlu0 %1124 }
 0x2a7   : > { %v7408_v26 = vpop.eup %7407  ;;  %7427 = vtanh.f32 %v995_v0 }
 0x2a8   : > { %v7410_v35 = vpop.eup %7409  ;;  %7429 = vtanh.f32 %v1084_v50  ;;  %v6964_v52 = vpack.c.bf16 %v7408_v26, %v7400_v13 }
 0x2a9   : > { %v7412_v61 = vpop.eup %7411  ;;  %v6972_v30 = vpack.c.bf16 %v7410_v35, %v7402_v40 }
 0x2aa   : > { %v7414_v31 = vpop.eup %7413  ;;  %v6962_v45 = vpack.c.bf16 %v7412_v61, %v7404_v24  ;;  %v1130_v24 = vpop.permute.xlu1 %1129 }
 0x2ab   : > { %v7416_v15 = vpop.eup %7415  ;;  %v6970_v41 = vpack.c.bf16 %v7414_v31, %v7406_v25 }
 0x2ac   : > { %v7418_v38 = vpop.eup %7417  ;;  %6963 = vmatprep.subr.bf16.mxu0 %v6962_v45 }
 0x2ad   : > { %v7420_v42 = vpop.eup %7419  ;;  %6971 = vmatprep.subr.bf16.mxu1 %v6970_v41  ;;  %6965 = vmatpush1.bf16.msra.mxu0 %v6964_v52 }
 0x2ae   : > { %v7422_v46 = vpop.eup %7421  ;;  %6973 = vmatpush1.bf16.msra.mxu1 %v6972_v30 }
 0x2af   : > { %v7424_v34 = vpop.eup %7423 }
 0x2b0   : > { %v7426_v53 = vpop.eup %7425  ;;  %v6968_v55 = vpack.c.bf16 %v7424_v34, %v7416_v15 }
 0x2b1   : > { %v7428_v56 = vpop.eup %7427  ;;  %v6976_v32 = vpack.c.bf16 %v7426_v53, %v7418_v38 }
 0x2b2   : > { %v7430_v58 = vpop.eup %7429  ;;  %v6966_v36 = vpack.c.bf16 %v7428_v56, %v7420_v42 }
 0x2b3   : > { %v6974_v43 = vpack.c.bf16 %v7430_v58, %v7422_v46 }
 0x2b4   : > { %6967 = vmatprep.subr.bf16.mxu0 %v6966_v36 }
 0x2b5   : > { %6975 = vmatprep.subr.bf16.mxu1 %v6974_v43  ;;  %6969 = vmatpush1.bf16.msra.mxu0 %v6968_v55 }
 0x2b6   : > { %6977 = vmatpush1.bf16.msra.mxu1 %v6976_v32 }
 0x2b8   : > { %6664 = vmatmul.mubr.msk.f32.vlgmr.msra.gmra.mrb[16].mxu0 %vm659_vm0, %v6656_v62 }
 0x2b9   : > { %6668 = vmatmul.mubr.msk.f32.vlgmr.msra.gmra.mrb[16].mxu1 %vm659_vm0, %v6656_v62  ;;  %1214 = vmatprep.mubr.f32.mxu0 %v10075_v47 }
 0x2ba   : > { %1303 = vmatprep.mubr.f32.mxu1 %v10075_v47 }
 0x2bc   : > { %6665 = vmatmul.mubr.msk.f32.gmra.mrb[18].mxu0 %vm659_vm0, %v6657_v44 }
 0x2bd   : > { %6669 = vmatmul.mubr.msk.f32.gmra.mrb[18].mxu1 %vm659_vm0, %v6657_v44  ;;  %1220 = vmatprep.mubr.f32.mxu0 %v10075_v47 }
 0x2be   : > { %1309 = vmatprep.mubr.f32.mxu1 %v10075_v47 }
 0x2c0   : > { %6666 = vmatmul.mubr.msk.f32.gmra.mrb[20].mxu0 %vm659_vm0, %v6658_v37 }
 0x2c1   : > { %6670 = vmatmul.mubr.msk.f32.gmra.mrb[20].mxu1 %vm659_vm0, %v6658_v37  ;;  %1226 = vmatprep.mubr.f32.mxu0 %v10075_v47 }
 0x2c2   : > { %1315 = vmatprep.mubr.f32.mxu1 %v10075_v47 }
 0x2c4   : > { %6667 = vmatmul.mubr.msk.f32.gmra.mrb[22].mxu0 %vm659_vm0, %v6659_v17 }
 0x2c5   : > { %6671 = vmatmul.mubr.msk.f32.gmra.mrb[22].mxu1 %vm659_vm0, %v6659_v17  ;;  %1444 = vmatprep.mubr.f32.mxu0 %v10075_v47 }
 0x2c6   : > { %1533 = vmatprep.mubr.f32.mxu1 %v10075_v47 }
 0x38b   : > { %v1210_v11 = vpop.f32.mrb[16].mxu0 }
 0x38c   : > { %v1211_v9 = vadd.f32 %v1210_v11, %v1115_v18  ;;  %v1299_v54 = vpop.f32.mrb[16].mxu1  ;;  %v1212_v14 = vpop.f32.mrb[17].mxu0 }
 0x38d   : > { %v1300_v60 = vadd.f32 %v1299_v54, %v1115_v18  ;;  %v1213_v63 = vadd.f32 %v1212_v14, %v1115_v18  ;;  %v1301_v1 = vpop.f32.mrb[17].mxu1 }
 0x38e   : > { %7431 = vtanh.f32 %v1211_v9  ;;  %v1302_v19 = vadd.f32 %v1301_v1, %v1115_v18  ;;  %v6673_v1 = vld [vmem:[%s9983_s5 + $0x68] sm:$0xff] }
 0x38f   : > { %7433 = vtanh.f32 %v1300_v60  ;;  %v1216_v49 = vpop.f32.mrb[18].mxu0 }
 0x390   : > { %7435 = vtanh.f32 %v1213_v63  ;;  %v1217_v3 = vadd.f32 %v1216_v49, %v1120_v20  ;;  %v1305_v4 = vpop.f32.mrb[18].mxu1  ;;  %v1218_v28 = vpop.f32.mrb[19].mxu0  ;;  %v6672_v63 = vld [vmem:[%s9983_s5 + $0x60] sm:$0xff] }
 0x391   : > { %7437 = vtanh.f32 %v1302_v19  ;;  %v1306_v29 = vadd.f32 %v1305_v4, %v1120_v20  ;;  %v1219_v48 = vadd.f32 %v1218_v28, %v1120_v20  ;;  %v1307_v8 = vpop.f32.mrb[19].mxu1  ;;  %v6674_v19 = vld [vmem:[%s9983_s5 + $0x70] sm:$0xff]  ;;  %v1351_v49 = vpop.permute.xlu0 %1350 }
 0x392   : > { %7439 = vtanh.f32 %v1217_v3  ;;  %v1308_v21 = vadd.f32 %v1307_v8, %v1120_v20  ;;  %v6675_v20 = vld [vmem:[%s9983_s5 + $0x78] sm:$0xff] }
 0x393   : > { %7441 = vtanh.f32 %v1306_v29  ;;  %v1222_v13 = vpop.f32.mrb[20].mxu0 }
 0x394   : > { %7443 = vtanh.f32 %v1219_v48  ;;  %v1223_v12 = vadd.f32 %v1222_v13, %v1125_v22  ;;  %v1311_v51 = vpop.f32.mrb[20].mxu1  ;;  %v1224_v57 = vpop.f32.mrb[21].mxu0 }
 0x395   : > { %7445 = vtanh.f32 %v1308_v21  ;;  %v1312_v40 = vadd.f32 %v1311_v51, %v1125_v22  ;;  %v1225_v27 = vadd.f32 %v1224_v57, %v1125_v22  ;;  %v1313_v0 = vpop.f32.mrb[21].mxu1  ;;  %v1356_v13 = vpop.permute.xlu1 %1355 }
 0x396   : > { %7447 = vtanh.f32 %v1223_v12  ;;  %v1314_v23 = vadd.f32 %v1313_v0, %v1125_v22 }
 0x397   : > { %7449 = vtanh.f32 %v1312_v40  ;;  %v1228_v50 = vpop.f32.mrb[22].mxu0 }
 0x398   : > { %v7432_v25 = vpop.eup %7431  ;;  %7451 = vtanh.f32 %v1225_v27  ;;  %v1229_v26 = vadd.f32 %v1228_v50, %v1130_v24  ;;  %v1317_v35 = vpop.f32.mrb[22].mxu1 }
 0x399   : > { %v1230_v52 = vpop.f32.mrb[23].mxu0  ;;  %v7434_v61 = vpop.eup %7433  ;;  %7453 = vtanh.f32 %v1314_v23  ;;  %v1318_v30 = vadd.f32 %v1317_v35, %v1130_v24 }
 0x39a   : > { %v1231_v31 = vadd.f32 %v1230_v52, %v1130_v24  ;;  %v1319_v45 = vpop.f32.mrb[23].mxu1  ;;  %v7436_v15 = vpop.eup %7435  ;;  %7455 = vtanh.f32 %v1229_v26 }
 0x39b   : > { %v1320_v41 = vadd.f32 %v1319_v45, %v1130_v24  ;;  %v7438_v38 = vpop.eup %7437  ;;  %7457 = vtanh.f32 %v1318_v30  ;;  %v1361_v50 = vpop.permute.xlu0 %1360 }
 0x39c   : > { %v7440_v42 = vpop.eup %7439  ;;  %7459 = vtanh.f32 %v1231_v31 }
 0x39d   : > { %v7442_v46 = vpop.eup %7441  ;;  %7461 = vtanh.f32 %v1320_v41  ;;  %v6980_v34 = vpack.c.bf16 %v7440_v42, %v7432_v25 }
 0x39e   : > { %v7444_v53 = vpop.eup %7443  ;;  %v6988_v55 = vpack.c.bf16 %v7442_v46, %v7434_v61 }
 0x39f   : > { %v7446_v56 = vpop.eup %7445  ;;  %v6978_v32 = vpack.c.bf16 %v7444_v53, %v7436_v15  ;;  %v1366_v15 = vpop.permute.xlu1 %1365 }
 0x3a0   : > { %v7448_v58 = vpop.eup %7447  ;;  %v6986_v36 = vpack.c.bf16 %v7446_v56, %v7438_v38 }
 0x3a1   : > { %v7450_v43 = vpop.eup %7449  ;;  %6979 = vmatprep.subr.bf16.mxu0 %v6978_v32 }
 0x3a2   : > { %v7452_v62 = vpop.eup %7451  ;;  %6987 = vmatprep.subr.bf16.mxu1 %v6986_v36  ;;  %6981 = vmatpush1.bf16.msra.mxu0 %v6980_v34 }
 0x3a3   : > { %v7454_v44 = vpop.eup %7453  ;;  %6989 = vmatpush1.bf16.msra.mxu1 %v6988_v55 }
 0x3a4   : > { %v7456_v37 = vpop.eup %7455 }
 0x3a5   : > { %v7458_v17 = vpop.eup %7457  ;;  %v6984_v18 = vpack.c.bf16 %v7456_v37, %v7448_v58 }
 0x3a6   : > { %v7460_v11 = vpop.eup %7459  ;;  %v6992_v9 = vpack.c.bf16 %v7458_v17, %v7450_v43 }
 0x3a7   : > { %v7462_v54 = vpop.eup %7461  ;;  %v6982_v14 = vpack.c.bf16 %v7460_v11, %v7452_v62 }
 0x3a8   : > { %v6990_v60 = vpack.c.bf16 %v7462_v54, %v7454_v44 }
 0x3a9   : > { %6983 = vmatprep.subr.bf16.mxu0 %v6982_v14 }
 0x3aa   : > { %6991 = vmatprep.subr.bf16.mxu1 %v6990_v60  ;;  %6985 = vmatpush1.bf16.msra.mxu0 %v6984_v18 }
 0x3ab   : > { %6993 = vmatpush1.bf16.msra.mxu1 %v6992_v9 }
 0x3ad   : > { %6680 = vmatmul.mubr.msk.f32.vlgmr.msra.gmra.mrb[24].mxu0 %vm659_vm0, %v6672_v63 }
 0x3ae   : > { %6684 = vmatmul.mubr.msk.f32.vlgmr.msra.gmra.mrb[24].mxu1 %vm659_vm0, %v6672_v63  ;;  %1450 = vmatprep.mubr.f32.mxu0 %v10075_v47 }
 0x3af   : > { %1539 = vmatprep.mubr.f32.mxu1 %v10075_v47 }
 0x3b1   : > { %6681 = vmatmul.mubr.msk.f32.gmra.mrb[26].mxu0 %vm659_vm0, %v6673_v1 }
 0x3b2   : > { %6685 = vmatmul.mubr.msk.f32.gmra.mrb[26].mxu1 %vm659_vm0, %v6673_v1  ;;  %1456 = vmatprep.mubr.f32.mxu0 %v10075_v47 }
 0x3b3   : > { %1545 = vmatprep.mubr.f32.mxu1 %v10075_v47 }
 0x3b5   : > { %6682 = vmatmul.mubr.msk.f32.gmra.mrb[28].mxu0 %vm659_vm0, %v6674_v19 }
 0x3b6   : > { %6686 = vmatmul.mubr.msk.f32.gmra.mrb[28].mxu1 %vm659_vm0, %v6674_v19  ;;  %1462 = vmatprep.mubr.f32.mxu0 %v10075_v47 }
 0x3b7   : > { %1551 = vmatprep.mubr.f32.mxu1 %v10075_v47 }
 0x3b9   : > { %6683 = vmatmul.mubr.msk.f32.gmra.mrb[30].mxu0 %vm659_vm0, %v6675_v20 }
 0x3ba   : > { %6687 = vmatmul.mubr.msk.f32.gmra.mrb[30].mxu1 %vm659_vm0, %v6675_v20  ;;  %1680 = vmatprep.mubr.f32.mxu0 %v10075_v47 }
 0x3bb   : > { %1769 = vmatprep.mubr.f32.mxu1 %v10075_v47 }
 0x480   : > { %v1446_v3 = vpop.f32.mrb[24].mxu0 }
 0x481   : > { %v1447_v4 = vadd.f32 %v1446_v3, %v1351_v49  ;;  %v1535_v28 = vpop.f32.mrb[24].mxu1  ;;  %v1448_v29 = vpop.f32.mrb[25].mxu0 }
 0x482   : > { %v1536_v48 = vadd.f32 %v1535_v28, %v1351_v49  ;;  %v1449_v8 = vadd.f32 %v1448_v29, %v1351_v49  ;;  %v1537_v21 = vpop.f32.mrb[25].mxu1 }
 0x483   : > { %7463 = vtanh.f32 %v1447_v4  ;;  %v1538_v22 = vadd.f32 %v1537_v21, %v1351_v49  ;;  %v6689_v21 = vld [vmem:[%s9983_s5 + $0x88] sm:$0xff] }
 0x484   : > { %7465 = vtanh.f32 %v1536_v48  ;;  %v1452_v12 = vpop.f32.mrb[26].mxu0 }
 0x485   : > { %7467 = vtanh.f32 %v1449_v8  ;;  %v1453_v51 = vadd.f32 %v1452_v12, %v1356_v13  ;;  %v1541_v57 = vpop.f32.mrb[26].mxu1  ;;  %v1454_v40 = vpop.f32.mrb[27].mxu0  ;;  %v6688_v8 = vld [vmem:[%s9983_s5 + $0x80] sm:$0xff] }
 0x486   : > { %7469 = vtanh.f32 %v1538_v22  ;;  %v1542_v27 = vadd.f32 %v1541_v57, %v1356_v13  ;;  %v1455_v0 = vadd.f32 %v1454_v40, %v1356_v13  ;;  %v1543_v23 = vpop.f32.mrb[27].mxu1  ;;  %v6690_v22 = vld [vmem:[%s9983_s5 + $0x90] sm:$0xff]  ;;  %v1998_v12 = vld [vmem:[%s8380_s14 + $0x4] sm:$0xf]  ;;  %v10076_v57 = vld [vmem:[#allocation10_spill] sm:$0xff] }
 0x487   : > { %7471 = vtanh.f32 %v1453_v51  ;;  %v1544_v24 = vadd.f32 %v1543_v23, %v1356_v13  ;;  %v6691_v13 = vld [vmem:[%s9983_s5 + $0x98] sm:$0xff]  ;;  %v1999_v51 = vld [vmem:[%s8374_s30 + $0x4] sm:$0xf]  ;;  %v8752_v40 = vrot.slane %v1998_v12, %v10076_v57 }
 0x488   : > { %7473 = vtanh.f32 %v1542_v27  ;;  %v1458_v25 = vpop.f32.mrb[28].mxu0  ;;  %v2000_v27 = vld [vmem:[%s8391_s16 + $0x4] sm:$0xf] }
 0x489   : > { %7475 = vtanh.f32 %v1455_v0  ;;  %v1459_v26 = vadd.f32 %v1458_v25, %v1361_v50  ;;  %v1547_v35 = vpop.f32.mrb[28].mxu1  ;;  %v1460_v52 = vpop.f32.mrb[29].mxu0  ;;  %v10077_v0 = vld [vmem:[#allocation11_spill] sm:$0xff] }
 0x48a   : > { %7477 = vtanh.f32 %v1544_v24  ;;  %v1548_v61 = vadd.f32 %v1547_v35, %v1361_v50  ;;  %v1461_v30 = vadd.f32 %v1460_v52, %v1361_v50  ;;  %v1549_v31 = vpop.f32.mrb[29].mxu1  ;;  %v8756_v23 = vrot.slane %v1998_v12, %v10077_v0  ;;  %v10079_v35 = vld [vmem:[#allocation12_spill] sm:$0xff] }
 0x48b   : > { %7479 = vtanh.f32 %v1459_v26  ;;  %v1550_v45 = vadd.f32 %v1549_v31, %v1361_v50  ;;  %v8759_v24 = vrot.slane %v1999_v51, %v10076_v57  ;;  %v10078_v50 = vld [vmem:[#allocation16_spill] sm:$0xff]  ;;  %v8764_v26 = vrot.slane %v1999_v51, %v10077_v0 }
 0x48c   : > { %7481 = vtanh.f32 %v1548_v61  ;;  %v1464_v41 = vpop.f32.mrb[30].mxu0  ;;  %v2027_v25 = vmul.f32 %v8752_v40, %v10078_v50  ;;  %v8767_v52 = vrot.slane %v1998_v12, %v10079_v35  ;;  %v10080_v61 = vld [vmem:[#allocation14_spill] sm:$0xff]  ;;  %v8772_v31 = vrot.slane %v2000_v27, %v10076_v57 }
 0x48d   : > { %v7464_v38 = vpop.eup %7463  ;;  %7483 = vtanh.f32 %v1461_v30  ;;  %v1465_v42 = vadd.f32 %v1464_v41, %v1366_v15  ;;  %v1553_v46 = vpop.f32.mrb[30].mxu1  ;;  %v2023_v30 = vmul.f32 %v8752_v40, %v10080_v61 }
 0x48e   : > { %v1466_v34 = vpop.f32.mrb[31].mxu0  ;;  %v7466_v53 = vpop.eup %7465  ;;  %7485 = vtanh.f32 %v1550_v45  ;;  %v1554_v55 = vadd.f32 %v1553_v46, %v1366_v15  ;;  %v8775_v45 = vrot.slane %v2000_v27, %v10077_v0  ;;  %v10082_v46 = vld [vmem:[#allocation13_spill] sm:$0xff] }
 0x48f   : > { %v1467_v56 = vadd.f32 %v1466_v34, %v1366_v15  ;;  %v1555_v32 = vpop.f32.mrb[31].mxu1  ;;  %v7468_v58 = vpop.eup %7467  ;;  %7487 = vtanh.f32 %v1465_v42  ;;  %v8782_v42 = vrot.slane %v1999_v51, %v10079_v35  ;;  %v8785_v34 = vrot.slane %v1998_v12, %v10082_v46 }
 0x490   : > { %v1556_v36 = vadd.f32 %v1555_v32, %v1366_v15  ;;  %v7470_v43 = vpop.eup %7469  ;;  %7489 = vtanh.f32 %v1554_v55  ;;  %v10081_v15 = vld [vmem:[#allocation8_spill] sm:$0xff]  ;;  %v8792_v32 = vrot.slane %v2000_v27, %v10079_v35 }
 0x491   : > { %v7472_v62 = vpop.eup %7471  ;;  %7491 = vtanh.f32 %v1467_v56  ;;  %v2064_v41 = vmul.f32 %v8759_v24, %v10081_v15  ;;  %v2029_v56 = vmul.f32 %v8756_v23, %v10078_v50 }
 0x492   : > { %v7474_v44 = vpop.eup %7473  ;;  %7493 = vtanh.f32 %v1556_v36  ;;  %v6996_v37 = vpack.c.bf16 %v7472_v62, %v7464_v38  ;;  %v2025_v38 = vmul.f32 %v8756_v23, %v10080_v61 }
 0x493   : > { %v7476_v17 = vpop.eup %7475  ;;  %v7004_v18 = vpack.c.bf16 %v7474_v44, %v7466_v53  ;;  %v10083_v53 = vld [vmem:[#allocation5_spill] sm:$0xff]  ;;  %v2080_v36 = vadd.f32 %v2064_v41, %v2027_v25 }
 0x494   : > { %v7478_v11 = vpop.eup %7477  ;;  %v6994_v9 = vpack.c.bf16 %v7476_v17, %v7468_v58  ;;  %v2060_v55 = vmul.f32 %v8759_v24, %v10083_v53  ;;  %v8795_v58 = vrot.slane %v1999_v51, %v10082_v46  ;;  %v2062_v44 = vmul.f32 %v8764_v26, %v10083_v53 }
 0x495   : > { %v7480_v54 = vpop.eup %7479  ;;  %v7002_v14 = vpack.c.bf16 %v7478_v11, %v7470_v43  ;;  %v10084_v43 = vld [vmem:[#allocation6_spill] sm:$0xff] }
 0x496   : > { %v7482_v60 = vpop.eup %7481  ;;  %6995 = vmatprep.subr.bf16.mxu0 %v6994_v9  ;;  %v2113_v62 = vmul.f32 %v8772_v31, %v10084_v43  ;;  %v2076_v17 = vadd.f32 %v2060_v55, %v2023_v30  ;;  %v2115_v11 = vmul.f32 %v8775_v45, %v10084_v43  ;;  %v2026_v9 = vmul.f32 %v8767_v52, %v10078_v50 }
 0x497   : > { %v7484_v63 = vpop.eup %7483  ;;  %7003 = vmatprep.subr.bf16.mxu1 %v7002_v14  ;;  %6997 = vmatpush1.bf16.msra.mxu0 %v6996_v37  ;;  %v2022_v37 = vmul.f32 %v8767_v52, %v10080_v61 }
 0x498   : > { %v7486_v1 = vpop.eup %7485  ;;  %7005 = vmatpush1.bf16.msra.mxu1 %v7004_v18  ;;  %v2066_v18 = vmul.f32 %v8764_v26, %v10081_v15 }
 0x499   : > { %v7488_v19 = vpop.eup %7487 }
 0x49a   : > { %v7490_v20 = vpop.eup %7489  ;;  %v7000_v49 = vpack.c.bf16 %v7488_v19, %v7480_v54  ;;  %v10085_v54 = vld [vmem:[#allocation15_spill] sm:$0xff]  ;;  %v2082_v19 = vadd.f32 %v2066_v18, %v2029_v56 }
 0x49b   : > { %v7492_v3 = vpop.eup %7491  ;;  %v7008_v4 = vpack.c.bf16 %v7490_v20, %v7482_v60  ;;  %v2117_v14 = vmul.f32 %v8772_v31, %v10085_v54  ;;  %v2078_v60 = vadd.f32 %v2062_v44, %v2025_v38  ;;  %v2063_v20 = vmul.f32 %v8782_v42, %v10081_v15 }
 0x49c   : > { %v7494_v28 = vpop.eup %7493  ;;  %v6998_v29 = vpack.c.bf16 %v7492_v3, %v7484_v63  ;;  %v2059_v63 = vmul.f32 %v8782_v42, %v10083_v53  ;;  %v2116_v30 = vmul.f32 %v8792_v32, %v10085_v54 }
 0x49d   : > { %v7006_v48 = vpack.c.bf16 %v7494_v28, %v7486_v1  ;;  %v2024_v1 = vmul.f32 %v8785_v34, %v10080_v61  ;;  %v2133_v3 = vadd.f32 %v2117_v14, %v2080_v36  ;;  %v2112_v28 = vmul.f32 %v8792_v32, %v10084_v43  ;;  %v10086_v14 = vld [vmem:[#allocation9_spill] sm:$0xff] }
 0x49e   : > { %6999 = vmatprep.subr.bf16.mxu0 %v6998_v29  ;;  %v2061_v29 = vmul.f32 %v8795_v58, %v10083_v53  ;;  %v2028_v36 = vmul.f32 %v8785_v34, %v10078_v50 }
 0x49f   : > { %7007 = vmatprep.subr.bf16.mxu1 %v7006_v48  ;;  %7001 = vmatpush1.bf16.msra.mxu0 %v7000_v49  ;;  %v8818_v49 = vrot.slane %v2000_v27, %v10082_v46  ;;  %v2129_v48 = vadd.f32 %v2113_v62, %v2076_v17  ;;  %v2065_v17 = vmul.f32 %v8795_v58, %v10081_v15 }
 0x4a0   : > { %7009 = vmatpush1.bf16.msra.mxu1 %v7008_v4  ;;  %v2075_v4 = vadd.f32 %v2059_v63, %v2022_v37  ;;  %v2077_v12 = vadd.f32 %v2061_v29, %v2024_v1  ;;  %v8847_v63 = vmul.f32 %v8775_v45, %v10086_v14  ;;  %v1587_v1 = vpop.permute.xlu0 %1586 }
 0x4a1   : > { %v2114_v51 = vmul.f32 %v8818_v49, %v10084_v43  ;;  %v2145_v27 = vadd.f32 %v2129_v48, %v8563_v6 }
 0x4a2   : > { %6696 = vmatmul.mubr.msk.f32.vlgmr.msra.gmra.mrb[32].mxu0 %vm659_vm0, %v6688_v8  ;;  %v2128_v38 = vadd.f32 %v2112_v28, %v2075_v4  ;;  %v2072_v4 = vmul.f32 %v8759_v24, %v8513_v39 }
 0x4a3   : > { %6700 = vmatmul.mubr.msk.f32.vlgmr.msra.gmra.mrb[32].mxu1 %vm659_vm0, %v6688_v8  ;;  %1686 = vmatprep.mubr.f32.mxu0 %v10075_v47  ;;  %v2119_v8 = vmul.f32 %v8775_v45, %v10085_v54  ;;  %v2130_v44 = vadd.f32 %v2114_v51, %v2077_v12 }
 0x4a4   : > { %1775 = vmatprep.mubr.f32.mxu1 %v10075_v47  ;;  %v2144_v62 = vadd.f32 %v2128_v38, %v8563_v6  ;;  %v2125_v38 = vmul.f32 %v8772_v31, %v8540_v5 }
 0x4a5   : > { %v2135_v25 = vadd.f32 %v2119_v8, %v2082_v19  ;;  %v2146_v18 = vadd.f32 %v2130_v44, %v8563_v6  ;;  %v2118_v8 = vmul.f32 %v8818_v49, %v10085_v54  ;;  %v2070_v44 = vmul.f32 %v8764_v26, %v8489_v33 }
 0x4a6   : > { %6697 = vmatmul.mubr.msk.f32.gmra.mrb[34].mxu0 %vm659_vm0, %v6689_v21 }
 0x4a7   : > { %6701 = vmatmul.mubr.msk.f32.gmra.mrb[34].mxu1 %vm659_vm0, %v6689_v21  ;;  %1692 = vmatprep.mubr.f32.mxu0 %v10075_v47  ;;  %v2079_v21 = vadd.f32 %v2063_v20, %v2026_v9  ;;  %v2151_v55 = vadd.f32 %v2135_v25, %v8521_v10  ;;  %v2081_v9 = vadd.f32 %v2065_v17, %v2028_v36  ;;  %v1592_v25 = vpop.permute.xlu1 %1591 }
 0x4a8   : > { %1781 = vmatprep.mubr.f32.mxu1 %v10075_v47  ;;  %v2031_v20 = vmul.f32 %v8752_v40, %v8445_v59 }
 0x4a9   : > { %v2132_v56 = vadd.f32 %v2116_v30, %v2079_v21  ;;  %v8859_v21 = vmul.f32 %v8792_v32, %v10086_v14 }
 0x4aa   : > { %6698 = vmatmul.mubr.msk.f32.gmra.mrb[36].mxu0 %vm659_vm0, %v6690_v22 }
 0x4ab   : > { %6702 = vmatmul.mubr.msk.f32.gmra.mrb[36].mxu1 %vm659_vm0, %v6690_v22  ;;  %1698 = vmatprep.mubr.f32.mxu0 %v10075_v47  ;;  %v2149_v22 = vadd.f32 %v2133_v3, %v8521_v10  ;;  %v2148_v37 = vadd.f32 %v2132_v56, %v8521_v10  ;;  %v2035_v3 = vmul.f32 %v8752_v40, %v8479_v16 }
 0x4ac   : > { %1787 = vmatprep.mubr.f32.mxu1 %v10075_v47 }
 0x4ad   : > { %7495 = vtanh.f32 %v2149_v22 }
 0x4ae   : > { %6699 = vmatmul.mubr.msk.f32.gmra.mrb[38].mxu0 %vm659_vm0, %v6691_v13  ;;  %7497 = vtanh.f32 %v2145_v27  ;;  %v2134_v27 = vadd.f32 %v2118_v8, %v2081_v9 }
 0x4af   : > { %6703 = vmatmul.mubr.msk.f32.gmra.mrb[38].mxu1 %vm659_vm0, %v6691_v13  ;;  %1886 = vmatprep.mubr.f32.mxu0 %v10075_v47  ;;  %v2131_v13 = vadd.f32 %v2115_v11, %v2078_v60  ;;  %v2068_v11 = vmul.f32 %v8759_v24, %v8489_v33  ;;  %v2121_v60 = vmul.f32 %v8772_v31, %v10086_v14 }
 0x4b0   : > { %1957 = vmatprep.mubr.f32.mxu1 %v10075_v47  ;;  %v8863_v24 = vmul.f32 %v8818_v49, %v10086_v14 }
 0x4b1   : > { %v2147_v41 = vadd.f32 %v2131_v13, %v8563_v6  ;;  %v2084_v51 = vadd.f32 %v2068_v11, %v2031_v20  ;;  %v8878_v20 = vadd.f32 %v2134_v27, %v8521_v10 }
 0x4b3   : > { %7499 = vtanh.f32 %v2147_v41  ;;  %v2088_v41 = vadd.f32 %v2072_v4, %v2035_v3  ;;  %v2137_v31 = vadd.f32 %v2121_v60, %v2084_v51  ;;  %v2033_v3 = vmul.f32 %v8756_v23, %v8445_v59 }
 0x4b4   : > { %7501 = vtanh.f32 %v2151_v55  ;;  %v2037_v55 = vmul.f32 %v8756_v23, %v8479_v16  ;;  %v2127_v60 = vmul.f32 %v8775_v45, %v8540_v5 }
 0x4b5   : > { %7503 = vtanh.f32 %v2144_v62  ;;  %v2086_v51 = vadd.f32 %v2070_v44, %v2033_v3 }
 0x4b6   : > { %7505 = vtanh.f32 %v2148_v37  ;;  %v2074_v37 = vmul.f32 %v8764_v26, %v8513_v39  ;;  %v1597_v26 = vpop.permute.xlu0 %1596 }
 0x4b7   : > { %7507 = vtanh.f32 %v2146_v18  ;;  %v8873_v17 = vpop.eup %7495 }
 0x4b8   : > { %v2090_v23 = vadd.f32 %v2074_v37, %v2037_v55  ;;  %v1602_v55 = vpop.permute.xlu1 %1601  ;;  %v2067_v37 = vmul.f32 %v8782_v42, %v8489_v33 }
 0x575   : > { %v1682_v19 = vpop.f32.mrb[32].mxu0 }
 0x576   : > { %v1683_v28 = vadd.f32 %v1682_v19, %v1587_v1  ;;  %v1771_v29 = vpop.f32.mrb[32].mxu1  ;;  %v1684_v48 = vpop.f32.mrb[33].mxu0 }
 0x577   : > { %v1772_v22 = vadd.f32 %v1771_v29, %v1587_v1  ;;  %v1685_v13 = vadd.f32 %v1684_v48, %v1587_v1  ;;  %v1773_v12 = vpop.f32.mrb[33].mxu1  ;;  %v2141_v29 = vadd.f32 %v2125_v38, %v2088_v41  ;;  %v8885_v48 = vadd.f32 %v2137_v31, %v8579_v7 }
 0x578   : > { %7509 = vtanh.f32 %v1683_v28  ;;  %v1774_v40 = vadd.f32 %v1773_v12, %v1587_v1  ;;  %v8875_v1 = vpop.eup %7497 }
 0x579   : > { %7511 = vtanh.f32 %v1772_v22  ;;  %v1688_v30 = vpop.f32.mrb[34].mxu0  ;;  %v8882_v4 = vpop.eup %7499  ;;  %v2157_v41 = vadd.f32 %v2141_v29, %v8590_v2 }
 0x57a   : > { %7513 = vtanh.f32 %v1685_v13  ;;  %v1689_v56 = vadd.f32 %v1688_v30, %v1592_v25  ;;  %v1777_v36 = vpop.f32.mrb[34].mxu1  ;;  %v1690_v62 = vpop.f32.mrb[35].mxu0 }
 0x57b   : > { %7515 = vtanh.f32 %v1774_v40  ;;  %v1778_v18 = vadd.f32 %v1777_v36, %v1592_v25  ;;  %v1691_v11 = vadd.f32 %v1690_v62, %v1592_v25  ;;  %v1779_v9 = vpop.f32.mrb[35].mxu1  ;;  %v8889_v8 = vpop.eup %7501  ;;  %v2034_v36 = vmul.f32 %v8767_v52, %v8479_v16 }
 0x57c   : > { %7517 = vtanh.f32 %v1689_v56  ;;  %v1780_v19 = vadd.f32 %v1779_v9, %v1592_v25  ;;  %v8891_v40 = vpop.eup %7503  ;;  %v2030_v56 = vmul.f32 %v8767_v52, %v8445_v59  ;;  %v2069_v52 = vmul.f32 %v8795_v58, %v8489_v33 }
 0x57d   : > { %7519 = vtanh.f32 %v1778_v18  ;;  %v1694_v28 = vpop.f32.mrb[36].mxu0  ;;  %v8894_v38 = vpop.eup %7505  ;;  %v2071_v18 = vmul.f32 %v8782_v42, %v8513_v39  ;;  %v2124_v42 = vmul.f32 %v8792_v32, %v8540_v5 }
 0x57e   : > { %7521 = vtanh.f32 %v1691_v11  ;;  %v1695_v22 = vadd.f32 %v1694_v28, %v1597_v26  ;;  %v1783_v13 = vpop.f32.mrb[36].mxu1  ;;  %v1696_v12 = vpop.f32.mrb[37].mxu0  ;;  %v2036_v11 = vmul.f32 %v8785_v34, %v8479_v16  ;;  %v2083_v14 = vadd.f32 %v2067_v37, %v2030_v56 }
 0x57f   : > { %7523 = vtanh.f32 %v1780_v19  ;;  %v1784_v27 = vadd.f32 %v1783_v13, %v1597_v26  ;;  %v1697_v25 = vadd.f32 %v1696_v12, %v1597_v26  ;;  %v1785_v30 = vpop.f32.mrb[37].mxu1  ;;  %v8900_v62 = vpop.eup %7507 }
 0x580   : > { %7525 = vtanh.f32 %v1695_v22  ;;  %v1786_v45 = vadd.f32 %v1785_v30, %v1597_v26  ;;  %v2073_v26 = vmul.f32 %v8795_v58, %v8513_v39  ;;  %v2126_v30 = vmul.f32 %v8818_v49, %v8540_v5 }
 0x581   : > { %7527 = vtanh.f32 %v1784_v27  ;;  %v1700_v44 = vpop.f32.mrb[38].mxu0  ;;  %v2143_v58 = vadd.f32 %v2127_v60, %v2090_v23 }
 0x582   : > { %v7510_v9 = vpop.eup %7509  ;;  %7529 = vtanh.f32 %v1697_v25  ;;  %v1701_v31 = vadd.f32 %v1700_v44, %v1602_v55  ;;  %v1789_v19 = vpop.f32.mrb[38].mxu1  ;;  %v2032_v25 = vmul.f32 %v8785_v34, %v8445_v59  ;;  %v2089_v32 = vadd.f32 %v2073_v26, %v2036_v11 }
 0x583   : > { %v1702_v3 = vpop.f32.mrb[39].mxu0  ;;  %v7512_v28 = vpop.eup %7511  ;;  %7531 = vtanh.f32 %v1786_v45  ;;  %v1790_v29 = vadd.f32 %v1789_v19, %v1602_v55  ;;  %v2087_v45 = vadd.f32 %v2071_v18, %v2034_v36 }
 0x584   : > { %v1703_v22 = vadd.f32 %v1702_v3, %v1602_v55  ;;  %v1791_v13 = vpop.f32.mrb[39].mxu1  ;;  %v7514_v12 = vpop.eup %7513  ;;  %7533 = vtanh.f32 %v1701_v31  ;;  %v2139_v3 = vadd.f32 %v8847_v63, %v2086_v51  ;;  %v2085_v39 = vadd.f32 %v2069_v52, %v2032_v25  ;;  %v379_v25 = vld [vmem:[%s9985_s7] sm:$0x1] }
 0x585   : > { %v1792_v27 = vadd.f32 %v1791_v13, %v1602_v55  ;;  %v7516_v44 = vpop.eup %7515  ;;  %7535 = vtanh.f32 %v1790_v29  ;;  %v2159_v31 = vadd.f32 %v2143_v58, %v8590_v2  ;;  %v2140_v34 = vadd.f32 %v2124_v42, %v2087_v45 }
 0x586   : > { %v7518_v19 = vpop.eup %7517  ;;  %7537 = vtanh.f32 %v1703_v22  ;;  %v2155_v49 = vadd.f32 %v2139_v3, %v8579_v7  ;;  %v2142_v60 = vadd.f32 %v2126_v30, %v2089_v32  ;;  %v2136_v63 = vadd.f32 %v8859_v21, %v2083_v14 }
 0x587   : > { %v7520_v16 = vpop.eup %7519  ;;  %7539 = vtanh.f32 %v1792_v27  ;;  %v7012_v55 = vpack.c.bf16 %v7518_v19, %v7510_v9  ;;  %v2156_v51 = vadd.f32 %v2140_v34, %v8590_v2  ;;  %v2138_v18 = vadd.f32 %v8863_v24, %v2085_v39  ;;  %v2187_v34 = vpop.permute.xlu0 %2186 }
 0x588   : > { %v7522_v13 = vpop.eup %7521  ;;  %v7020_v59 = vpack.c.bf16 %v7520_v16, %v7512_v28  ;;  %7541 = vtanh.f32 %v8878_v20  ;;  %v2158_v16 = vadd.f32 %v2142_v60, %v8590_v2  ;;  %v2152_v20 = vadd.f32 %v2136_v63, %v8579_v7 }
 0x589   : > { %v7524_v23 = vpop.eup %7523  ;;  %v7010_v56 = vpack.c.bf16 %v7522_v13, %v7514_v12  ;;  %7543 = vtanh.f32 %v8885_v48  ;;  %v2154_v14 = vadd.f32 %v2138_v18, %v8579_v7  ;;  %v7026_v12 = vpack.c.bf16 %v8873_v17, %v8875_v1 }
 0x58a   : > { %v7526_v36 = vpop.eup %7525  ;;  %v7018_v37 = vpack.c.bf16 %v7524_v23, %v7516_v44  ;;  %7545 = vtanh.f32 %v2157_v41  ;;  %v7028_v58 = vpack.c.bf16 %v8894_v38, %v8891_v40  ;;  %v2176_v38 = vld [vmem:[%s9983_s5] sm:$0xff] }
 0x58b   : > { %v7528_v11 = vpop.eup %7527  ;;  %7011 = vmatprep.subr.bf16.mxu0 %v7010_v56  ;;  %7547 = vtanh.f32 %v2159_v31  ;;  %v2179_v31 = vld [vmem:[%s9983_s5 + $0x18] sm:$0xff]  ;;  %v8971_v13 = vpop.permute.xlu0 %2196 }
 0x58c   : > { %v7530_v9 = vpop.eup %7529  ;;  %7019 = vmatprep.subr.bf16.mxu1 %v7018_v37  ;;  %7013 = vmatpush1.bf16.msra.mxu0 %v7012_v55  ;;  %7549 = vtanh.f32 %v2155_v49  ;;  %v2178_v55 = vld [vmem:[%s9983_s5 + $0x10] sm:$0xff] }
 0x58d   : > { %v7532_v21 = vpop.eup %7531  ;;  %7021 = vmatpush1.bf16.msra.mxu1 %v7020_v59  ;;  %7551 = vtanh.f32 %v2156_v51  ;;  %v7034_v59 = vpack.c.bf16 %v8889_v8, %v8882_v4 }
 0x58e   : > { %v7534_v48 = vpop.eup %7533  ;;  %7553 = vtanh.f32 %v2158_v16 }
 0x58f   : > { %v7536_v41 = vpop.eup %7535  ;;  %v7016_v39 = vpack.c.bf16 %v7534_v48, %v7526_v36  ;;  %7555 = vtanh.f32 %v2152_v20  ;;  %v8973_v49 = vpop.permute.xlu0 %2420 }
 0x590   : > { %v7538_v24 = vpop.eup %7537  ;;  %v7024_v52 = vpack.c.bf16 %v7536_v41, %v7528_v11  ;;  %7557 = vtanh.f32 %v2154_v14 }
 0x591   : > { %v7540_v26 = vpop.eup %7539  ;;  %v7014_v28 = vpack.c.bf16 %v7538_v24, %v7530_v9 }
 0x592   : > { %v7542_v29 = vpop.eup %7541  ;;  %v7022_v22 = vpack.c.bf16 %v7540_v26, %v7532_v21 }
 0x593   : > { %v7544_v42 = vpop.eup %7543  ;;  %7015 = vmatprep.subr.bf16.mxu0 %v7014_v28  ;;  %v7036_v17 = vpack.c.bf16 %v7542_v29, %v8900_v62  ;;  %v2177_v62 = vld [vmem:[%s9983_s5 + $0x8] sm:$0xff]  ;;  %v8975_v60 = vpop.permute.xlu0 %2430 }
 0x594   : > { %v7546_v27 = vpop.eup %7545  ;;  %7023 = vmatprep.subr.bf16.mxu1 %v7022_v22  ;;  %7017 = vmatpush1.bf16.msra.mxu0 %v7016_v39 }
 0x595   : > { %v7548_v30 = vpop.eup %7547  ;;  %7025 = vmatpush1.bf16.msra.mxu1 %v7024_v52  ;;  %7027 = vmatprep.subr.bf16.mxu0 %v7026_v12  ;;  %v7030_v1 = vpack.c.bf16 %v7546_v27, %v7544_v42 }
 0x596   : > { %v7550_v44 = vpop.eup %7549  ;;  %7035 = vmatprep.subr.bf16.mxu1 %v7034_v59 }
 0x597   : > { %v7552_v45 = vpop.eup %7551  ;;  %6704 = vmatmul.mubr.msk.f32.vlgmr.msra.gmra.mrb[40].mxu0 %vm659_vm0, %v379_v25  ;;  %v7038_v4 = vpack.c.bf16 %v7548_v30, %v7550_v44  ;;  %v8977_v23 = vpop.permute.xlu0 %2654 }
 0x598   : > { %v7554_v19 = vpop.eup %7553  ;;  %6705 = vmatmul.mubr.msk.f32.vlgmr.msra.gmra.mrb[40].mxu1 %vm659_vm0, %v379_v25  ;;  %7029 = vmatpush1.bf16.msra.mxu0 %v7028_v58  ;;  %v8118_v25 = vmov 1966171168  }
 0x599   : > { %v7556_v8 = vpop.eup %7555  ;;  %7037 = vmatpush1.bf16.msra.mxu1 %v7036_v17  ;;  %7031 = vmatprep.subr.bf16.mxu0 %v7030_v1  ;;  %v1971_v30 = vunpack.c.l.s4 %v8118_v25 }
 0x59a   : > { %v7558_v3 = vpop.eup %7557  ;;  %7039 = vmatprep.subr.bf16.mxu1 %v7038_v4  ;;  %v7032_v32 = vpack.c.bf16 %v7552_v45, %v7556_v8  ;;  %2280 = vmatprep.mubr.f32.mxu0 %v10075_v47 }
 0x59b   : > { %v7040_v40 = vpack.c.bf16 %v7554_v19, %v7558_v3  ;;  %2369 = vmatprep.mubr.f32.mxu1 %v10075_v47  ;;  %v8979_v56 = vpop.permute.xlu0 %2664  ;;  %v1972_v58 = vunpack.c.0.s8 %v1971_v30 }
 0x59c   : > { %7033 = vmatpush1.bf16.msra.mxu0 %v7032_v32  ;;  %v10099_v32 = vld [vmem:[#allocation7_spill] sm:$0xff] }
 0x59d   : > { %7041 = vmatpush1.bf16.msra.mxu1 %v7040_v40  ;;  %v9036_v40 = vsub.s32 %v1972_v58, %v10099_v32  ;;  %v10100_v58 = vlaneseq }
 0x59f   : > { %6706 = vmatmul.mubr.msk.f32.vlgmr.msra.gmra.mrb[42].mxu0 %vm659_vm0, %v2176_v38  ;;  %v8981_v63 = vpop.permute.xlu0 %2888  ;;  %vm9048_vm1 = vcmp.lt.s32.totalorder %v10100_v58, 512 }
 0x5a0   : > { %6710 = vmatmul.mubr.msk.f32.vlgmr.msra.gmra.mrb[42].mxu1 %vm659_vm0, %v2176_v38  ;;  %2286 = vmatprep.mubr.f32.mxu0 %v10075_v47 }
 0x5a1   : > { %2375 = vmatprep.mubr.f32.mxu1 %v10075_v47 }
 0x5a3   : > { %6707 = vmatmul.mubr.msk.f32.gmra.mrb[44].mxu0 %vm659_vm0, %v2177_v62  ;;  %v8983_v51 = vpop.permute.xlu0 %2898 }
 0x5a4   : > { %6711 = vmatmul.mubr.msk.f32.gmra.mrb[44].mxu1 %vm659_vm0, %v2177_v62  ;;  %2292 = vmatprep.mubr.f32.mxu0 %v10075_v47 }
 0x5a5   : > { %2381 = vmatprep.mubr.f32.mxu1 %v10075_v47 }
 0x5a7   : > { %6708 = vmatmul.mubr.msk.f32.gmra.mrb[46].mxu0 %vm659_vm0, %v2178_v55  ;;  %v8985_v36 = vpop.permute.xlu0 %3122 }
 0x5a8   : > { %6712 = vmatmul.mubr.msk.f32.gmra.mrb[46].mxu1 %vm659_vm0, %v2178_v55  ;;  %2298 = vmatprep.mubr.f32.mxu0 %v10075_v47 }
 0x5a9   : > { %2387 = vmatprep.mubr.f32.mxu1 %v10075_v47 }
 0x5ab   : > { %6709 = vmatmul.mubr.msk.f32.gmra.mrb[48].mxu0 %vm659_vm0, %v2179_v31  ;;  %v8987_v37 = vpop.permute.xlu0 %3132 }
 0x5ac   : > { %6713 = vmatmul.mubr.msk.f32.gmra.mrb[48].mxu1 %vm659_vm0, %v2179_v31  ;;  %2514 = vmatprep.mubr.f32.mxu0 %v10075_v47 }
 0x5ad   : > { %2603 = vmatprep.mubr.f32.mxu1 %v10075_v47 }
 0x5af   : > { %v8989_v18 = vpop.permute.xlu0 %3706 }
 0x5b3   : > { %v8991_v16 = vpop.permute.xlu0 %3716 }
 0x5b7   : > { %v8993_v11 = vpop.permute.xlu0 %3940 }
 0x5bb   : > { %v8995_v20 = vpop.permute.xlu0 %3950 }
 0x5bf   : > { %v8997_v9 = vpop.permute.xlu0 %4174 }
 0x5c3   : > { %v8999_v14 = vpop.permute.xlu0 %4184 }
 0x5c7   : > { %v9001_v21 = vpop.permute.xlu0 %4408 }
 0x5cb   : > { %v9003_v48 = vpop.permute.xlu0 %4418 }
 0x5cf   : > { %v9005_v41 = vpop.permute.xlu0 %4642 }
 0x5d0   : > { %10087 = vst [vmem:[#allocation3_spill] sm:$0xff] %v9005_v41 }
 0x5d3   : > { %v9007_v39 = vpop.permute.xlu0 %4652 }
 0x5d4   : > { %10088 = vst [vmem:[#allocation4_spill] sm:$0xff] %v9007_v39 }
 0x5d7   : > { %v9009_v24 = vpop.permute.xlu0 %5226 }
 0x5d8   : > { %10089 = vst [vmem:[#allocation10_spill] sm:$0xff] %v9009_v24 }
 0x5db   : > { %v9011_v52 = vpop.permute.xlu0 %5236 }
 0x5dc   : > { %10090 = vst [vmem:[#allocation11_spill] sm:$0xff] %v9011_v52 }
 0x5df   : > { %v9013_v26 = vpop.permute.xlu0 %5460 }
 0x5e0   : > { %10091 = vst [vmem:[#allocation12_spill] sm:$0xff] %v9013_v26 }
 0x5e3   : > { %v9015_v28 = vpop.permute.xlu0 %5470 }
 0x5e4   : > { %10092 = vst [vmem:[#allocation14_spill] sm:$0xff] %v9015_v28 }
 0x5e7   : > { %v9017_v29 = vpop.permute.xlu0 %5694 }
 0x5e8   : > { %10093 = vst [vmem:[#allocation24_spill] sm:$0xff] %v9017_v29 }
 0x5eb   : > { %v9019_v22 = vpop.permute.xlu0 %5704 }
 0x5ec   : > { %10094 = vst [vmem:[#allocation25_spill] sm:$0xff] %v9019_v22 }
 0x5ef   : > { %v9021_v42 = vpop.permute.xlu0 %5928 }
 0x5f0   : > { %10095 = vst [vmem:[#allocation26_spill] sm:$0xff] %v9021_v42 }
 0x5f3   : > { %v9023_v12 = vpop.permute.xlu0 %5938 }
 0x5f4   : > { %10096 = vst [vmem:[#allocation27_spill] sm:$0xff] %v9023_v12 }
 0x5f7   : > { %v9025_v27 = vpop.permute.xlu0 %6162 }
 0x5f8   : > { %10097 = vst [vmem:[#allocation28_spill] sm:$0xff] %v9025_v27 }
 0x5fb   : > { %v9027_v59 = vpop.permute.xlu0 %6172 }
 0x5fc   : > { %10098 = vst [vmem:[#allocation29_spill] sm:$0xff] %v9027_v59 }
 0x5ff   : > { %v1813_v44 = vpop.permute.xlu0 %1812 }
 0x600   : > { %v9030_v45 = vrot.slane %v1813_v44, %v10079_v35 }
 0x66a   : > { %v1888_v17 = vpop.f32.mrb[40].mxu0 }
 0x66b   : > { %v1889_v1 = vadd.f32 %v1888_v17, %v9030_v45  ;;  %v1959_v19 = vpop.f32.mrb[40].mxu1  ;;  %v1890_v4 = vpop.f32.mrb[41].mxu0 }
 0x66c   : > { %v1960_v8 = vadd.f32 %v1959_v19, %v9030_v45  ;;  %v1891_v3 = vadd.f32 %v1890_v4, %v9030_v45  ;;  %v1961_v38 = vpop.f32.mrb[41].mxu1 }
 0x66d   : > { %v1962_v62 = vadd.f32 %v1961_v38, %v9030_v45  ;;  %v2192_v38 = vpop.permute.xlu1 %2191 }
 0x66e   : > { %v1968_v55 = vcombine.low %v1889_v1, %v1891_v3 }
 0x66f   : > { %v1969_v31 = vcombine.low %v1960_v8, %v1962_v62 }
 0x670   : > { %v1976_v25 = vrot.slane %v1968_v55, %v9036_v40 }
 0x671   : > { %v1983_v30 = vrot.slane %v1969_v31, %v9036_v40 }
 0x672   : > { %v2282_v44 = vpop.f32.mrb[42].mxu0 }
 0x673   : > { %v1984_v17 = vcombine.low %v1976_v25, %v1983_v30  ;;  %v2283_v59 = vadd.f32 %v2282_v44, %v2187_v34  ;;  %v2371_v27 = vpop.f32.mrb[42].mxu1  ;;  %v2284_v12 = vpop.f32.mrb[43].mxu0 }
 0x674   : > { %v2372_v1 = vadd.f32 %v2371_v27, %v2187_v34  ;;  %v2285_v4 = vadd.f32 %v2284_v12, %v2187_v34  ;;  %v2373_v8 = vpop.f32.mrb[43].mxu1 }
 0x675   : > { %v1991_v3 = vrot.slane %v1984_v17, %v9036_v40  ;;  %7559 = vtanh.f32 %v2283_v59  ;;  %v2374_v32 = vadd.f32 %v2373_v8, %v2187_v34 }
 0x676   : > { %7561 = vtanh.f32 %v2372_v1  ;;  %v2288_v62 = vpop.f32.mrb[44].mxu0 }
 0x677   : > { %1997 = vst.msk [vmem:[%s9045_s18] sm:$0xf] %vm9048_vm1, %v1991_v3  ;;  %7563 = vtanh.f32 %v2285_v4  ;;  %v2289_v55 = vadd.f32 %v2288_v62, %v2192_v38  ;;  %v2377_v31 = vpop.f32.mrb[44].mxu1  ;;  %v2290_v25 = vpop.f32.mrb[45].mxu0 }
 0x678   : > { %7565 = vtanh.f32 %v2374_v32  ;;  %v2378_v30 = vadd.f32 %v2377_v31, %v2192_v38  ;;  %v2291_v44 = vadd.f32 %v2290_v25, %v2192_v38  ;;  %v2379_v27 = vpop.f32.mrb[45].mxu1  ;;  %v2202_v32 = vpop.permute.xlu1 %2201 }
 0x679   : > { %7567 = vtanh.f32 %v2289_v55  ;;  %v2380_v12 = vadd.f32 %v2379_v27, %v2192_v38 }
 0x67a   : > { %7569 = vtanh.f32 %v2378_v30  ;;  %v2294_v17 = vpop.f32.mrb[46].mxu0 }
 0x67b   : > { %7571 = vtanh.f32 %v2291_v44  ;;  %v2295_v34 = vadd.f32 %v2294_v17, %v8971_v13  ;;  %v2383_v59 = vpop.f32.mrb[46].mxu1  ;;  %v2296_v58 = vpop.f32.mrb[47].mxu0 }
 0x67c   : > { %7573 = vtanh.f32 %v2380_v12  ;;  %v2384_v1 = vadd.f32 %v2383_v59, %v8971_v13  ;;  %v2297_v4 = vadd.f32 %v2296_v58, %v8971_v13  ;;  %v2385_v8 = vpop.f32.mrb[47].mxu1 }
 0x67d   : > { %7575 = vtanh.f32 %v2295_v34  ;;  %v2386_v3 = vadd.f32 %v2385_v8, %v8971_v13 }
 0x67e   : > { %7577 = vtanh.f32 %v2384_v1  ;;  %v2300_v62 = vpop.f32.mrb[48].mxu0 }
 0x67f   : > { %v7560_v38 = vpop.eup %7559  ;;  %7579 = vtanh.f32 %v2297_v4  ;;  %v2301_v55 = vadd.f32 %v2300_v62, %v2202_v32  ;;  %v2389_v31 = vpop.f32.mrb[48].mxu1 }
 0x680   : > { %v2302_v25 = vpop.f32.mrb[49].mxu0  ;;  %v7562_v30 = vpop.eup %7561  ;;  %7581 = vtanh.f32 %v2386_v3  ;;  %v2390_v44 = vadd.f32 %v2389_v31, %v2202_v32 }
 0x681   : > { %v2303_v27 = vadd.f32 %v2302_v25, %v2202_v32  ;;  %v2391_v12 = vpop.f32.mrb[49].mxu1  ;;  %v7564_v17 = vpop.eup %7563  ;;  %7583 = vtanh.f32 %v2301_v55 }
 0x682   : > { %v2392_v59 = vadd.f32 %v2391_v12, %v2202_v32  ;;  %v7566_v58 = vpop.eup %7565  ;;  %7585 = vtanh.f32 %v2390_v44 }
 0x683   : > { %v7568_v34 = vpop.eup %7567  ;;  %7587 = vtanh.f32 %v2303_v27 }
 0x684   : > { %v7570_v13 = vpop.eup %7569  ;;  %7589 = vtanh.f32 %v2392_v59  ;;  %v7044_v1 = vpack.c.bf16 %v7568_v34, %v7560_v38 }
 0x685   : > { %v7572_v8 = vpop.eup %7571  ;;  %v7052_v4 = vpack.c.bf16 %v7570_v13, %v7562_v30  ;;  %v6717_v30 = vld [vmem:[%s9983_s5 + $0x38] sm:$0xff] }
 0x686   : > { %v7574_v62 = vpop.eup %7573  ;;  %v7042_v42 = vpack.c.bf16 %v7572_v8, %v7564_v17 }
 0x687   : > { %v7576_v22 = vpop.eup %7575  ;;  %v7050_v29 = vpack.c.bf16 %v7574_v62, %v7566_v58 }
 0x688   : > { %v7578_v3 = vpop.eup %7577  ;;  %7043 = vmatprep.subr.bf16.mxu0 %v7042_v42  ;;  %v6714_v42 = vld [vmem:[%s9983_s5 + $0x20] sm:$0xff] }
 0x689   : > { %v7580_v31 = vpop.eup %7579  ;;  %7051 = vmatprep.subr.bf16.mxu1 %v7050_v29  ;;  %7045 = vmatpush1.bf16.msra.mxu0 %v7044_v1  ;;  %v6715_v29 = vld [vmem:[%s9983_s5 + $0x28] sm:$0xff] }
 0x68a   : > { %v7582_v55 = vpop.eup %7581  ;;  %7053 = vmatpush1.bf16.msra.mxu1 %v7052_v4 }
 0x68b   : > { %v7584_v32 = vpop.eup %7583 }
 0x68c   : > { %v7586_v25 = vpop.eup %7585  ;;  %v7048_v44 = vpack.c.bf16 %v7584_v32, %v7576_v22  ;;  %v6716_v22 = vld [vmem:[%s9983_s5 + $0x30] sm:$0xff] }
 0x68d   : > { %v7588_v27 = vpop.eup %7587  ;;  %v7056_v12 = vpack.c.bf16 %v7586_v25, %v7578_v3 }
 0x68e   : > { %v7590_v59 = vpop.eup %7589  ;;  %v7046_v38 = vpack.c.bf16 %v7588_v27, %v7580_v31  ;;  %v2426_v31 = vpop.permute.xlu1 %2425 }
 0x68f   : > { %v7054_v34 = vpack.c.bf16 %v7590_v59, %v7582_v55 }
 0x690   : > { %7047 = vmatprep.subr.bf16.mxu0 %v7046_v38 }
 0x691   : > { %7055 = vmatprep.subr.bf16.mxu1 %v7054_v34  ;;  %7049 = vmatpush1.bf16.msra.mxu0 %v7048_v44 }
 0x692   : > { %7057 = vmatpush1.bf16.msra.mxu1 %v7056_v12 }
 0x694   : > { %6722 = vmatmul.mubr.msk.f32.vlgmr.msra.gmra.mrb[50].mxu0 %vm659_vm0, %v6714_v42 }
 0x695   : > { %6726 = vmatmul.mubr.msk.f32.vlgmr.msra.gmra.mrb[50].mxu1 %vm659_vm0, %v6714_v42  ;;  %2520 = vmatprep.mubr.f32.mxu0 %v10075_v47 }
 0x696   : > { %2609 = vmatprep.mubr.f32.mxu1 %v10075_v47 }
 0x698   : > { %6723 = vmatmul.mubr.msk.f32.gmra.mrb[52].mxu0 %vm659_vm0, %v6715_v29 }
 0x699   : > { %6727 = vmatmul.mubr.msk.f32.gmra.mrb[52].mxu1 %vm659_vm0, %v6715_v29  ;;  %2526 = vmatprep.mubr.f32.mxu0 %v10075_v47 }
 0x69a   : > { %2615 = vmatprep.mubr.f32.mxu1 %v10075_v47 }
 0x69c   : > { %6724 = vmatmul.mubr.msk.f32.gmra.mrb[54].mxu0 %vm659_vm0, %v6716_v22 }
 0x69d   : > { %6728 = vmatmul.mubr.msk.f32.gmra.mrb[54].mxu1 %vm659_vm0, %v6716_v22  ;;  %2532 = vmatprep.mubr.f32.mxu0 %v10075_v47 }
 0x69e   : > { %2621 = vmatprep.mubr.f32.mxu1 %v10075_v47 }
 0x6a0   : > { %6725 = vmatmul.mubr.msk.f32.gmra.mrb[56].mxu0 %vm659_vm0, %v6717_v30 }
 0x6a1   : > { %6729 = vmatmul.mubr.msk.f32.gmra.mrb[56].mxu1 %vm659_vm0, %v6717_v30  ;;  %2748 = vmatprep.mubr.f32.mxu0 %v10075_v47 }
 0x6a2   : > { %2837 = vmatprep.mubr.f32.mxu1 %v10075_v47 }
 0x767   : > { %v2516_v17 = vpop.f32.mrb[50].mxu0 }
 0x768   : > { %v2517_v58 = vadd.f32 %v2516_v17, %v8973_v49  ;;  %v2605_v13 = vpop.f32.mrb[50].mxu1  ;;  %v2518_v1 = vpop.f32.mrb[51].mxu0 }
 0x769   : > { %v2606_v8 = vadd.f32 %v2605_v13, %v8973_v49  ;;  %v2519_v4 = vadd.f32 %v2518_v1, %v8973_v49  ;;  %v2607_v62 = vpop.f32.mrb[51].mxu1  ;;  %v2436_v13 = vpop.permute.xlu1 %2435 }
 0x76a   : > { %7591 = vtanh.f32 %v2517_v58  ;;  %v2608_v3 = vadd.f32 %v2607_v62, %v8973_v49 }
 0x76b   : > { %7593 = vtanh.f32 %v2606_v8  ;;  %v2522_v55 = vpop.f32.mrb[52].mxu0 }
 0x76c   : > { %7595 = vtanh.f32 %v2519_v4  ;;  %v2523_v32 = vadd.f32 %v2522_v55, %v2426_v31  ;;  %v2611_v25 = vpop.f32.mrb[52].mxu1  ;;  %v2524_v44 = vpop.f32.mrb[53].mxu0 }
 0x76d   : > { %7597 = vtanh.f32 %v2608_v3  ;;  %v2612_v27 = vadd.f32 %v2611_v25, %v2426_v31  ;;  %v2525_v12 = vadd.f32 %v2524_v44, %v2426_v31  ;;  %v2613_v59 = vpop.f32.mrb[53].mxu1 }
 0x76e   : > { %7599 = vtanh.f32 %v2523_v32  ;;  %v2614_v38 = vadd.f32 %v2613_v59, %v2426_v31 }
 0x76f   : > { %7601 = vtanh.f32 %v2612_v27  ;;  %v2528_v34 = vpop.f32.mrb[54].mxu0 }
 0x770   : > { %7603 = vtanh.f32 %v2525_v12  ;;  %v2529_v42 = vadd.f32 %v2528_v34, %v8975_v60  ;;  %v2617_v29 = vpop.f32.mrb[54].mxu1  ;;  %v2530_v49 = vpop.f32.mrb[55].mxu0 }
 0x771   : > { %7605 = vtanh.f32 %v2614_v38  ;;  %v2618_v22 = vadd.f32 %v2617_v29, %v8975_v60  ;;  %v2531_v30 = vadd.f32 %v2530_v49, %v8975_v60  ;;  %v2619_v17 = vpop.f32.mrb[55].mxu1 }
 0x772   : > { %7607 = vtanh.f32 %v2529_v42  ;;  %v2620_v58 = vadd.f32 %v2619_v17, %v8975_v60 }
 0x773   : > { %7609 = vtanh.f32 %v2618_v22  ;;  %v2534_v1 = vpop.f32.mrb[56].mxu0 }
 0x774   : > { %v7592_v8 = vpop.eup %7591  ;;  %7611 = vtanh.f32 %v2531_v30  ;;  %v2535_v4 = vadd.f32 %v2534_v1, %v2436_v13  ;;  %v2623_v62 = vpop.f32.mrb[56].mxu1 }
 0x775   : > { %v2536_v3 = vpop.f32.mrb[57].mxu0  ;;  %v7594_v31 = vpop.eup %7593  ;;  %7613 = vtanh.f32 %v2620_v58  ;;  %v2624_v55 = vadd.f32 %v2623_v62, %v2436_v13 }
 0x776   : > { %v2537_v32 = vadd.f32 %v2536_v3, %v2436_v13  ;;  %v2625_v25 = vpop.f32.mrb[57].mxu1  ;;  %v7596_v44 = vpop.eup %7595  ;;  %7615 = vtanh.f32 %v2535_v4 }
 0x777   : > { %v2626_v27 = vadd.f32 %v2625_v25, %v2436_v13  ;;  %v7598_v12 = vpop.eup %7597  ;;  %7617 = vtanh.f32 %v2624_v55 }
 0x778   : > { %v7600_v59 = vpop.eup %7599  ;;  %7619 = vtanh.f32 %v2537_v32 }
 0x779   : > { %v7602_v60 = vpop.eup %7601  ;;  %7621 = vtanh.f32 %v2626_v27  ;;  %v7060_v38 = vpack.c.bf16 %v7600_v59, %v7592_v8  ;;  %v6732_v27 = vld [vmem:[%s9983_s5 + $0x50] sm:$0xff] }
 0x77a   : > { %v7604_v34 = vpop.eup %7603  ;;  %v7068_v42 = vpack.c.bf16 %v7602_v60, %v7594_v31  ;;  %v6730_v31 = vld [vmem:[%s9983_s5 + $0x40] sm:$0xff] }
 0x77b   : > { %v7606_v29 = vpop.eup %7605  ;;  %v7058_v49 = vpack.c.bf16 %v7604_v34, %v7596_v44  ;;  %v6731_v44 = vld [vmem:[%s9983_s5 + $0x48] sm:$0xff] }
 0x77c   : > { %v7608_v22 = vpop.eup %7607  ;;  %v7066_v30 = vpack.c.bf16 %v7606_v29, %v7598_v12  ;;  %v6733_v12 = vld [vmem:[%s9983_s5 + $0x58] sm:$0xff] }
 0x77d   : > { %v7610_v17 = vpop.eup %7609  ;;  %7059 = vmatprep.subr.bf16.mxu0 %v7058_v49 }
 0x77e   : > { %v7612_v58 = vpop.eup %7611  ;;  %7067 = vmatprep.subr.bf16.mxu1 %v7066_v30  ;;  %7061 = vmatpush1.bf16.msra.mxu0 %v7060_v38  ;;  %v2660_v30 = vpop.permute.xlu1 %2659 }
 0x77f   : > { %v7614_v1 = vpop.eup %7613  ;;  %7069 = vmatpush1.bf16.msra.mxu1 %v7068_v42 }
 0x780   : > { %v7616_v13 = vpop.eup %7615 }
 0x781   : > { %v7618_v4 = vpop.eup %7617  ;;  %v7064_v62 = vpack.c.bf16 %v7616_v13, %v7608_v22 }
 0x782   : > { %v7620_v3 = vpop.eup %7619  ;;  %v7072_v55 = vpack.c.bf16 %v7618_v4, %v7610_v17 }
 0x783   : > { %v7622_v32 = vpop.eup %7621  ;;  %v7062_v8 = vpack.c.bf16 %v7620_v3, %v7612_v58 }
 0x784   : > { %v7070_v25 = vpack.c.bf16 %v7622_v32, %v7614_v1 }
 0x785   : > { %7063 = vmatprep.subr.bf16.mxu0 %v7062_v8 }
 0x786   : > { %7071 = vmatprep.subr.bf16.mxu1 %v7070_v25  ;;  %7065 = vmatpush1.bf16.msra.mxu0 %v7064_v62 }
 0x787   : > { %7073 = vmatpush1.bf16.msra.mxu1 %v7072_v55 }
 0x789   : > { %6738 = vmatmul.mubr.msk.f32.vlgmr.msra.gmra.mrb[58].mxu0 %vm659_vm0, %v6730_v31 }
 0x78a   : > { %6742 = vmatmul.mubr.msk.f32.vlgmr.msra.gmra.mrb[58].mxu1 %vm659_vm0, %v6730_v31  ;;  %2754 = vmatprep.mubr.f32.mxu0 %v10075_v47 }
 0x78b   : > { %2843 = vmatprep.mubr.f32.mxu1 %v10075_v47 }
 0x78d   : > { %6739 = vmatmul.mubr.msk.f32.gmra.mrb[60].mxu0 %vm659_vm0, %v6731_v44 }
 0x78e   : > { %6743 = vmatmul.mubr.msk.f32.gmra.mrb[60].mxu1 %vm659_vm0, %v6731_v44  ;;  %2760 = vmatprep.mubr.f32.mxu0 %v10075_v47 }
 0x78f   : > { %2849 = vmatprep.mubr.f32.mxu1 %v10075_v47 }
 0x791   : > { %6740 = vmatmul.mubr.msk.f32.gmra.mrb[62].mxu0 %vm659_vm0, %v6732_v27 }
 0x792   : > { %6744 = vmatmul.mubr.msk.f32.gmra.mrb[62].mxu1 %vm659_vm0, %v6732_v27  ;;  %2766 = vmatprep.mubr.f32.mxu0 %v10075_v47 }
 0x793   : > { %2855 = vmatprep.mubr.f32.mxu1 %v10075_v47 }
 0x795   : > { %6741 = vmatmul.mubr.msk.f32.gmra.mrb[64].mxu0 %vm659_vm0, %v6733_v12 }
 0x796   : > { %6745 = vmatmul.mubr.msk.f32.gmra.mrb[64].mxu1 %vm659_vm0, %v6733_v12  ;;  %2982 = vmatprep.mubr.f32.mxu0 %v10075_v47 }
 0x797   : > { %3071 = vmatprep.mubr.f32.mxu1 %v10075_v47 }
 0x85c   : > { %v2750_v59 = vpop.f32.mrb[58].mxu0 }
 0x85d   : > { %v2751_v60 = vadd.f32 %v2750_v59, %v8977_v23  ;;  %v2839_v38 = vpop.f32.mrb[58].mxu1  ;;  %v2752_v34 = vpop.f32.mrb[59].mxu0 }
 0x85e   : > { %v2840_v42 = vadd.f32 %v2839_v38, %v8977_v23  ;;  %v2753_v29 = vadd.f32 %v2752_v34, %v8977_v23  ;;  %v2841_v49 = vpop.f32.mrb[59].mxu1  ;;  %v2670_v59 = vpop.permute.xlu1 %2669 }
 0x85f   : > { %7623 = vtanh.f32 %v2751_v60  ;;  %v2842_v22 = vadd.f32 %v2841_v49, %v8977_v23 }
 0x860   : > { %7625 = vtanh.f32 %v2840_v42  ;;  %v2756_v17 = vpop.f32.mrb[60].mxu0 }
 0x861   : > { %7627 = vtanh.f32 %v2753_v29  ;;  %v2757_v58 = vadd.f32 %v2756_v17, %v2660_v30  ;;  %v2845_v1 = vpop.f32.mrb[60].mxu1  ;;  %v2758_v13 = vpop.f32.mrb[61].mxu0 }
 0x862   : > { %7629 = vtanh.f32 %v2842_v22  ;;  %v2846_v4 = vadd.f32 %v2845_v1, %v2660_v30  ;;  %v2759_v62 = vadd.f32 %v2758_v13, %v2660_v30  ;;  %v2847_v3 = vpop.f32.mrb[61].mxu1 }
 0x863   : > { %7631 = vtanh.f32 %v2757_v58  ;;  %v2848_v55 = vadd.f32 %v2847_v3, %v2660_v30 }
 0x864   : > { %7633 = vtanh.f32 %v2846_v4  ;;  %v2762_v32 = vpop.f32.mrb[62].mxu0 }
 0x865   : > { %7635 = vtanh.f32 %v2759_v62  ;;  %v2763_v8 = vadd.f32 %v2762_v32, %v8979_v56  ;;  %v2851_v25 = vpop.f32.mrb[62].mxu1  ;;  %v2764_v23 = vpop.f32.mrb[63].mxu0 }
 0x866   : > { %7637 = vtanh.f32 %v2848_v55  ;;  %v2852_v31 = vadd.f32 %v2851_v25, %v8979_v56  ;;  %v2765_v44 = vadd.f32 %v2764_v23, %v8979_v56  ;;  %v2853_v27 = vpop.f32.mrb[63].mxu1 }
 0x867   : > { %7639 = vtanh.f32 %v2763_v8  ;;  %v2854_v12 = vadd.f32 %v2853_v27, %v8979_v56 }
 0x868   : > { %7641 = vtanh.f32 %v2852_v31  ;;  %v2768_v60 = vpop.f32.mrb[64].mxu0 }
 0x869   : > { %v7624_v38 = vpop.eup %7623  ;;  %7643 = vtanh.f32 %v2765_v44  ;;  %v2769_v34 = vadd.f32 %v2768_v60, %v2670_v59  ;;  %v2857_v42 = vpop.f32.mrb[64].mxu1 }
 0x86a   : > { %v2770_v29 = vpop.f32.mrb[65].mxu0  ;;  %v7626_v49 = vpop.eup %7625  ;;  %7645 = vtanh.f32 %v2854_v12  ;;  %v2858_v22 = vadd.f32 %v2857_v42, %v2670_v59 }
 0x86b   : > { %v2771_v30 = vadd.f32 %v2770_v29, %v2670_v59  ;;  %v2859_v17 = vpop.f32.mrb[65].mxu1  ;;  %v7628_v58 = vpop.eup %7627  ;;  %7647 = vtanh.f32 %v2769_v34 }
 0x86c   : > { %v2860_v1 = vadd.f32 %v2859_v17, %v2670_v59  ;;  %v7630_v13 = vpop.eup %7629  ;;  %7649 = vtanh.f32 %v2858_v22  ;;  %v6748_v17 = vld [vmem:[%s9983_s5 + $0x70] sm:$0xff] }
 0x86d   : > { %v7632_v4 = vpop.eup %7631  ;;  %7651 = vtanh.f32 %v2771_v30  ;;  %v6747_v30 = vld [vmem:[%s9983_s5 + $0x68] sm:$0xff] }
 0x86e   : > { %v7634_v56 = vpop.eup %7633  ;;  %7653 = vtanh.f32 %v2860_v1  ;;  %v7076_v62 = vpack.c.bf16 %v7632_v4, %v7624_v38 }
 0x86f   : > { %v7636_v3 = vpop.eup %7635  ;;  %v7084_v55 = vpack.c.bf16 %v7634_v56, %v7626_v49  ;;  %v6746_v49 = vld [vmem:[%s9983_s5 + $0x60] sm:$0xff] }
 0x870   : > { %v7638_v32 = vpop.eup %7637  ;;  %v7074_v8 = vpack.c.bf16 %v7636_v3, %v7628_v58  ;;  %v6749_v58 = vld [vmem:[%s9983_s5 + $0x78] sm:$0xff] }
 0x871   : > { %v7640_v25 = vpop.eup %7639  ;;  %v7082_v23 = vpack.c.bf16 %v7638_v32, %v7630_v13 }
 0x872   : > { %v7642_v31 = vpop.eup %7641  ;;  %7075 = vmatprep.subr.bf16.mxu0 %v7074_v8  ;;  %v2894_v8 = vpop.permute.xlu1 %2893 }
 0x873   : > { %v7644_v44 = vpop.eup %7643  ;;  %7083 = vmatprep.subr.bf16.mxu1 %v7082_v23  ;;  %7077 = vmatpush1.bf16.msra.mxu0 %v7076_v62 }
 0x874   : > { %v7646_v27 = vpop.eup %7645  ;;  %7085 = vmatpush1.bf16.msra.mxu1 %v7084_v55 }
 0x875   : > { %v7648_v12 = vpop.eup %7647 }
 0x876   : > { %v7650_v59 = vpop.eup %7649  ;;  %v7080_v60 = vpack.c.bf16 %v7648_v12, %v7640_v25 }
 0x877   : > { %v7652_v34 = vpop.eup %7651  ;;  %v7088_v42 = vpack.c.bf16 %v7650_v59, %v7642_v31 }
 0x878   : > { %v7654_v29 = vpop.eup %7653  ;;  %v7078_v38 = vpack.c.bf16 %v7652_v34, %v7644_v44 }
 0x879   : > { %v7086_v22 = vpack.c.bf16 %v7654_v29, %v7646_v27 }
 0x87a   : > { %7079 = vmatprep.subr.bf16.mxu0 %v7078_v38 }
 0x87b   : > { %7087 = vmatprep.subr.bf16.mxu1 %v7086_v22  ;;  %7081 = vmatpush1.bf16.msra.mxu0 %v7080_v60 }
 0x87c   : > { %7089 = vmatpush1.bf16.msra.mxu1 %v7088_v42 }
 0x87e   : > { %6754 = vmatmul.mubr.msk.f32.vlgmr.msra.gmra.mrb[66].mxu0 %vm659_vm0, %v6746_v49 }
 0x87f   : > { %6758 = vmatmul.mubr.msk.f32.vlgmr.msra.gmra.mrb[66].mxu1 %vm659_vm0, %v6746_v49  ;;  %2988 = vmatprep.mubr.f32.mxu0 %v10075_v47 }
 0x880   : > { %3077 = vmatprep.mubr.f32.mxu1 %v10075_v47 }
 0x882   : > { %6755 = vmatmul.mubr.msk.f32.gmra.mrb[68].mxu0 %vm659_vm0, %v6747_v30 }
 0x883   : > { %6759 = vmatmul.mubr.msk.f32.gmra.mrb[68].mxu1 %vm659_vm0, %v6747_v30  ;;  %2994 = vmatprep.mubr.f32.mxu0 %v10075_v47 }
 0x884   : > { %3083 = vmatprep.mubr.f32.mxu1 %v10075_v47 }
 0x886   : > { %6756 = vmatmul.mubr.msk.f32.gmra.mrb[70].mxu0 %vm659_vm0, %v6748_v17 }
 0x887   : > { %6760 = vmatmul.mubr.msk.f32.gmra.mrb[70].mxu1 %vm659_vm0, %v6748_v17  ;;  %3000 = vmatprep.mubr.f32.mxu0 %v10075_v47  ;;  %v2904_v17 = vpop.permute.xlu1 %2903 }
 0x888   : > { %3089 = vmatprep.mubr.f32.mxu1 %v10075_v47 }
 0x88a   : > { %6757 = vmatmul.mubr.msk.f32.gmra.mrb[72].mxu0 %vm659_vm0, %v6749_v58 }
 0x88b   : > { %6761 = vmatmul.mubr.msk.f32.gmra.mrb[72].mxu1 %vm659_vm0, %v6749_v58  ;;  %3216 = vmatprep.mubr.f32.mxu0 %v10075_v47 }
 0x88c   : > { %3305 = vmatprep.mubr.f32.mxu1 %v10075_v47 }
 0x951   : > { %v2984_v1 = vpop.f32.mrb[66].mxu0 }
 0x952   : > { %v2985_v13 = vadd.f32 %v2984_v1, %v8981_v63  ;;  %v3073_v4 = vpop.f32.mrb[66].mxu1  ;;  %v2986_v56 = vpop.f32.mrb[67].mxu0 }
 0x953   : > { %v3074_v62 = vadd.f32 %v3073_v4, %v8981_v63  ;;  %v2987_v3 = vadd.f32 %v2986_v56, %v8981_v63  ;;  %v3075_v55 = vpop.f32.mrb[67].mxu1 }
 0x954   : > { %7655 = vtanh.f32 %v2985_v13  ;;  %v3076_v32 = vadd.f32 %v3075_v55, %v8981_v63 }
 0x955   : > { %7657 = vtanh.f32 %v3074_v62  ;;  %v2990_v25 = vpop.f32.mrb[68].mxu0 }
 0x956   : > { %7659 = vtanh.f32 %v2987_v3  ;;  %v2991_v23 = vadd.f32 %v2990_v25, %v2894_v8  ;;  %v3079_v31 = vpop.f32.mrb[68].mxu1  ;;  %v2992_v44 = vpop.f32.mrb[69].mxu0 }
 0x957   : > { %7661 = vtanh.f32 %v3076_v32  ;;  %v3080_v27 = vadd.f32 %v3079_v31, %v2894_v8  ;;  %v2993_v12 = vadd.f32 %v2992_v44, %v2894_v8  ;;  %v3081_v59 = vpop.f32.mrb[69].mxu1 }
 0x958   : > { %7663 = vtanh.f32 %v2991_v23  ;;  %v3082_v60 = vadd.f32 %v3081_v59, %v2894_v8 }
 0x959   : > { %7665 = vtanh.f32 %v3080_v27  ;;  %v2996_v34 = vpop.f32.mrb[70].mxu0 }
 0x95a   : > { %7667 = vtanh.f32 %v2993_v12  ;;  %v2997_v42 = vadd.f32 %v2996_v34, %v8983_v51  ;;  %v3085_v29 = vpop.f32.mrb[70].mxu1  ;;  %v2998_v63 = vpop.f32.mrb[71].mxu0 }
 0x95b   : > { %7669 = vtanh.f32 %v3082_v60  ;;  %v3086_v38 = vadd.f32 %v3085_v29, %v8983_v51  ;;  %v2999_v22 = vadd.f32 %v2998_v63, %v8983_v51  ;;  %v3087_v49 = vpop.f32.mrb[71].mxu1 }
 0x95c   : > { %7671 = vtanh.f32 %v2997_v42  ;;  %v3088_v30 = vadd.f32 %v3087_v49, %v8983_v51 }
 0x95d   : > { %7673 = vtanh.f32 %v3086_v38  ;;  %v3002_v58 = vpop.f32.mrb[72].mxu0 }
 0x95e   : > { %v7656_v1 = vpop.eup %7655  ;;  %7675 = vtanh.f32 %v2999_v22  ;;  %v3003_v13 = vadd.f32 %v3002_v58, %v2904_v17  ;;  %v3091_v4 = vpop.f32.mrb[72].mxu1 }
 0x95f   : > { %v3004_v56 = vpop.f32.mrb[73].mxu0  ;;  %v7658_v62 = vpop.eup %7657  ;;  %7677 = vtanh.f32 %v3088_v30  ;;  %v3092_v3 = vadd.f32 %v3091_v4, %v2904_v17 }
 0x960   : > { %v3005_v55 = vadd.f32 %v3004_v56, %v2904_v17  ;;  %v3093_v32 = vpop.f32.mrb[73].mxu1  ;;  %v7660_v8 = vpop.eup %7659  ;;  %7679 = vtanh.f32 %v3003_v13  ;;  %v6762_v56 = vld [vmem:[%s9983_s5 + $0x80] sm:$0xff] }
 0x961   : > { %v3094_v25 = vadd.f32 %v3093_v32, %v2904_v17  ;;  %v7662_v23 = vpop.eup %7661  ;;  %7681 = vtanh.f32 %v3092_v3  ;;  %v6764_v3 = vld [vmem:[%s9983_s5 + $0x90] sm:$0xff]  ;;  %v3518_v32 = vld [vmem:[%s8380_s14 + $0x8] sm:$0xf] }
 0x962   : > { %v7664_v31 = vpop.eup %7663  ;;  %7683 = vtanh.f32 %v3005_v55  ;;  %v6765_v55 = vld [vmem:[%s9983_s5 + $0x98] sm:$0xff] }
 0x963   : > { %v7666_v51 = vpop.eup %7665  ;;  %7685 = vtanh.f32 %v3094_v25  ;;  %v7092_v44 = vpack.c.bf16 %v7664_v31, %v7656_v1  ;;  %v9199_v25 = vrot.slane %v3518_v32, %v10076_v57 }
 0x964   : > { %v7668_v27 = vpop.eup %7667  ;;  %v7100_v12 = vpack.c.bf16 %v7666_v51, %v7658_v62  ;;  %v6763_v62 = vld [vmem:[%s9983_s5 + $0x88] sm:$0xff]  ;;  %v9206_v51 = vrot.slane %v3518_v32, %v10077_v0 }
 0x965   : > { %v7670_v59 = vpop.eup %7669  ;;  %v7090_v60 = vpack.c.bf16 %v7668_v27, %v7660_v8  ;;  %v3519_v8 = vld [vmem:[%s8374_s30 + $0x8] sm:$0xf] }
 0x966   : > { %v7672_v34 = vpop.eup %7671  ;;  %v7098_v42 = vpack.c.bf16 %v7670_v59, %v7662_v23  ;;  %v3520_v23 = vld [vmem:[%s8391_s16 + $0x8] sm:$0xf]  ;;  %v9203_v31 = vrot.slane %v3519_v8, %v10076_v57  ;;  %v9211_v27 = vrot.slane %v3519_v8, %v10077_v0  ;;  %v3547_v59 = vmul.f32 %v9199_v25, %v10078_v50 }
 0x967   : > { %v7674_v29 = vpop.eup %7673  ;;  %7091 = vmatprep.subr.bf16.mxu0 %v7090_v60  ;;  %v9219_v60 = vrot.slane %v3520_v23, %v10076_v57 }
 0x968   : > { %v7676_v63 = vpop.eup %7675  ;;  %7099 = vmatprep.subr.bf16.mxu1 %v7098_v42  ;;  %7093 = vmatpush1.bf16.msra.mxu0 %v7092_v44  ;;  %v3543_v44 = vmul.f32 %v9199_v25, %v10080_v61  ;;  %v3580_v42 = vmul.f32 %v9203_v31, %v10083_v53 }
 0x969   : > { %v7678_v38 = vpop.eup %7677  ;;  %7101 = vmatpush1.bf16.msra.mxu1 %v7100_v12  ;;  %v9214_v12 = vrot.slane %v3518_v32, %v10079_v35 }
 0x96a   : > { %v7680_v22 = vpop.eup %7679 }
 0x96b   : > { %v7682_v49 = vpop.eup %7681  ;;  %v7096_v30 = vpack.c.bf16 %v7680_v22, %v7672_v34  ;;  %v9222_v34 = vrot.slane %v3519_v8, %v10079_v35  ;;  %v3584_v22 = vmul.f32 %v9203_v31, %v10081_v15 }
 0x96c   : > { %v7684_v17 = vpop.eup %7683  ;;  %v7104_v58 = vpack.c.bf16 %v7682_v49, %v7674_v29  ;;  %v3545_v29 = vmul.f32 %v9206_v51, %v10080_v61  ;;  %v3549_v49 = vmul.f32 %v9206_v51, %v10078_v50 }
 0x96d   : > { %v7686_v13 = vpop.eup %7685  ;;  %v7094_v1 = vpack.c.bf16 %v7684_v17, %v7676_v63  ;;  %v9229_v63 = vrot.slane %v3518_v32, %v10082_v46  ;;  %v9242_v17 = vrot.slane %v3520_v23, %v10079_v35  ;;  %v3583_v28 = vmul.f32 %v9222_v34, %v10081_v15 }
 0x96e   : > { %v7102_v4 = vpack.c.bf16 %v7686_v13, %v7678_v38  ;;  %v9232_v38 = vrot.slane %v3519_v8, %v10082_v46  ;;  %v3633_v13 = vmul.f32 %v9219_v60, %v10084_v43 }
 0x96f   : > { %7095 = vmatprep.subr.bf16.mxu0 %v7094_v1  ;;  %v3582_v1 = vmul.f32 %v9211_v27, %v10083_v53  ;;  %v3632_v26 = vmul.f32 %v9242_v17, %v10084_v43 }
 0x970   : > { %7103 = vmatprep.subr.bf16.mxu1 %v7102_v4  ;;  %7097 = vmatpush1.bf16.msra.mxu0 %v7096_v30  ;;  %v9239_v30 = vrot.slane %v3520_v23, %v10077_v0  ;;  %v3542_v4 = vmul.f32 %v9214_v12, %v10080_v61  ;;  %v3581_v52 = vmul.f32 %v9232_v38, %v10083_v53 }
 0x971   : > { %7105 = vmatpush1.bf16.msra.mxu1 %v7104_v58  ;;  %v3596_v58 = vadd.f32 %v3580_v42, %v3543_v44  ;;  %v3598_v32 = vadd.f32 %v3582_v1, %v3545_v29  ;;  %v3579_v44 = vmul.f32 %v9222_v34, %v10083_v53  ;;  %v3544_v42 = vmul.f32 %v9229_v63, %v10080_v61 }
 0x972   : > { %v3635_v8 = vmul.f32 %v9239_v30, %v10084_v43  ;;  %v3639_v39 = vmul.f32 %v9239_v30, %v10085_v54 }
 0x973   : > { %6770 = vmatmul.mubr.msk.f32.vlgmr.msra.gmra.mrb[74].mxu0 %vm659_vm0, %v6762_v56  ;;  %v3649_v29 = vadd.f32 %v3633_v13, %v3596_v58  ;;  %v3595_v1 = vadd.f32 %v3579_v44, %v3542_v4 }
 0x974   : > { %6774 = vmatmul.mubr.msk.f32.vlgmr.msra.gmra.mrb[74].mxu1 %vm659_vm0, %v6762_v56  ;;  %3222 = vmatprep.mubr.f32.mxu0 %v10075_v47  ;;  %v3600_v56 = vadd.f32 %v3584_v22, %v3547_v59  ;;  %v3637_v59 = vmul.f32 %v9219_v60, %v10085_v54 }
 0x975   : > { %3311 = vmatprep.mubr.f32.mxu1 %v10075_v47 }
 0x976   : > { %v3653_v24 = vadd.f32 %v3637_v59, %v3600_v56  ;;  %v3636_v56 = vmul.f32 %v9242_v17, %v10085_v54 }
 0x977   : > { %6771 = vmatmul.mubr.msk.f32.gmra.mrb[76].mxu0 %vm659_vm0, %v6763_v62 }
 0x978   : > { %6775 = vmatmul.mubr.msk.f32.gmra.mrb[76].mxu1 %vm659_vm0, %v6763_v62  ;;  %3228 = vmatprep.mubr.f32.mxu0 %v10075_v47  ;;  %v3586_v62 = vmul.f32 %v9211_v27, %v10081_v15  ;;  %v3669_v13 = vadd.f32 %v3653_v24, %v8521_v10 }
 0x979   : > { %3317 = vmatprep.mubr.f32.mxu1 %v10075_v47 }
 0x97a   : > { %v3602_v22 = vadd.f32 %v3586_v62, %v3549_v49  ;;  %v3585_v49 = vmul.f32 %v9232_v38, %v10081_v15  ;;  %v3665_v62 = vadd.f32 %v3649_v29, %v8563_v6 }
 0x97b   : > { %6772 = vmatmul.mubr.msk.f32.gmra.mrb[78].mxu0 %vm659_vm0, %v6764_v3 }
 0x97c   : > { %6776 = vmatmul.mubr.msk.f32.gmra.mrb[78].mxu1 %vm659_vm0, %v6764_v3  ;;  %3234 = vmatprep.mubr.f32.mxu0 %v10075_v47  ;;  %v3546_v3 = vmul.f32 %v9214_v12, %v10078_v50  ;;  %v3655_v4 = vadd.f32 %v3639_v39, %v3602_v22  ;;  %7687 = vtanh.f32 %v3665_v62  ;;  %v10103_v22 = vld [vmem:[#allocation17_spill] sm:$0xff] }
 0x97d   : > { %3323 = vmatprep.mubr.f32.mxu1 %v10075_v47  ;;  %7689 = vtanh.f32 %v3669_v13 }
 0x97e   : > { %v3599_v41 = vadd.f32 %v3583_v28, %v3546_v3  ;;  %v3648_v28 = vadd.f32 %v3632_v26, %v3595_v1  ;;  %v3671_v3 = vadd.f32 %v3655_v4, %v8521_v10 }
 0x97f   : > { %6773 = vmatmul.mubr.msk.f32.gmra.mrb[80].mxu0 %vm659_vm0, %v6765_v55 }
 0x980   : > { %6777 = vmatmul.mubr.msk.f32.gmra.mrb[80].mxu1 %vm659_vm0, %v6765_v55  ;;  %3410 = vmatprep.mubr.f32.mxu0 %v10075_v47  ;;  %v9255_v55 = vrot.slane %v3520_v23, %v10082_v46  ;;  %v3548_v23 = vmul.f32 %v9229_v63, %v10078_v50  ;;  %v3651_v46 = vadd.f32 %v3635_v8, %v3598_v32 }
 0x981   : > { %3481 = vmatprep.mubr.f32.mxu1 %v10075_v47  ;;  %v3597_v50 = vadd.f32 %v3581_v52, %v3544_v42  ;;  %v3652_v15 = vadd.f32 %v3636_v56, %v3599_v41  ;;  %v3664_v52 = vadd.f32 %v3648_v28, %v8563_v6  ;;  %v3588_v41 = vmul.f32 %v9203_v31, %v8489_v33  ;;  %v10106_v28 = vld [vmem:[#allocation9_spill] sm:$0xff] }
 0x982   : > { %v3634_v58 = vmul.f32 %v9255_v55, %v10084_v43  ;;  %v3601_v44 = vadd.f32 %v3585_v49, %v3548_v23  ;;  %v3667_v59 = vadd.f32 %v3651_v46, %v8563_v6  ;;  %v3638_v32 = vmul.f32 %v9255_v55, %v10085_v54 }
 0x983   : > { %v3668_v39 = vadd.f32 %v3652_v15, %v8521_v10  ;;  %v3551_v23 = vmul.f32 %v9199_v25, %v10103_v22  ;;  %v10105_v15 = vld [vmem:[#allocation20_spill] sm:$0xff] }
 0x984   : > { %v3650_v8 = vadd.f32 %v3634_v58, %v3597_v50  ;;  %v3654_v24 = vadd.f32 %v3638_v32, %v3601_v44  ;;  %7691 = vtanh.f32 %v3667_v59  ;;  %v10104_v50 = vld [vmem:[#allocation18_spill] sm:$0xff]  ;;  %v3592_v1 = vmul.f32 %v9203_v31, %v10105_v15 }
 0x985   : > { %7693 = vtanh.f32 %v3671_v3  ;;  %v3555_v29 = vmul.f32 %v9199_v25, %v10104_v50  ;;  %v3604_v44 = vadd.f32 %v3588_v41, %v3551_v23  ;;  %v3641_v25 = vmul.f32 %v9219_v60, %v10106_v28  ;;  %v3128_v3 = vpop.permute.xlu1 %3127 }
 0x986   : > { %v3666_v42 = vadd.f32 %v3650_v8, %v8563_v6  ;;  %v3670_v46 = vadd.f32 %v3654_v24, %v8521_v10  ;;  %7695 = vtanh.f32 %v3664_v52  ;;  %v3645_v31 = vmul.f32 %v9219_v60, %v8540_v5  ;;  %v9311_v24 = vpop.eup %7687 }
 0x987   : > { %7697 = vtanh.f32 %v3668_v39  ;;  %v3608_v52 = vadd.f32 %v3592_v1, %v3555_v29  ;;  %v3553_v8 = vmul.f32 %v9206_v51, %v10103_v22  ;;  %v3590_v39 = vmul.f32 %v9211_v27, %v8489_v33 }
 0x988   : > { %7699 = vtanh.f32 %v3666_v42  ;;  %v3557_v41 = vmul.f32 %v9206_v51, %v10104_v50  ;;  %v3594_v60 = vmul.f32 %v9211_v27, %v10105_v15  ;;  %v3593_v10 = vmul.f32 %v9232_v38, %v10105_v15 }
 0x989   : > { %7701 = vtanh.f32 %v3670_v46 }
 0xa46   : > { %v3218_v26 = vpop.f32.mrb[74].mxu0 }
 0xa47   : > { %v3219_v49 = vadd.f32 %v3218_v26, %v8985_v36  ;;  %v3307_v62 = vpop.f32.mrb[74].mxu1  ;;  %v3220_v58 = vpop.f32.mrb[75].mxu0 }
 0xa48   : > { %v3308_v13 = vadd.f32 %v3307_v62, %v8985_v36  ;;  %v3221_v4 = vadd.f32 %v3220_v58, %v8985_v36  ;;  %v3309_v56 = vpop.f32.mrb[75].mxu1  ;;  %v9317_v26 = vpop.eup %7689 }
 0xa49   : > { %7703 = vtanh.f32 %v3219_v49  ;;  %v3310_v59 = vadd.f32 %v3309_v56, %v8985_v36  ;;  %v3657_v49 = vadd.f32 %v3641_v25, %v3604_v44  ;;  %v9319_v62 = vpop.eup %7691 }
 0xa4a   : > { %7705 = vtanh.f32 %v3308_v13  ;;  %v3224_v32 = vpop.f32.mrb[76].mxu0  ;;  %v3661_v13 = vadd.f32 %v3645_v31, %v3608_v52  ;;  %v9323_v56 = vpop.eup %7693 }
 0xa4b   : > { %7707 = vtanh.f32 %v3221_v4  ;;  %v3225_v36 = vadd.f32 %v3224_v32, %v3128_v3  ;;  %v3313_v42 = vpop.f32.mrb[76].mxu1  ;;  %v3226_v46 = vpop.f32.mrb[77].mxu0  ;;  %v3643_v4 = vmul.f32 %v9239_v30, %v10106_v28  ;;  %v9326_v27 = vadd.f32 %v3657_v49, %v8579_v7 }
 0xa4c   : > { %7709 = vtanh.f32 %v3310_v59  ;;  %v3314_v23 = vadd.f32 %v3313_v42, %v3128_v3  ;;  %v3227_v29 = vadd.f32 %v3226_v46, %v3128_v3  ;;  %v3315_v1 = vpop.f32.mrb[77].mxu1  ;;  %v3606_v59 = vadd.f32 %v3590_v39, %v3553_v8  ;;  %v9330_v44 = vpop.eup %7695 }
 0xa4d   : > { %7711 = vtanh.f32 %v3225_v36  ;;  %v3316_v58 = vadd.f32 %v3315_v1, %v3128_v3  ;;  %v3647_v32 = vmul.f32 %v9239_v30, %v8540_v5  ;;  %v9334_v52 = vadd.f32 %v3661_v13, %v8590_v2  ;;  %v9336_v42 = vpop.eup %7697  ;;  %v3138_v49 = vpop.permute.xlu1 %3137 }
 0xa4e   : > { %7713 = vtanh.f32 %v3314_v23  ;;  %v3230_v51 = vpop.f32.mrb[78].mxu0  ;;  %v3610_v36 = vadd.f32 %v3594_v60, %v3557_v41  ;;  %v3550_v30 = vmul.f32 %v9214_v12, %v10103_v22  ;;  %v9342_v23 = vpop.eup %7699  ;;  %v3554_v1 = vmul.f32 %v9214_v12, %v10104_v50 }
 0xa4f   : > { %7715 = vtanh.f32 %v3227_v29  ;;  %v3231_v25 = vadd.f32 %v3230_v51, %v8987_v37  ;;  %v3319_v31 = vpop.f32.mrb[78].mxu1  ;;  %v3232_v3 = vpop.f32.mrb[79].mxu0  ;;  %v3587_v41 = vmul.f32 %v9222_v34, %v8489_v33  ;;  %v3659_v13 = vadd.f32 %v3643_v4, %v3606_v59 }
 0xa50   : > { %7717 = vtanh.f32 %v3316_v58  ;;  %v3320_v46 = vadd.f32 %v3319_v31, %v8987_v37  ;;  %v3233_v8 = vadd.f32 %v3232_v3, %v8987_v37  ;;  %v3321_v39 = vpop.f32.mrb[79].mxu1  ;;  %v9349_v60 = vpop.eup %7701  ;;  %v3591_v51 = vmul.f32 %v9222_v34, %v10105_v15 }
 0xa51   : > { %7719 = vtanh.f32 %v3231_v25  ;;  %v3322_v29 = vadd.f32 %v3321_v39, %v8987_v37  ;;  %v3556_v25 = vmul.f32 %v9229_v63, %v10104_v50  ;;  %v3589_v39 = vmul.f32 %v9232_v38, %v8489_v33 }
 0xa52   : > { %7721 = vtanh.f32 %v3320_v46  ;;  %v3236_v58 = vpop.f32.mrb[80].mxu0  ;;  %v3644_v34 = vmul.f32 %v9242_v17, %v8540_v5  ;;  %v3646_v33 = vmul.f32 %v9255_v55, %v8540_v5  ;;  %v3663_v38 = vadd.f32 %v3647_v32, %v3610_v36 }
 0xa53   : > { %v7704_v31 = vpop.eup %7703  ;;  %7723 = vtanh.f32 %v3233_v8  ;;  %v3237_v37 = vadd.f32 %v3236_v58, %v3138_v49  ;;  %v3325_v3 = vpop.f32.mrb[80].mxu1  ;;  %v3552_v58 = vmul.f32 %v9229_v63, %v10103_v22  ;;  %v3603_v15 = vadd.f32 %v3587_v41, %v3550_v30 }
 0xa54   : > { %v3238_v12 = vpop.f32.mrb[81].mxu0  ;;  %v7706_v46 = vpop.eup %7705  ;;  %7725 = vtanh.f32 %v3322_v29  ;;  %v3326_v4 = vadd.f32 %v3325_v3, %v3138_v49  ;;  %v3607_v29 = vadd.f32 %v3591_v51, %v3554_v1  ;;  %v3609_v53 = vadd.f32 %v3593_v10, %v3556_v25 }
 0xa55   : > { %v3239_v59 = vadd.f32 %v3238_v12, %v3138_v49  ;;  %v3327_v6 = vpop.f32.mrb[81].mxu1  ;;  %v7708_v50 = vpop.eup %7707  ;;  %7727 = vtanh.f32 %v3237_v37  ;;  %v3640_v12 = vmul.f32 %v9242_v17, %v10106_v28  ;;  %v3605_v43 = vadd.f32 %v3589_v39, %v3552_v58 }
 0xa56   : > { %v3328_v8 = vadd.f32 %v3327_v6, %v3138_v49  ;;  %v7710_v54 = vpop.eup %7709  ;;  %7729 = vtanh.f32 %v3326_v4  ;;  %v3679_v63 = vadd.f32 %v3663_v38, %v8590_v2  ;;  %v3660_v49 = vadd.f32 %v3644_v34, %v3607_v29 }
 0xa57   : > { %v7712_v3 = vpop.eup %7711  ;;  %7731 = vtanh.f32 %v3239_v59  ;;  %v3675_v4 = vadd.f32 %v3659_v13, %v8579_v7  ;;  %v3642_v32 = vmul.f32 %v9255_v55, %v10106_v28  ;;  %v3662_v36 = vadd.f32 %v3646_v33, %v3609_v53 }
 0xa58   : > { %v7714_v37 = vpop.eup %7713  ;;  %7733 = vtanh.f32 %v3328_v8  ;;  %v7108_v6 = vpack.c.bf16 %v7712_v3, %v7704_v31  ;;  %v3656_v17 = vadd.f32 %v3640_v12, %v3603_v15  ;;  %v3676_v10 = vadd.f32 %v3660_v49, %v8590_v2  ;;  %v8103_v12 = vld [vmem:[%s9985_s7] sm:$0x1]  ;;  %v3699_v49 = vld [vmem:[%s9983_s5 + $0x18] sm:$0xff] }
 0xa59   : > { %v7716_v22 = vpop.eup %7715  ;;  %v7116_v5 = vpack.c.bf16 %v7714_v37, %v7706_v46  ;;  %7735 = vtanh.f32 %v9326_v27  ;;  %v3658_v25 = vadd.f32 %v3642_v32, %v3605_v43  ;;  %v3678_v31 = vadd.f32 %v3662_v36, %v8590_v2 }
 0xa5a   : > { %v7718_v30 = vpop.eup %7717  ;;  %v7106_v1 = vpack.c.bf16 %v7716_v22, %v7708_v50  ;;  %7737 = vtanh.f32 %v9334_v52  ;;  %v3672_v55 = vadd.f32 %v3656_v17, %v8579_v7  ;;  %v7122_v34 = vpack.c.bf16 %v9317_v26, %v9311_v24 }
 0xa5b   : > { %v7720_v41 = vpop.eup %7719  ;;  %v7114_v51 = vpack.c.bf16 %v7718_v30, %v7710_v54  ;;  %7739 = vtanh.f32 %v3679_v63  ;;  %v3674_v53 = vadd.f32 %v3658_v25, %v8579_v7  ;;  %v7124_v29 = vpack.c.bf16 %v9336_v42, %v9330_v44  ;;  %v3698_v63 = vld [vmem:[%s9983_s5 + $0x10] sm:$0xff] }
 0xa5c   : > { %v7722_v39 = vpop.eup %7721  ;;  %7107 = vmatprep.subr.bf16.mxu0 %v7106_v1  ;;  %7741 = vtanh.f32 %v3675_v4  ;;  %v7132_v24 = vpack.c.bf16 %v9349_v60, %v9342_v23  ;;  %v3696_v23 = vld [vmem:[%s9983_s5] sm:$0xff]  ;;  %v3697_v60 = vld [vmem:[%s9983_s5 + $0x8] sm:$0xff] }
 0xa5d   : > { %v7724_v33 = vpop.eup %7723  ;;  %7115 = vmatprep.subr.bf16.mxu1 %v7114_v51  ;;  %7109 = vmatpush1.bf16.msra.mxu0 %v7108_v6  ;;  %7743 = vtanh.f32 %v3676_v10 }
 0xa5e   : > { %v7726_v22 = vpop.eup %7725  ;;  %7117 = vmatpush1.bf16.msra.mxu1 %v7116_v5  ;;  %7745 = vtanh.f32 %v3678_v31  ;;  %v7130_v5 = vpack.c.bf16 %v9323_v56, %v9319_v62 }
 0xa5f   : > { %v7728_v54 = vpop.eup %7727  ;;  %7747 = vtanh.f32 %v3672_v55 }
 0xa60   : > { %v7730_v50 = vpop.eup %7729  ;;  %v7112_v43 = vpack.c.bf16 %v7728_v54, %v7720_v41  ;;  %7749 = vtanh.f32 %v3674_v53 }
 0xa61   : > { %v7732_v15 = vpop.eup %7731  ;;  %v7120_v27 = vpack.c.bf16 %v7730_v50, %v7722_v39 }
 0xa62   : > { %v7734_v52 = vpop.eup %7733  ;;  %v7110_v13 = vpack.c.bf16 %v7732_v15, %v7724_v33 }
 0xa63   : > { %v7118_v46 = vpack.c.bf16 %v7734_v52, %v7726_v22  ;;  %v7736_v59 = vpop.eup %7735 }
 0xa64   : > { %7111 = vmatprep.subr.bf16.mxu0 %v7110_v13  ;;  %v7738_v8 = vpop.eup %7737  ;;  %v3712_v13 = vpop.permute.xlu1 %3711 }
 0xa65   : > { %7119 = vmatprep.subr.bf16.mxu1 %v7118_v46  ;;  %7113 = vmatpush1.bf16.msra.mxu0 %v7112_v43  ;;  %v7740_v58 = vpop.eup %7739  ;;  %v7126_v26 = vpack.c.bf16 %v7738_v8, %v7736_v59 }
 0xa66   : > { %7121 = vmatpush1.bf16.msra.mxu1 %v7120_v27  ;;  %7123 = vmatprep.subr.bf16.mxu0 %v7122_v34  ;;  %v7742_v38 = vpop.eup %7741 }
 0xa67   : > { %7131 = vmatprep.subr.bf16.mxu1 %v7130_v5  ;;  %v7744_v3 = vpop.eup %7743  ;;  %v7134_v56 = vpack.c.bf16 %v7740_v58, %v7742_v38 }
 0xa68   : > { %6778 = vmatmul.mubr.msk.f32.vlgmr.msra.gmra.mrb[82].mxu0 %vm659_vm0, %v8103_v12  ;;  %v7746_v62 = vpop.eup %7745 }
 0xa69   : > { %6779 = vmatmul.mubr.msk.f32.vlgmr.msra.gmra.mrb[82].mxu1 %vm659_vm0, %v8103_v12  ;;  %7125 = vmatpush1.bf16.msra.mxu0 %v7124_v29  ;;  %v7748_v37 = vpop.eup %7747 }
 0xa6a   : > { %7133 = vmatpush1.bf16.msra.mxu1 %v7132_v24  ;;  %7127 = vmatprep.subr.bf16.mxu0 %v7126_v26  ;;  %v7750_v44 = vpop.eup %7749  ;;  %v7128_v42 = vpack.c.bf16 %v7744_v3, %v7748_v37 }
 0xa6b   : > { %7135 = vmatprep.subr.bf16.mxu1 %v7134_v56  ;;  %3800 = vmatprep.mubr.f32.mxu0 %v10075_v47  ;;  %v7136_v6 = vpack.c.bf16 %v7746_v62, %v7750_v44  ;;  %v3722_v44 = vpop.permute.xlu1 %3721 }
 0xa6c   : > { %3889 = vmatprep.mubr.f32.mxu1 %v10075_v47 }
 0xa6d   : > { %7129 = vmatpush1.bf16.msra.mxu0 %v7128_v42 }
 0xa6e   : > { %7137 = vmatpush1.bf16.msra.mxu1 %v7136_v6 }
 0xa70   : > { %6780 = vmatmul.mubr.msk.f32.vlgmr.msra.gmra.mrb[84].mxu0 %vm659_vm0, %v3696_v23 }
 0xa71   : > { %6784 = vmatmul.mubr.msk.f32.vlgmr.msra.gmra.mrb[84].mxu1 %vm659_vm0, %v3696_v23  ;;  %3806 = vmatprep.mubr.f32.mxu0 %v10075_v47 }
 0xa72   : > { %3895 = vmatprep.mubr.f32.mxu1 %v10075_v47 }
 0xa74   : > { %6781 = vmatmul.mubr.msk.f32.gmra.mrb[86].mxu0 %vm659_vm0, %v3697_v60 }
 0xa75   : > { %6785 = vmatmul.mubr.msk.f32.gmra.mrb[86].mxu1 %vm659_vm0, %v3697_v60  ;;  %3812 = vmatprep.mubr.f32.mxu0 %v10075_v47 }
 0xa76   : > { %3901 = vmatprep.mubr.f32.mxu1 %v10075_v47 }
 0xa78   : > { %6782 = vmatmul.mubr.msk.f32.gmra.mrb[88].mxu0 %vm659_vm0, %v3698_v63 }
 0xa79   : > { %6786 = vmatmul.mubr.msk.f32.gmra.mrb[88].mxu1 %vm659_vm0, %v3698_v63  ;;  %3818 = vmatprep.mubr.f32.mxu0 %v10075_v47 }
 0xa7a   : > { %3907 = vmatprep.mubr.f32.mxu1 %v10075_v47 }
 0xa7c   : > { %6783 = vmatmul.mubr.msk.f32.gmra.mrb[90].mxu0 %vm659_vm0, %v3699_v49 }
 0xa7d   : > { %6787 = vmatmul.mubr.msk.f32.gmra.mrb[90].mxu1 %vm659_vm0, %v3699_v49  ;;  %4034 = vmatprep.mubr.f32.mxu0 %v10075_v47 }
 0xa7e   : > { %4123 = vmatprep.mubr.f32.mxu1 %v10075_v47 }
 0xb3b   : > { %v3412_v4 = vpop.f32.mrb[82].mxu0 }
 0xb3c   : > { %v3413_v32 = vadd.f32 %v3412_v4, %v9030_v45  ;;  %v3483_v36 = vpop.f32.mrb[82].mxu1  ;;  %v3414_v30 = vpop.f32.mrb[83].mxu0 }
 0xb3d   : > { %v3484_v1 = vadd.f32 %v3483_v36, %v9030_v45  ;;  %v3415_v17 = vadd.f32 %v3414_v30, %v9030_v45  ;;  %v3485_v10 = vpop.f32.mrb[83].mxu1 }
 0xb3e   : > { %v3486_v41 = vadd.f32 %v3485_v10, %v9030_v45 }
 0xb3f   : > { %v3492_v51 = vcombine.low %v3413_v32, %v3415_v17 }
 0xb40   : > { %v3493_v25 = vcombine.low %v3484_v1, %v3486_v41 }
 0xb41   : > { %v3500_v31 = vrot.slane %v3492_v51, %v9036_v40 }
 0xb42   : > { %v3507_v39 = vrot.slane %v3493_v25, %v9036_v40 }
 0xb43   : > { %v3802_v55 = vpop.f32.mrb[84].mxu0 }
 0xb44   : > { %v3508_v33 = vcombine.low %v3500_v31, %v3507_v39  ;;  %v3803_v53 = vadd.f32 %v3802_v55, %v8989_v18  ;;  %v3891_v22 = vpop.f32.mrb[84].mxu1  ;;  %v3804_v54 = vpop.f32.mrb[85].mxu0 }
 0xb45   : > { %v3892_v50 = vadd.f32 %v3891_v22, %v8989_v18  ;;  %v3805_v43 = vadd.f32 %v3804_v54, %v8989_v18  ;;  %v3893_v15 = vpop.f32.mrb[85].mxu1 }
 0xb46   : > { %v3515_v27 = vrot.slane %v3508_v33, %v9036_v40  ;;  %7751 = vtanh.f32 %v3803_v53  ;;  %v3894_v52 = vadd.f32 %v3893_v15, %v8989_v18 }
 0xb47   : > { %7753 = vtanh.f32 %v3892_v50  ;;  %v3808_v46 = vpop.f32.mrb[86].mxu0 }
 0xb48   : > { %3517 = vst.msk [vmem:[%s9045_s18 + $0x4] sm:$0xf] %vm9048_vm1, %v3515_v27  ;;  %7755 = vtanh.f32 %v3805_v43  ;;  %v3809_v59 = vadd.f32 %v3808_v46, %v3712_v13  ;;  %v3897_v34 = vpop.f32.mrb[86].mxu1  ;;  %v3810_v8 = vpop.f32.mrb[87].mxu0 }
 0xb49   : > { %7757 = vtanh.f32 %v3894_v52  ;;  %v3898_v5 = vadd.f32 %v3897_v34, %v3712_v13  ;;  %v3811_v58 = vadd.f32 %v3810_v8, %v3712_v13  ;;  %v3899_v38 = vpop.f32.mrb[87].mxu1  ;;  %v6788_v34 = vld [vmem:[%s9983_s5 + $0x20] sm:$0xff]  ;;  %v6789_v8 = vld [vmem:[%s9983_s5 + $0x28] sm:$0xff] }
 0xb4a   : > { %7759 = vtanh.f32 %v3809_v59  ;;  %v3900_v29 = vadd.f32 %v3899_v38, %v3712_v13 }
 0xb4b   : > { %7761 = vtanh.f32 %v3898_v5  ;;  %v3814_v3 = vpop.f32.mrb[88].mxu0  ;;  %v6790_v5 = vld [vmem:[%s9983_s5 + $0x30] sm:$0xff] }
 0xb4c   : > { %7763 = vtanh.f32 %v3811_v58  ;;  %v3815_v18 = vadd.f32 %v3814_v3, %v8991_v16  ;;  %v3903_v12 = vpop.f32.mrb[88].mxu1  ;;  %v3816_v24 = vpop.f32.mrb[89].mxu0  ;;  %v6791_v58 = vld [vmem:[%s9983_s5 + $0x38] sm:$0xff] }
 0xb4d   : > { %7765 = vtanh.f32 %v3900_v29  ;;  %v3904_v26 = vadd.f32 %v3903_v12, %v8991_v16  ;;  %v3817_v62 = vadd.f32 %v3816_v24, %v8991_v16  ;;  %v3905_v56 = vpop.f32.mrb[89].mxu1 }
 0xb4e   : > { %7767 = vtanh.f32 %v3815_v18  ;;  %v3906_v37 = vadd.f32 %v3905_v56, %v8991_v16  ;;  %v3946_v56 = vpop.permute.xlu1 %3945 }
 0xb4f   : > { %7769 = vtanh.f32 %v3904_v26  ;;  %v3820_v42 = vpop.f32.mrb[90].mxu0 }
 0xb50   : > { %v7752_v6 = vpop.eup %7751  ;;  %7771 = vtanh.f32 %v3817_v62  ;;  %v3821_v23 = vadd.f32 %v3820_v42, %v3722_v44  ;;  %v3909_v60 = vpop.f32.mrb[90].mxu1 }
 0xb51   : > { %v3822_v63 = vpop.f32.mrb[91].mxu0  ;;  %v7754_v49 = vpop.eup %7753  ;;  %7773 = vtanh.f32 %v3906_v37  ;;  %v3910_v4 = vadd.f32 %v3909_v60, %v3722_v44 }
 0xb52   : > { %v3823_v32 = vadd.f32 %v3822_v63, %v3722_v44  ;;  %v3911_v36 = vpop.f32.mrb[91].mxu1  ;;  %v7756_v30 = vpop.eup %7755  ;;  %7775 = vtanh.f32 %v3821_v23 }
 0xb53   : > { %v3912_v1 = vadd.f32 %v3911_v36, %v3722_v44  ;;  %v7758_v17 = vpop.eup %7757  ;;  %7777 = vtanh.f32 %v3910_v4 }
 0xb54   : > { %v7760_v10 = vpop.eup %7759  ;;  %7779 = vtanh.f32 %v3823_v32 }
 0xb55   : > { %v7762_v16 = vpop.eup %7761  ;;  %7781 = vtanh.f32 %v3912_v1  ;;  %v7140_v41 = vpack.c.bf16 %v7760_v10, %v7752_v6 }
 0xb56   : > { %v7764_v51 = vpop.eup %7763  ;;  %v7148_v25 = vpack.c.bf16 %v7762_v16, %v7754_v49  ;;  %v3956_v16 = vpop.permute.xlu1 %3955 }
 0xb57   : > { %v7766_v31 = vpop.eup %7765  ;;  %v7138_v39 = vpack.c.bf16 %v7764_v51, %v7756_v30 }
 0xb58   : > { %v7768_v55 = vpop.eup %7767  ;;  %v7146_v33 = vpack.c.bf16 %v7766_v31, %v7758_v17 }
 0xb59   : > { %v7770_v53 = vpop.eup %7769  ;;  %7139 = vmatprep.subr.bf16.mxu0 %v7138_v39 }
 0xb5a   : > { %v7772_v22 = vpop.eup %7771  ;;  %7147 = vmatprep.subr.bf16.mxu1 %v7146_v33  ;;  %7141 = vmatpush1.bf16.msra.mxu0 %v7140_v41 }
 0xb5b   : > { %v7774_v54 = vpop.eup %7773  ;;  %7149 = vmatpush1.bf16.msra.mxu1 %v7148_v25 }
 0xb5c   : > { %v7776_v50 = vpop.eup %7775 }
 0xb5d   : > { %v7778_v43 = vpop.eup %7777  ;;  %v7144_v15 = vpack.c.bf16 %v7776_v50, %v7768_v55 }
 0xb5e   : > { %v7780_v27 = vpop.eup %7779  ;;  %v7152_v52 = vpack.c.bf16 %v7778_v43, %v7770_v53 }
 0xb5f   : > { %v7782_v13 = vpop.eup %7781  ;;  %v7142_v46 = vpack.c.bf16 %v7780_v27, %v7772_v22 }
 0xb60   : > { %v7150_v59 = vpack.c.bf16 %v7782_v13, %v7774_v54 }
 0xb61   : > { %7143 = vmatprep.subr.bf16.mxu0 %v7142_v46 }
 0xb62   : > { %7151 = vmatprep.subr.bf16.mxu1 %v7150_v59  ;;  %7145 = vmatpush1.bf16.msra.mxu0 %v7144_v15 }
 0xb63   : > { %7153 = vmatpush1.bf16.msra.mxu1 %v7152_v52 }
 0xb65   : > { %6796 = vmatmul.mubr.msk.f32.vlgmr.msra.gmra.mrb[92].mxu0 %vm659_vm0, %v6788_v34 }
 0xb66   : > { %6800 = vmatmul.mubr.msk.f32.vlgmr.msra.gmra.mrb[92].mxu1 %vm659_vm0, %v6788_v34  ;;  %4040 = vmatprep.mubr.f32.mxu0 %v10075_v47 }
 0xb67   : > { %4129 = vmatprep.mubr.f32.mxu1 %v10075_v47 }
 0xb69   : > { %6797 = vmatmul.mubr.msk.f32.gmra.mrb[94].mxu0 %vm659_vm0, %v6789_v8 }
 0xb6a   : > { %6801 = vmatmul.mubr.msk.f32.gmra.mrb[94].mxu1 %vm659_vm0, %v6789_v8  ;;  %4046 = vmatprep.mubr.f32.mxu0 %v10075_v47 }
 0xb6b   : > { %4135 = vmatprep.mubr.f32.mxu1 %v10075_v47 }
 0xb6d   : > { %6798 = vmatmul.mubr.msk.f32.gmra.mrb[96].mxu0 %vm659_vm0, %v6790_v5 }
 0xb6e   : > { %6802 = vmatmul.mubr.msk.f32.gmra.mrb[96].mxu1 %vm659_vm0, %v6790_v5  ;;  %4052 = vmatprep.mubr.f32.mxu0 %v10075_v47 }
 0xb6f   : > { %4141 = vmatprep.mubr.f32.mxu1 %v10075_v47 }
 0xb71   : > { %6799 = vmatmul.mubr.msk.f32.gmra.mrb[98].mxu0 %vm659_vm0, %v6791_v58 }
 0xb72   : > { %6803 = vmatmul.mubr.msk.f32.gmra.mrb[98].mxu1 %vm659_vm0, %v6791_v58  ;;  %4268 = vmatprep.mubr.f32.mxu0 %v10075_v47 }
 0xb73   : > { %4357 = vmatprep.mubr.f32.mxu1 %v10075_v47 }
 0xc38   : > { %v4036_v38 = vpop.f32.mrb[92].mxu0 }
 0xc39   : > { %v4037_v29 = vadd.f32 %v4036_v38, %v8993_v11  ;;  %v4125_v3 = vpop.f32.mrb[92].mxu1  ;;  %v4038_v18 = vpop.f32.mrb[93].mxu0 }
 0xc3a   : > { %v4126_v12 = vadd.f32 %v4125_v3, %v8993_v11  ;;  %v4039_v24 = vadd.f32 %v4038_v18, %v8993_v11  ;;  %v4127_v26 = vpop.f32.mrb[93].mxu1 }
 0xc3b   : > { %7783 = vtanh.f32 %v4037_v29  ;;  %v4128_v62 = vadd.f32 %v4127_v26, %v8993_v11 }
 0xc3c   : > { %7785 = vtanh.f32 %v4126_v12  ;;  %v4042_v37 = vpop.f32.mrb[94].mxu0 }
 0xc3d   : > { %7787 = vtanh.f32 %v4039_v24  ;;  %v4043_v44 = vadd.f32 %v4042_v37, %v3946_v56  ;;  %v4131_v42 = vpop.f32.mrb[94].mxu1  ;;  %v4044_v6 = vpop.f32.mrb[95].mxu0  ;;  %v6804_v37 = vld [vmem:[%s9983_s5 + $0x40] sm:$0xff] }
 0xc3e   : > { %7789 = vtanh.f32 %v4128_v62  ;;  %v4132_v23 = vadd.f32 %v4131_v42, %v3946_v56  ;;  %v4045_v60 = vadd.f32 %v4044_v6, %v3946_v56  ;;  %v4133_v63 = vpop.f32.mrb[95].mxu1  ;;  %v6806_v42 = vld [vmem:[%s9983_s5 + $0x50] sm:$0xff]  ;;  %v6807_v6 = vld [vmem:[%s9983_s5 + $0x58] sm:$0xff] }
 0xc3f   : > { %7791 = vtanh.f32 %v4043_v44  ;;  %v4134_v49 = vadd.f32 %v4133_v63, %v3946_v56  ;;  %v6805_v44 = vld [vmem:[%s9983_s5 + $0x48] sm:$0xff] }
 0xc40   : > { %7793 = vtanh.f32 %v4132_v23  ;;  %v4048_v4 = vpop.f32.mrb[96].mxu0 }
 0xc41   : > { %7795 = vtanh.f32 %v4045_v60  ;;  %v4049_v32 = vadd.f32 %v4048_v4, %v8995_v20  ;;  %v4137_v36 = vpop.f32.mrb[96].mxu1  ;;  %v4050_v11 = vpop.f32.mrb[97].mxu0 }
 0xc42   : > { %7797 = vtanh.f32 %v4134_v49  ;;  %v4138_v30 = vadd.f32 %v4137_v36, %v8995_v20  ;;  %v4051_v1 = vadd.f32 %v4050_v11, %v8995_v20  ;;  %v4139_v17 = vpop.f32.mrb[97].mxu1 }
 0xc43   : > { %7799 = vtanh.f32 %v4049_v32  ;;  %v4140_v10 = vadd.f32 %v4139_v17, %v8995_v20 }
 0xc44   : > { %7801 = vtanh.f32 %v4138_v30  ;;  %v4054_v41 = vpop.f32.mrb[98].mxu0  ;;  %v4180_v30 = vpop.permute.xlu1 %4179 }
 0xc45   : > { %v7784_v51 = vpop.eup %7783  ;;  %7803 = vtanh.f32 %v4051_v1  ;;  %v4055_v25 = vadd.f32 %v4054_v41, %v3956_v16  ;;  %v4143_v31 = vpop.f32.mrb[98].mxu1 }
 0xc46   : > { %v4056_v39 = vpop.f32.mrb[99].mxu0  ;;  %v7786_v55 = vpop.eup %7785  ;;  %7805 = vtanh.f32 %v4140_v10  ;;  %v4144_v33 = vadd.f32 %v4143_v31, %v3956_v16 }
 0xc47   : > { %v4057_v53 = vadd.f32 %v4056_v39, %v3956_v16  ;;  %v4145_v22 = vpop.f32.mrb[99].mxu1  ;;  %v7788_v54 = vpop.eup %7787  ;;  %7807 = vtanh.f32 %v4055_v25 }
 0xc48   : > { %v4146_v50 = vadd.f32 %v4145_v22, %v3956_v16  ;;  %v7790_v43 = vpop.eup %7789  ;;  %7809 = vtanh.f32 %v4144_v33 }
 0xc49   : > { %v7792_v15 = vpop.eup %7791  ;;  %7811 = vtanh.f32 %v4057_v53 }
 0xc4a   : > { %v7794_v20 = vpop.eup %7793  ;;  %7813 = vtanh.f32 %v4146_v50  ;;  %v7156_v27 = vpack.c.bf16 %v7792_v15, %v7784_v51 }
 0xc4b   : > { %v7796_v52 = vpop.eup %7795  ;;  %v7164_v13 = vpack.c.bf16 %v7794_v20, %v7786_v55 }
 0xc4c   : > { %v7798_v46 = vpop.eup %7797  ;;  %v7154_v59 = vpack.c.bf16 %v7796_v52, %v7788_v54 }
 0xc4d   : > { %v7800_v34 = vpop.eup %7799  ;;  %v7162_v8 = vpack.c.bf16 %v7798_v46, %v7790_v43  ;;  %v4190_v43 = vpop.permute.xlu1 %4189 }
 0xc4e   : > { %v7802_v5 = vpop.eup %7801  ;;  %7155 = vmatprep.subr.bf16.mxu0 %v7154_v59 }
 0xc4f   : > { %v7804_v58 = vpop.eup %7803  ;;  %7163 = vmatprep.subr.bf16.mxu1 %v7162_v8  ;;  %7157 = vmatpush1.bf16.msra.mxu0 %v7156_v27 }
 0xc50   : > { %v7806_v38 = vpop.eup %7805  ;;  %7165 = vmatpush1.bf16.msra.mxu1 %v7164_v13 }
 0xc51   : > { %v7808_v29 = vpop.eup %7807 }
 0xc52   : > { %v7810_v3 = vpop.eup %7809  ;;  %v7160_v18 = vpack.c.bf16 %v7808_v29, %v7800_v34 }
 0xc53   : > { %v7812_v12 = vpop.eup %7811  ;;  %v7168_v24 = vpack.c.bf16 %v7810_v3, %v7802_v5 }
 0xc54   : > { %v7814_v26 = vpop.eup %7813  ;;  %v7158_v62 = vpack.c.bf16 %v7812_v12, %v7804_v58 }
 0xc55   : > { %v7166_v56 = vpack.c.bf16 %v7814_v26, %v7806_v38 }
 0xc56   : > { %7159 = vmatprep.subr.bf16.mxu0 %v7158_v62 }
 0xc57   : > { %7167 = vmatprep.subr.bf16.mxu1 %v7166_v56  ;;  %7161 = vmatpush1.bf16.msra.mxu0 %v7160_v18 }
 0xc58   : > { %7169 = vmatpush1.bf16.msra.mxu1 %v7168_v24 }
 0xc5a   : > { %6812 = vmatmul.mubr.msk.f32.vlgmr.msra.gmra.mrb[100].mxu0 %vm659_vm0, %v6804_v37 }
 0xc5b   : > { %6816 = vmatmul.mubr.msk.f32.vlgmr.msra.gmra.mrb[100].mxu1 %vm659_vm0, %v6804_v37  ;;  %4274 = vmatprep.mubr.f32.mxu0 %v10075_v47 }
 0xc5c   : > { %4363 = vmatprep.mubr.f32.mxu1 %v10075_v47 }
 0xc5e   : > { %6813 = vmatmul.mubr.msk.f32.gmra.mrb[102].mxu0 %vm659_vm0, %v6805_v44 }
 0xc5f   : > { %6817 = vmatmul.mubr.msk.f32.gmra.mrb[102].mxu1 %vm659_vm0, %v6805_v44  ;;  %4280 = vmatprep.mubr.f32.mxu0 %v10075_v47 }
 0xc60   : > { %4369 = vmatprep.mubr.f32.mxu1 %v10075_v47 }
 0xc62   : > { %6814 = vmatmul.mubr.msk.f32.gmra.mrb[104].mxu0 %vm659_vm0, %v6806_v42 }
 0xc63   : > { %6818 = vmatmul.mubr.msk.f32.gmra.mrb[104].mxu1 %vm659_vm0, %v6806_v42  ;;  %4286 = vmatprep.mubr.f32.mxu0 %v10075_v47 }
 0xc64   : > { %4375 = vmatprep.mubr.f32.mxu1 %v10075_v47 }
 0xc66   : > { %6815 = vmatmul.mubr.msk.f32.gmra.mrb[106].mxu0 %vm659_vm0, %v6807_v6 }
 0xc67   : > { %6819 = vmatmul.mubr.msk.f32.gmra.mrb[106].mxu1 %vm659_vm0, %v6807_v6  ;;  %4502 = vmatprep.mubr.f32.mxu0 %v10075_v47 }
 0xc68   : > { %4591 = vmatprep.mubr.f32.mxu1 %v10075_v47 }
 0xd2d   : > { %v4270_v23 = vpop.f32.mrb[100].mxu0 }
 0xd2e   : > { %v4271_v60 = vadd.f32 %v4270_v23, %v8997_v9  ;;  %v4359_v63 = vpop.f32.mrb[100].mxu1  ;;  %v4272_v49 = vpop.f32.mrb[101].mxu0 }
 0xd2f   : > { %v4360_v4 = vadd.f32 %v4359_v63, %v8997_v9  ;;  %v4273_v32 = vadd.f32 %v4272_v49, %v8997_v9  ;;  %v4361_v36 = vpop.f32.mrb[101].mxu1 }
 0xd30   : > { %7815 = vtanh.f32 %v4271_v60  ;;  %v4362_v11 = vadd.f32 %v4361_v36, %v8997_v9 }
 0xd31   : > { %7817 = vtanh.f32 %v4360_v4  ;;  %v4276_v1 = vpop.f32.mrb[102].mxu0 }
 0xd32   : > { %7819 = vtanh.f32 %v4273_v32  ;;  %v4277_v17 = vadd.f32 %v4276_v1, %v4180_v30  ;;  %v4365_v10 = vpop.f32.mrb[102].mxu1  ;;  %v4278_v16 = vpop.f32.mrb[103].mxu0  ;;  %v6822_v1 = vld [vmem:[%s9983_s5 + $0x70] sm:$0xff] }
 0xd33   : > { %7821 = vtanh.f32 %v4362_v11  ;;  %v4366_v41 = vadd.f32 %v4365_v10, %v4180_v30  ;;  %v4279_v51 = vadd.f32 %v4278_v16, %v4180_v30  ;;  %v4367_v25 = vpop.f32.mrb[103].mxu1  ;;  %v6820_v11 = vld [vmem:[%s9983_s5 + $0x60] sm:$0xff] }
 0xd34   : > { %7823 = vtanh.f32 %v4277_v17  ;;  %v4368_v31 = vadd.f32 %v4367_v25, %v4180_v30  ;;  %v6821_v30 = vld [vmem:[%s9983_s5 + $0x68] sm:$0xff]  ;;  %v6823_v17 = vld [vmem:[%s9983_s5 + $0x78] sm:$0xff] }
 0xd35   : > { %7825 = vtanh.f32 %v4366_v41  ;;  %v4282_v39 = vpop.f32.mrb[104].mxu0 }
 0xd36   : > { %7827 = vtanh.f32 %v4279_v51  ;;  %v4283_v55 = vadd.f32 %v4282_v39, %v8999_v14  ;;  %v4371_v33 = vpop.f32.mrb[104].mxu1  ;;  %v4284_v9 = vpop.f32.mrb[105].mxu0 }
 0xd37   : > { %7829 = vtanh.f32 %v4368_v31  ;;  %v4372_v53 = vadd.f32 %v4371_v33, %v8999_v14  ;;  %v4285_v22 = vadd.f32 %v4284_v9, %v8999_v14  ;;  %v4373_v54 = vpop.f32.mrb[105].mxu1  ;;  %v4414_v33 = vpop.permute.xlu1 %4413 }
 0xd38   : > { %7831 = vtanh.f32 %v4283_v55  ;;  %v4374_v50 = vadd.f32 %v4373_v54, %v8999_v14 }
 0xd39   : > { %7833 = vtanh.f32 %v4372_v53  ;;  %v4288_v15 = vpop.f32.mrb[106].mxu0 }
 0xd3a   : > { %v7816_v20 = vpop.eup %7815  ;;  %7835 = vtanh.f32 %v4285_v22  ;;  %v4289_v27 = vadd.f32 %v4288_v15, %v4190_v43  ;;  %v4377_v52 = vpop.f32.mrb[106].mxu1 }
 0xd3b   : > { %v4290_v13 = vpop.f32.mrb[107].mxu0  ;;  %v7818_v46 = vpop.eup %7817  ;;  %7837 = vtanh.f32 %v4374_v50  ;;  %v4378_v59 = vadd.f32 %v4377_v52, %v4190_v43 }
 0xd3c   : > { %v4291_v34 = vadd.f32 %v4290_v13, %v4190_v43  ;;  %v4379_v8 = vpop.f32.mrb[107].mxu1  ;;  %v7820_v5 = vpop.eup %7819  ;;  %7839 = vtanh.f32 %v4289_v27 }
 0xd3d   : > { %v4380_v58 = vadd.f32 %v4379_v8, %v4190_v43  ;;  %v7822_v38 = vpop.eup %7821  ;;  %7841 = vtanh.f32 %v4378_v59 }
 0xd3e   : > { %v7824_v29 = vpop.eup %7823  ;;  %7843 = vtanh.f32 %v4291_v34 }
 0xd3f   : > { %v7826_v14 = vpop.eup %7825  ;;  %7845 = vtanh.f32 %v4380_v58  ;;  %v7172_v3 = vpack.c.bf16 %v7824_v29, %v7816_v20 }
 0xd40   : > { %v7828_v18 = vpop.eup %7827  ;;  %v7180_v12 = vpack.c.bf16 %v7826_v14, %v7818_v46 }
 0xd41   : > { %v7830_v24 = vpop.eup %7829  ;;  %v7170_v26 = vpack.c.bf16 %v7828_v18, %v7820_v5  ;;  %v4424_v5 = vpop.permute.xlu1 %4423 }
 0xd42   : > { %v7832_v62 = vpop.eup %7831  ;;  %v7178_v56 = vpack.c.bf16 %v7830_v24, %v7822_v38 }
 0xd43   : > { %v7834_v37 = vpop.eup %7833  ;;  %7171 = vmatprep.subr.bf16.mxu0 %v7170_v26 }
 0xd44   : > { %v7836_v44 = vpop.eup %7835  ;;  %7179 = vmatprep.subr.bf16.mxu1 %v7178_v56  ;;  %7173 = vmatpush1.bf16.msra.mxu0 %v7172_v3 }
 0xd45   : > { %v7838_v42 = vpop.eup %7837  ;;  %7181 = vmatpush1.bf16.msra.mxu1 %v7180_v12 }
 0xd46   : > { %v7840_v6 = vpop.eup %7839 }
 0xd47   : > { %v7842_v23 = vpop.eup %7841  ;;  %v7176_v60 = vpack.c.bf16 %v7840_v6, %v7832_v62 }
 0xd48   : > { %v7844_v63 = vpop.eup %7843  ;;  %v7184_v49 = vpack.c.bf16 %v7842_v23, %v7834_v37 }
 0xd49   : > { %v7846_v4 = vpop.eup %7845  ;;  %v7174_v32 = vpack.c.bf16 %v7844_v63, %v7836_v44 }
 0xd4a   : > { %v7182_v36 = vpack.c.bf16 %v7846_v4, %v7838_v42 }
 0xd4b   : > { %7175 = vmatprep.subr.bf16.mxu0 %v7174_v32 }
 0xd4c   : > { %7183 = vmatprep.subr.bf16.mxu1 %v7182_v36  ;;  %7177 = vmatpush1.bf16.msra.mxu0 %v7176_v60 }
 0xd4d   : > { %7185 = vmatpush1.bf16.msra.mxu1 %v7184_v49 }
 0xd4f   : > { %6828 = vmatmul.mubr.msk.f32.vlgmr.msra.gmra.mrb[108].mxu0 %vm659_vm0, %v6820_v11 }
 0xd50   : > { %6832 = vmatmul.mubr.msk.f32.vlgmr.msra.gmra.mrb[108].mxu1 %vm659_vm0, %v6820_v11  ;;  %4508 = vmatprep.mubr.f32.mxu0 %v10075_v47 }
 0xd51   : > { %4597 = vmatprep.mubr.f32.mxu1 %v10075_v47 }
 0xd53   : > { %6829 = vmatmul.mubr.msk.f32.gmra.mrb[110].mxu0 %vm659_vm0, %v6821_v30 }
 0xd54   : > { %6833 = vmatmul.mubr.msk.f32.gmra.mrb[110].mxu1 %vm659_vm0, %v6821_v30  ;;  %4514 = vmatprep.mubr.f32.mxu0 %v10075_v47 }
 0xd55   : > { %4603 = vmatprep.mubr.f32.mxu1 %v10075_v47 }
 0xd57   : > { %6830 = vmatmul.mubr.msk.f32.gmra.mrb[112].mxu0 %vm659_vm0, %v6822_v1 }
 0xd58   : > { %6834 = vmatmul.mubr.msk.f32.gmra.mrb[112].mxu1 %vm659_vm0, %v6822_v1  ;;  %4520 = vmatprep.mubr.f32.mxu0 %v10075_v47 }
 0xd59   : > { %4609 = vmatprep.mubr.f32.mxu1 %v10075_v47 }
 0xd5b   : > { %6831 = vmatmul.mubr.msk.f32.gmra.mrb[114].mxu0 %vm659_vm0, %v6823_v17 }
 0xd5c   : > { %6835 = vmatmul.mubr.msk.f32.gmra.mrb[114].mxu1 %vm659_vm0, %v6823_v17  ;;  %4736 = vmatprep.mubr.f32.mxu0 %v10075_v47 }
 0xd5d   : > { %4825 = vmatprep.mubr.f32.mxu1 %v10075_v47 }
 0xe22   : > { %v4504_v10 = vpop.f32.mrb[108].mxu0 }
 0xe23   : > { %v4505_v16 = vadd.f32 %v4504_v10, %v9001_v21  ;;  %v4593_v41 = vpop.f32.mrb[108].mxu1  ;;  %v4506_v51 = vpop.f32.mrb[109].mxu0 }
 0xe24   : > { %v4594_v25 = vadd.f32 %v4593_v41, %v9001_v21  ;;  %v4507_v31 = vadd.f32 %v4506_v51, %v9001_v21  ;;  %v4595_v39 = vpop.f32.mrb[109].mxu1 }
 0xe25   : > { %7847 = vtanh.f32 %v4505_v16  ;;  %v4596_v55 = vadd.f32 %v4595_v39, %v9001_v21  ;;  %v6837_v39 = vld [vmem:[%s9983_s5 + $0x88] sm:$0xff] }
 0xe26   : > { %7849 = vtanh.f32 %v4594_v25  ;;  %v4510_v9 = vpop.f32.mrb[110].mxu0 }
 0xe27   : > { %7851 = vtanh.f32 %v4507_v31  ;;  %v4511_v53 = vadd.f32 %v4510_v9, %v4414_v33  ;;  %v4599_v22 = vpop.f32.mrb[110].mxu1  ;;  %v4512_v54 = vpop.f32.mrb[111].mxu0  ;;  %v6836_v31 = vld [vmem:[%s9983_s5 + $0x80] sm:$0xff]  ;;  %v5038_v9 = vld [vmem:[%s8380_s14 + $0xc] sm:$0xf] }
 0xe28   : > { %7853 = vtanh.f32 %v4596_v55  ;;  %v4600_v50 = vadd.f32 %v4599_v22, %v4414_v33  ;;  %v4513_v43 = vadd.f32 %v4512_v54, %v4414_v33  ;;  %v4601_v15 = vpop.f32.mrb[111].mxu1  ;;  %v6838_v55 = vld [vmem:[%s9983_s5 + $0x90] sm:$0xff]  ;;  %v9577_v22 = vrot.slane %v5038_v9, %v10076_v57 }
 0xe29   : > { %7855 = vtanh.f32 %v4511_v53  ;;  %v4602_v20 = vadd.f32 %v4601_v15, %v4414_v33  ;;  %v6839_v33 = vld [vmem:[%s9983_s5 + $0x98] sm:$0xff]  ;;  %v5039_v53 = vld [vmem:[%s8374_s30 + $0xc] sm:$0xf] }
 0xe2a   : > { %7857 = vtanh.f32 %v4600_v50  ;;  %v4516_v27 = vpop.f32.mrb[112].mxu0  ;;  %v9580_v54 = vrot.slane %v5039_v53, %v10076_v57  ;;  %v9583_v50 = vrot.slane %v5038_v9, %v10077_v0  ;;  %v5063_v15 = vmul.f32 %v9577_v22, %v10080_v61 }
 0xe2b   : > { %7859 = vtanh.f32 %v4513_v43  ;;  %v4517_v52 = vadd.f32 %v4516_v27, %v9003_v48  ;;  %v4605_v13 = vpop.f32.mrb[112].mxu1  ;;  %v4518_v21 = vpop.f32.mrb[113].mxu0  ;;  %v5040_v43 = vld [vmem:[%s8391_s16 + $0xc] sm:$0xf]  ;;  %v9592_v27 = vrot.slane %v5038_v9, %v10079_v35 }
 0xe2c   : > { %7861 = vtanh.f32 %v4602_v20  ;;  %v4606_v46 = vadd.f32 %v4605_v13, %v9003_v48  ;;  %v4519_v59 = vadd.f32 %v4518_v21, %v9003_v48  ;;  %v4607_v34 = vpop.f32.mrb[113].mxu1  ;;  %v9589_v20 = vrot.slane %v5039_v53, %v10077_v0 }
 0xe2d   : > { %7863 = vtanh.f32 %v4517_v52  ;;  %v4608_v8 = vadd.f32 %v4607_v34, %v9003_v48  ;;  %v10107_v52 = vld [vmem:[#allocation16_spill] sm:$0xff]  ;;  %v9597_v21 = vrot.slane %v5039_v53, %v10079_v35  ;;  %v10109_v34 = vld [vmem:[#allocation5_spill] sm:$0xff] }
 0xe2e   : > { %7865 = vtanh.f32 %v4606_v46  ;;  %v4522_v58 = vpop.f32.mrb[114].mxu0  ;;  %v5067_v13 = vmul.f32 %v9577_v22, %v10107_v52  ;;  %v10108_v46 = vld [vmem:[#allocation13_spill] sm:$0xff] }
 0xe2f   : > { %v7848_v38 = vpop.eup %7847  ;;  %7867 = vtanh.f32 %v4519_v59  ;;  %v4523_v29 = vadd.f32 %v4522_v58, %v4424_v5  ;;  %v4611_v14 = vpop.f32.mrb[114].mxu1  ;;  %v9600_v59 = vrot.slane %v5039_v53, %v10108_v46  ;;  %v5065_v58 = vmul.f32 %v9583_v50, %v10080_v61 }
 0xe30   : > { %v4524_v3 = vpop.f32.mrb[115].mxu0  ;;  %v7850_v18 = vpop.eup %7849  ;;  %7869 = vtanh.f32 %v4608_v8  ;;  %v4612_v12 = vadd.f32 %v4611_v14, %v4424_v5  ;;  %v5100_v8 = vmul.f32 %v9580_v54, %v10109_v34 }
 0xe31   : > { %v4525_v24 = vadd.f32 %v4524_v3, %v4424_v5  ;;  %v4613_v26 = vpop.f32.mrb[115].mxu1  ;;  %v7852_v62 = vpop.eup %7851  ;;  %7871 = vtanh.f32 %v4523_v29  ;;  %v10110_v29 = vld [vmem:[#allocation8_spill] sm:$0xff]  ;;  %v5069_v3 = vmul.f32 %v9583_v50, %v10107_v52 }
 0xe32   : > { %v4614_v56 = vadd.f32 %v4613_v26, %v4424_v5  ;;  %v7854_v37 = vpop.eup %7853  ;;  %7873 = vtanh.f32 %v4612_v12  ;;  %v9605_v5 = vrot.slane %v5040_v43, %v10076_v57  ;;  %v5104_v14 = vmul.f32 %v9580_v54, %v10110_v29 }
 0xe33   : > { %v7856_v44 = vpop.eup %7855  ;;  %7875 = vtanh.f32 %v4525_v24  ;;  %v9620_v12 = vrot.slane %v5040_v43, %v10079_v35  ;;  %v5116_v57 = vadd.f32 %v5100_v8, %v5063_v15  ;;  %v10111_v24 = vld [vmem:[#allocation6_spill] sm:$0xff]  ;;  %v9633_v35 = vrot.slane %v5040_v43, %v10108_v46 }
 0xe34   : > { %v7858_v48 = vpop.eup %7857  ;;  %7877 = vtanh.f32 %v4614_v56  ;;  %v7188_v42 = vpack.c.bf16 %v7856_v44, %v7848_v38  ;;  %v9610_v38 = vrot.slane %v5038_v9, %v10108_v46  ;;  %v5153_v26 = vmul.f32 %v9605_v5, %v10111_v24 }
 0xe35   : > { %v7860_v6 = vpop.eup %7859  ;;  %v7196_v23 = vpack.c.bf16 %v7858_v48, %v7850_v18  ;;  %v9617_v18 = vrot.slane %v5040_v43, %v10077_v0  ;;  %v5062_v56 = vmul.f32 %v9592_v27, %v10080_v61  ;;  %v5106_v44 = vmul.f32 %v9589_v20, %v10110_v29 }
 0xe36   : > { %v7862_v60 = vpop.eup %7861  ;;  %v7186_v63 = vpack.c.bf16 %v7860_v6, %v7852_v62  ;;  %v5102_v62 = vmul.f32 %v9589_v20, %v10109_v34  ;;  %v5066_v0 = vmul.f32 %v9592_v27, %v10107_v52  ;;  %v5099_v6 = vmul.f32 %v9597_v21, %v10109_v34 }
 0xe37   : > { %v7864_v49 = vpop.eup %7863  ;;  %v7194_v4 = vpack.c.bf16 %v7862_v60, %v7854_v37  ;;  %v5120_v37 = vadd.f32 %v5104_v14, %v5067_v13  ;;  %v10112_v60 = vld [vmem:[#allocation15_spill] sm:$0xff] }
 0xe38   : > { %v7866_v32 = vpop.eup %7865  ;;  %7187 = vmatprep.subr.bf16.mxu0 %v7186_v63  ;;  %v5118_v48 = vadd.f32 %v5102_v62, %v5065_v58  ;;  %v5157_v63 = vmul.f32 %v9605_v5, %v10112_v60  ;;  %v5156_v53 = vmul.f32 %v9620_v12, %v10112_v60 }
 0xe39   : > { %v7868_v36 = vpop.eup %7867  ;;  %7195 = vmatprep.subr.bf16.mxu1 %v7194_v4  ;;  %7189 = vmatpush1.bf16.msra.mxu0 %v7188_v42  ;;  %v5155_v42 = vmul.f32 %v9617_v18, %v10111_v24  ;;  %v5103_v4 = vmul.f32 %v9597_v21, %v10110_v29 }
 0xe3a   : > { %v7870_v11 = vpop.eup %7869  ;;  %7197 = vmatpush1.bf16.msra.mxu1 %v7196_v23  ;;  %v5064_v23 = vmul.f32 %v9610_v38, %v10080_v61  ;;  %v5159_v61 = vmul.f32 %v9617_v18, %v10112_v60 }
 0xe3b   : > { %v7872_v30 = vpop.eup %7871 }
 0xe3c   : > { %v7874_v1 = vpop.eup %7873  ;;  %v7192_v17 = vpack.c.bf16 %v7872_v30, %v7864_v49  ;;  %v5122_v49 = vadd.f32 %v5106_v44, %v5069_v3  ;;  %v5152_v30 = vmul.f32 %v9620_v12, %v10111_v24  ;;  %v10117_v44 = vld [vmem:[#allocation3_spill] sm:$0xff] }
 0xe3d   : > { %v7876_v10 = vpop.eup %7875  ;;  %v7200_v16 = vpack.c.bf16 %v7874_v1, %v7866_v32  ;;  %v5068_v32 = vmul.f32 %v9610_v38, %v10107_v52  ;;  %v5101_v1 = vmul.f32 %v9600_v59, %v10109_v34  ;;  %v5158_v34 = vmul.f32 %v9633_v35, %v10112_v60  ;;  %v10119_v60 = vld [vmem:[#allocation20_spill] sm:$0xff] }
 0xe3e   : > { %v7878_v41 = vpop.eup %7877  ;;  %v7190_v51 = vpack.c.bf16 %v7876_v10, %v7868_v36  ;;  %v5169_v36 = vadd.f32 %v5153_v26, %v5116_v57  ;;  %v5119_v10 = vadd.f32 %v5103_v4, %v5066_v0  ;;  %v5175_v9 = vadd.f32 %v5159_v61, %v5122_v49 }
 0xe3f   : > { %v7198_v25 = vpack.c.bf16 %v7878_v41, %v7870_v11  ;;  %v5115_v11 = vadd.f32 %v5099_v6, %v5062_v56  ;;  %v10113_v41 = vld [vmem:[#allocation23_spill] sm:$0xff]  ;;  %v10116_v56 = vld [vmem:[#allocation17_spill] sm:$0xff]  ;;  %v10118_v6 = vld [vmem:[#allocation18_spill] sm:$0xff] }
 0xe40   : > { %7191 = vmatprep.subr.bf16.mxu0 %v7190_v51  ;;  %v5185_v51 = vadd.f32 %v5169_v36, %v10113_v41  ;;  %v5172_v46 = vadd.f32 %v5156_v53, %v5119_v10 }
 0xe41   : > { %7199 = vmatprep.subr.bf16.mxu1 %v7198_v25  ;;  %7193 = vmatpush1.bf16.msra.mxu0 %v7192_v17  ;;  %v5173_v17 = vadd.f32 %v5157_v63, %v5120_v37  ;;  %v5171_v25 = vadd.f32 %v5155_v42, %v5118_v48  ;;  %v5168_v52 = vadd.f32 %v5152_v30, %v5115_v11 }
 0xe42   : > { %7201 = vmatpush1.bf16.msra.mxu1 %v7200_v16  ;;  %v5105_v16 = vmul.f32 %v9600_v59, %v10110_v29  ;;  %7879 = vtanh.f32 %v5185_v51  ;;  %v5071_v37 = vmul.f32 %v9577_v22, %v10116_v56  ;;  %v5112_v63 = vmul.f32 %v9580_v54, %v10119_v60 }
 0xe43   : > { %v5187_v15 = vadd.f32 %v5171_v25, %v10113_v41  ;;  %v5184_v8 = vadd.f32 %v5168_v52, %v10113_v41  ;;  %v5161_v30 = vmul.f32 %v9605_v5, %v10106_v28 }
 0xe44   : > { %6844 = vmatmul.mubr.msk.f32.vlgmr.msra.gmra.mrb[116].mxu0 %vm659_vm0, %v6836_v31  ;;  %v5121_v43 = vadd.f32 %v5105_v16, %v5068_v32  ;;  %v5114_v16 = vmul.f32 %v9589_v20, %v10119_v60 }
 0xe45   : > { %6848 = vmatmul.mubr.msk.f32.vlgmr.msra.gmra.mrb[116].mxu1 %vm659_vm0, %v6836_v31  ;;  %4742 = vmatprep.mubr.f32.mxu0 %v10075_v47  ;;  %v5117_v31 = vadd.f32 %v5101_v1, %v5064_v23  ;;  %v5075_v23 = vmul.f32 %v9577_v22, %v10118_v6  ;;  %v10120_v1 = vld [vmem:[#allocation22_spill] sm:$0xff]  ;;  %v4648_v22 = vpop.permute.xlu1 %4647 }
 0xe46   : > { %4831 = vmatprep.mubr.f32.mxu1 %v10075_v47  ;;  %v5174_v14 = vadd.f32 %v5158_v34, %v5121_v43 }
 0xe48   : > { %6845 = vmatmul.mubr.msk.f32.gmra.mrb[118].mxu0 %vm659_vm0, %v6837_v39 }
 0xe49   : > { %6849 = vmatmul.mubr.msk.f32.gmra.mrb[118].mxu1 %vm659_vm0, %v6837_v39  ;;  %4748 = vmatprep.mubr.f32.mxu0 %v10075_v47  ;;  %v5154_v39 = vmul.f32 %v9633_v35, %v10111_v24  ;;  %v10115_v24 = vld [vmem:[#allocation19_spill] sm:$0xff] }
 0xe4a   : > { %4837 = vmatprep.mubr.f32.mxu1 %v10075_v47  ;;  %v5108_v26 = vmul.f32 %v9580_v54, %v10115_v24  ;;  %v5077_v54 = vmul.f32 %v9583_v50, %v10118_v6  ;;  %v5110_v10 = vmul.f32 %v9589_v20, %v10115_v24 }
 0xe4b   : > { %v5170_v58 = vadd.f32 %v5154_v39, %v5117_v31  ;;  %v5128_v39 = vadd.f32 %v5112_v63, %v5075_v23  ;;  %v5070_v23 = vmul.f32 %v9592_v27, %v10116_v56 }
 0xe4c   : > { %6846 = vmatmul.mubr.msk.f32.gmra.mrb[120].mxu0 %vm659_vm0, %v6838_v55  ;;  %v5124_v36 = vadd.f32 %v5108_v26, %v5071_v37  ;;  %v5167_v37 = vmul.f32 %v9617_v18, %v10120_v1 }
 0xe4d   : > { %6850 = vmatmul.mubr.msk.f32.gmra.mrb[120].mxu1 %vm659_vm0, %v6838_v55  ;;  %4754 = vmatprep.mubr.f32.mxu0 %v10075_v47  ;;  %v10114_v55 = vld [vmem:[#allocation21_spill] sm:$0xff]  ;;  %v5186_v3 = vadd.f32 %v5170_v58, %v10113_v41  ;;  %v9691_v41 = vpop.eup %7879  ;;  %v5130_v58 = vadd.f32 %v5114_v16, %v5077_v54  ;;  %v5109_v16 = vmul.f32 %v9600_v59, %v10115_v24 }
 0xe4e   : > { %4843 = vmatprep.mubr.f32.mxu1 %v10075_v47  ;;  %v5191_v13 = vadd.f32 %v5175_v9, %v10114_v55  ;;  %v5188_v29 = vadd.f32 %v5172_v46, %v10114_v55  ;;  %v5190_v57 = vadd.f32 %v5174_v14, %v10114_v55  ;;  %v5177_v43 = vadd.f32 %v5161_v30, %v5124_v36  ;;  %v10121_v14 = vld [vmem:[#allocation4_spill] sm:$0xff]  ;;  %v4658_v36 = vpop.permute.xlu1 %4657 }
 0xe50   : > { %6847 = vmatmul.mubr.msk.f32.gmra.mrb[122].mxu0 %vm659_vm0, %v6839_v33 }
 0xe51   : > { %6851 = vmatmul.mubr.msk.f32.gmra.mrb[122].mxu1 %vm659_vm0, %v6839_v33  ;;  %4930 = vmatprep.mubr.f32.mxu0 %v10075_v47  ;;  %v5189_v33 = vadd.f32 %v5173_v17, %v10114_v55  ;;  %v5165_v17 = vmul.f32 %v9605_v5, %v10120_v1  ;;  %v5073_v5 = vmul.f32 %v9583_v50, %v10116_v56 }
 0xe52   : > { %5001 = vmatprep.mubr.f32.mxu1 %v10075_v47  ;;  %v9704_v50 = vadd.f32 %v5177_v43, %v8579_v7 }
 0xe53   : > { %7881 = vtanh.f32 %v5189_v33  ;;  %v5181_v52 = vadd.f32 %v5165_v17, %v5128_v39  ;;  %v5111_v17 = vmul.f32 %v9597_v21, %v10119_v60 }
 0xe54   : > { %7883 = vtanh.f32 %v5187_v15 }
 0xe55   : > { %7885 = vtanh.f32 %v5191_v13  ;;  %v5163_v13 = vmul.f32 %v9617_v18, %v10106_v28  ;;  %v5107_v18 = vmul.f32 %v9597_v21, %v10115_v24  ;;  %v5164_v21 = vmul.f32 %v9620_v12, %v10120_v1 }
 0xe56   : > { %7887 = vtanh.f32 %v5184_v8  ;;  %v5126_v8 = vadd.f32 %v5110_v10, %v5073_v5  ;;  %v5166_v24 = vmul.f32 %v9633_v35, %v10120_v1 }
 0xe57   : > { %7889 = vtanh.f32 %v5188_v29 }
 0xe58   : > { %7891 = vtanh.f32 %v5186_v3  ;;  %v5179_v30 = vadd.f32 %v5163_v13, %v5126_v8 }
 0xe59   : > { %7893 = vtanh.f32 %v5190_v57 }
 0xe5d   : > { %v9695_v55 = vpop.eup %7881 }
 0xe5e   : > { %v9697_v15 = vpop.eup %7883 }
 0xe5f   : > { %v9701_v46 = vpop.eup %7885 }
 0xe60   : > { %v9706_v29 = vpop.eup %7887 }
 0xf17   : > { %v4738_v62 = vpop.f32.mrb[116].mxu0 }
 0xf18   : > { %v4739_v0 = vadd.f32 %v4738_v62, %v10117_v44  ;;  %v4827_v48 = vpop.f32.mrb[116].mxu1  ;;  %v4740_v42 = vpop.f32.mrb[117].mxu0  ;;  %v9710_v62 = vadd.f32 %v5181_v52, %v8590_v2  ;;  %v5160_v52 = vmul.f32 %v9620_v12, %v10106_v28 }
 0xf19   : > { %v4828_v49 = vadd.f32 %v4827_v48, %v10117_v44  ;;  %v4741_v4 = vadd.f32 %v4740_v42, %v10117_v44  ;;  %v4829_v32 = vpop.f32.mrb[117].mxu1 }
 0xf1a   : > { %7895 = vtanh.f32 %v4739_v0  ;;  %v4830_v11 = vadd.f32 %v4829_v32, %v10117_v44  ;;  %v9714_v44 = vpop.eup %7889 }
 0xf1b   : > { %7897 = vtanh.f32 %v4828_v49  ;;  %v4744_v61 = vpop.f32.mrb[118].mxu0  ;;  %v9720_v63 = vpop.eup %7891 }
 0xf1c   : > { %7899 = vtanh.f32 %v4741_v4  ;;  %v4745_v51 = vadd.f32 %v4744_v61, %v4648_v22  ;;  %v4833_v25 = vpop.f32.mrb[118].mxu1  ;;  %v4746_v31 = vpop.f32.mrb[119].mxu0  ;;  %v5074_v4 = vmul.f32 %v9592_v27, %v10118_v6 }
 0xf1d   : > { %7901 = vtanh.f32 %v4830_v11  ;;  %v4834_v33 = vadd.f32 %v4833_v25, %v4648_v22  ;;  %v4747_v9 = vadd.f32 %v4746_v31, %v4648_v22  ;;  %v4835_v53 = vpop.f32.mrb[119].mxu1  ;;  %v9727_v32 = vpop.eup %7893 }
 0xf1e   : > { %7903 = vtanh.f32 %v4745_v51  ;;  %v4836_v20 = vadd.f32 %v4835_v53, %v4648_v22  ;;  %v5076_v22 = vmul.f32 %v9610_v38, %v10118_v6  ;;  %v5113_v51 = vmul.f32 %v9600_v59, %v10119_v60 }
 0xf1f   : > { %7905 = vtanh.f32 %v4834_v33  ;;  %v4750_v34 = vpop.f32.mrb[120].mxu0  ;;  %v5183_v59 = vadd.f32 %v5167_v37, %v5130_v58  ;;  %v5123_v60 = vadd.f32 %v5107_v18, %v5070_v23  ;;  %v5127_v43 = vadd.f32 %v5111_v17, %v5074_v4 }
 0xf20   : > { %7907 = vtanh.f32 %v4747_v9  ;;  %v4751_v3 = vadd.f32 %v4750_v34, %v10121_v14  ;;  %v4839_v57 = vpop.f32.mrb[120].mxu1  ;;  %v4752_v26 = vpop.f32.mrb[121].mxu0  ;;  %v5072_v9 = vmul.f32 %v9610_v38, %v10116_v56  ;;  %v5129_v34 = vadd.f32 %v5113_v51, %v5076_v22 }
 0xf21   : > { %7909 = vtanh.f32 %v4836_v20  ;;  %v4840_v0 = vadd.f32 %v4839_v57, %v10121_v14  ;;  %v4753_v48 = vadd.f32 %v4752_v26, %v10121_v14  ;;  %v4841_v42 = vpop.f32.mrb[121].mxu1  ;;  %v5199_v38 = vadd.f32 %v5183_v59, %v8590_v2 }
 0xf22   : > { %7911 = vtanh.f32 %v4751_v3  ;;  %v4842_v49 = vadd.f32 %v4841_v42, %v10121_v14  ;;  %v5125_v13 = vadd.f32 %v5109_v16, %v5072_v9  ;;  %v5180_v56 = vadd.f32 %v5164_v21, %v5127_v43  ;;  %v5219_v9 = vld [vmem:[%s9983_s5 + $0x18] sm:$0xff] }
 0xf23   : > { %7913 = vtanh.f32 %v4840_v0  ;;  %v4756_v11 = vpop.f32.mrb[122].mxu0  ;;  %v5195_v57 = vadd.f32 %v5179_v30, %v8579_v7  ;;  %v5162_v58 = vmul.f32 %v9633_v35, %v10106_v28  ;;  %v5182_v26 = vadd.f32 %v5166_v24, %v5129_v34 }
 0xf24   : > { %v7896_v61 = vpop.eup %7895  ;;  %7915 = vtanh.f32 %v4753_v48  ;;  %v4757_v54 = vadd.f32 %v4756_v11, %v4658_v36  ;;  %v4845_v10 = vpop.f32.mrb[122].mxu1  ;;  %v5176_v12 = vadd.f32 %v5160_v52, %v5123_v60  ;;  %v5196_v48 = vadd.f32 %v5180_v56, %v8590_v2 }
 0xf25   : > { %v4758_v27 = vpop.f32.mrb[123].mxu0  ;;  %v7898_v25 = vpop.eup %7897  ;;  %7917 = vtanh.f32 %v4842_v49  ;;  %v4846_v31 = vadd.f32 %v4845_v10, %v4658_v36  ;;  %v5178_v49 = vadd.f32 %v5162_v58, %v5125_v13  ;;  %v5198_v4 = vadd.f32 %v5182_v26, %v8590_v2 }
 0xf26   : > { %v4759_v39 = vadd.f32 %v4758_v27, %v4658_v36  ;;  %v4847_v5 = vpop.f32.mrb[123].mxu1  ;;  %v7900_v6 = vpop.eup %7899  ;;  %7919 = vtanh.f32 %v4757_v54  ;;  %v5192_v28 = vadd.f32 %v5176_v12, %v8579_v7  ;;  %v7218_v27 = vpack.c.bf16 %v9695_v55, %v9691_v41 }
 0xf27   : > { %v4848_v33 = vadd.f32 %v4847_v5, %v4658_v36  ;;  %v7902_v53 = vpop.eup %7901  ;;  %7921 = vtanh.f32 %v4846_v31  ;;  %v7226_v16 = vpack.c.bf16 %v9701_v46, %v9697_v15  ;;  %v7220_v31 = vpack.c.bf16 %v9714_v44, %v9706_v29  ;;  %v8104_v5 = vld [vmem:[%s9985_s7] sm:$0x1] }
 0xf28   : > { %v7904_v20 = vpop.eup %7903  ;;  %7923 = vtanh.f32 %v4759_v39  ;;  %v7228_v41 = vpack.c.bf16 %v9727_v32, %v9720_v63  ;;  %v5216_v63 = vld [vmem:[%s9983_s5] sm:$0xff]  ;;  %v5217_v32 = vld [vmem:[%s9983_s5 + $0x8] sm:$0xff] }
 0xf29   : > { %v7906_v8 = vpop.eup %7905  ;;  %7925 = vtanh.f32 %v4848_v33  ;;  %v7204_v14 = vpack.c.bf16 %v7904_v20, %v7896_v61  ;;  %v5218_v33 = vld [vmem:[%s9983_s5 + $0x10] sm:$0xff] }
 0xf2a   : > { %v7908_v3 = vpop.eup %7907  ;;  %v7212_v1 = vpack.c.bf16 %v7906_v8, %v7898_v25  ;;  %7927 = vtanh.f32 %v9704_v50  ;;  %v5194_v50 = vadd.f32 %v5178_v49, %v8579_v7 }
 0xf2b   : > { %v7910_v37 = vpop.eup %7909  ;;  %v7202_v0 = vpack.c.bf16 %v7908_v3, %v7900_v6  ;;  %7929 = vtanh.f32 %v9710_v62 }
 0xf2c   : > { %v7912_v42 = vpop.eup %7911  ;;  %v7210_v23 = vpack.c.bf16 %v7910_v37, %v7902_v53  ;;  %7931 = vtanh.f32 %v5199_v38 }
 0xf2d   : > { %v7914_v18 = vpop.eup %7913  ;;  %7203 = vmatprep.subr.bf16.mxu0 %v7202_v0  ;;  %7933 = vtanh.f32 %v5195_v57 }
 0xf2e   : > { %v7916_v35 = vpop.eup %7915  ;;  %7211 = vmatprep.subr.bf16.mxu1 %v7210_v23  ;;  %7205 = vmatpush1.bf16.msra.mxu0 %v7204_v14  ;;  %7935 = vtanh.f32 %v5196_v48  ;;  %v5232_v23 = vpop.permute.xlu1 %5231 }
 0xf2f   : > { %v7918_v36 = vpop.eup %7917  ;;  %7213 = vmatpush1.bf16.msra.mxu1 %v7212_v1  ;;  %7937 = vtanh.f32 %v5198_v4  ;;  %v10122_v1 = vld [vmem:[#allocation10_spill] sm:$0xff] }
 0xf30   : > { %v7920_v11 = vpop.eup %7919  ;;  %7939 = vtanh.f32 %v5192_v28 }
 0xf31   : > { %v7922_v62 = vpop.eup %7921  ;;  %v7208_v30 = vpack.c.bf16 %v7920_v11, %v7912_v42  ;;  %7941 = vtanh.f32 %v5194_v50 }
 0xf32   : > { %v7924_v2 = vpop.eup %7923  ;;  %v7216_v17 = vpack.c.bf16 %v7922_v62, %v7914_v18 }
 0xf33   : > { %v7926_v22 = vpop.eup %7925  ;;  %v7206_v61 = vpack.c.bf16 %v7924_v2, %v7916_v35 }
 0xf34   : > { %v7214_v54 = vpack.c.bf16 %v7926_v22, %v7918_v36  ;;  %v7928_v10 = vpop.eup %7927 }
 0xf35   : > { %7207 = vmatprep.subr.bf16.mxu0 %v7206_v61  ;;  %v7930_v7 = vpop.eup %7929 }
 0xf36   : > { %7215 = vmatprep.subr.bf16.mxu1 %v7214_v54  ;;  %7209 = vmatpush1.bf16.msra.mxu0 %v7208_v30  ;;  %v7932_v51 = vpop.eup %7931  ;;  %v7222_v55 = vpack.c.bf16 %v7930_v7, %v7928_v10  ;;  %v10123_v30 = vld [vmem:[#allocation11_spill] sm:$0xff]  ;;  %v5242_v7 = vpop.permute.xlu1 %5241 }
 0xf37   : > { %7217 = vmatpush1.bf16.msra.mxu1 %v7216_v17  ;;  %7219 = vmatprep.subr.bf16.mxu0 %v7218_v27  ;;  %v7934_v25 = vpop.eup %7933 }
 0xf38   : > { %7227 = vmatprep.subr.bf16.mxu1 %v7226_v16  ;;  %v7936_v39 = vpop.eup %7935  ;;  %v7230_v46 = vpack.c.bf16 %v7932_v51, %v7934_v25 }
 0xf39   : > { %6852 = vmatmul.mubr.msk.f32.vlgmr.msra.gmra.mrb[124].mxu0 %vm659_vm0, %v8104_v5  ;;  %v7938_v15 = vpop.eup %7937 }
 0xf3a   : > { %6853 = vmatmul.mubr.msk.f32.vlgmr.msra.gmra.mrb[124].mxu1 %vm659_vm0, %v8104_v5  ;;  %7221 = vmatpush1.bf16.msra.mxu0 %v7220_v31  ;;  %v7940_v21 = vpop.eup %7939 }
 0xf3b   : > { %7229 = vmatpush1.bf16.msra.mxu1 %v7228_v41  ;;  %7223 = vmatprep.subr.bf16.mxu0 %v7222_v55  ;;  %v7942_v29 = vpop.eup %7941  ;;  %v7224_v44 = vpack.c.bf16 %v7936_v39, %v7940_v21 }
 0xf3c   : > { %7231 = vmatprep.subr.bf16.mxu1 %v7230_v46  ;;  %5320 = vmatprep.mubr.f32.mxu0 %v10075_v47  ;;  %v7232_v6 = vpack.c.bf16 %v7938_v15, %v7942_v29 }
 0xf3d   : > { %5409 = vmatprep.mubr.f32.mxu1 %v10075_v47 }
 0xf3e   : > { %7225 = vmatpush1.bf16.msra.mxu0 %v7224_v44 }
 0xf3f   : > { %7233 = vmatpush1.bf16.msra.mxu1 %v7232_v6 }
 0xf41   : > { %6854 = vmatmul.mubr.msk.f32.vlgmr.msra.gmra.mrb[126].mxu0 %vm659_vm0, %v5216_v63 }
 0xf42   : > { %6858 = vmatmul.mubr.msk.f32.vlgmr.msra.gmra.mrb[126].mxu1 %vm659_vm0, %v5216_v63  ;;  %5326 = vmatprep.mubr.f32.mxu0 %v10075_v47 }
 0xf43   : > { %5415 = vmatprep.mubr.f32.mxu1 %v10075_v47 }
 0xf45   : > { %6855 = vmatmul.mubr.msk.f32.gmra.mrb[128].mxu0 %vm659_vm0, %v5217_v32 }
 0xf46   : > { %6859 = vmatmul.mubr.msk.f32.gmra.mrb[128].mxu1 %vm659_vm0, %v5217_v32  ;;  %5332 = vmatprep.mubr.f32.mxu0 %v10075_v47 }
 0xf47   : > { %5421 = vmatprep.mubr.f32.mxu1 %v10075_v47 }
 0xf49   : > { %6856 = vmatmul.mubr.msk.f32.gmra.mrb[130].mxu0 %vm659_vm0, %v5218_v33 }
 0xf4a   : > { %6860 = vmatmul.mubr.msk.f32.gmra.mrb[130].mxu1 %vm659_vm0, %v5218_v33  ;;  %5338 = vmatprep.mubr.f32.mxu0 %v10075_v47 }
 0xf4b   : > { %5427 = vmatprep.mubr.f32.mxu1 %v10075_v47 }
 0xf4d   : > { %6857 = vmatmul.mubr.msk.f32.gmra.mrb[132].mxu0 %vm659_vm0, %v5219_v9 }
 0xf4e   : > { %6861 = vmatmul.mubr.msk.f32.gmra.mrb[132].mxu1 %vm659_vm0, %v5219_v9  ;;  %5554 = vmatprep.mubr.f32.mxu0 %v10075_v47 }
 0xf4f   : > { %5643 = vmatprep.mubr.f32.mxu1 %v10075_v47 }
0x100c   : > { %v4932_v24 = vpop.f32.mrb[124].mxu0 }
0x100d   : > { %v4933_v53 = vadd.f32 %v4932_v24, %v9030_v45  ;;  %v5003_v59 = vpop.f32.mrb[124].mxu1  ;;  %v4934_v60 = vpop.f32.mrb[125].mxu0 }
0x100e   : > { %v5004_v43 = vadd.f32 %v5003_v59, %v9030_v45  ;;  %v4935_v20 = vadd.f32 %v4934_v60, %v9030_v45  ;;  %v5005_v52 = vpop.f32.mrb[125].mxu1 }
0x100f   : > { %v5006_v13 = vadd.f32 %v5005_v52, %v9030_v45 }
0x1010   : > { %v5012_v34 = vcombine.low %v4933_v53, %v4935_v20 }
0x1011   : > { %v5013_v8 = vcombine.low %v5004_v43, %v5006_v13 }
0x1012   : > { %v5020_v14 = vrot.slane %v5012_v34, %v9036_v40 }
0x1013   : > { %v5027_v38 = vrot.slane %v5013_v8, %v9036_v40 }
0x1014   : > { %v5322_v56 = vpop.f32.mrb[126].mxu0 }
0x1015   : > { %v5028_v3 = vcombine.low %v5020_v14, %v5027_v38  ;;  %v5323_v57 = vadd.f32 %v5322_v56, %v10122_v1  ;;  %v5411_v58 = vpop.f32.mrb[126].mxu1  ;;  %v5324_v26 = vpop.f32.mrb[127].mxu0 }
0x1016   : > { %v5412_v37 = vadd.f32 %v5411_v58, %v10122_v1  ;;  %v5325_v0 = vadd.f32 %v5324_v26, %v10122_v1  ;;  %v5413_v12 = vpop.f32.mrb[127].mxu1  ;;  %v6864_v58 = vld [vmem:[%s9983_s5 + $0x30] sm:$0xff]  ;;  %v6865_v26 = vld [vmem:[%s9983_s5 + $0x38] sm:$0xff] }
0x1017   : > { %v5035_v48 = vrot.slane %v5028_v3, %v9036_v40  ;;  %7943 = vtanh.f32 %v5323_v57  ;;  %v5414_v42 = vadd.f32 %v5413_v12, %v10122_v1  ;;  %v6862_v1 = vld [vmem:[%s9983_s5 + $0x20] sm:$0xff]  ;;  %v6863_v57 = vld [vmem:[%s9983_s5 + $0x28] sm:$0xff] }
0x1018   : > { %7945 = vtanh.f32 %v5412_v37  ;;  %v5328_v49 = vpop.f32.mrb[128].mxu0 }
0x1019   : > { %5037 = vst.msk [vmem:[%s9045_s18 + $0x8] sm:$0xf] %vm9048_vm1, %v5035_v48  ;;  %7947 = vtanh.f32 %v5325_v0  ;;  %v5329_v4 = vadd.f32 %v5328_v49, %v5232_v23  ;;  %v5417_v18 = vpop.f32.mrb[128].mxu1  ;;  %v5330_v28 = vpop.f32.mrb[129].mxu0  ;;  %v10124_v0 = vld [vmem:[#allocation12_spill] sm:$0xff] }
0x101a   : > { %7949 = vtanh.f32 %v5414_v42  ;;  %v5418_v35 = vadd.f32 %v5417_v18, %v5232_v23  ;;  %v5331_v50 = vadd.f32 %v5330_v28, %v5232_v23  ;;  %v5419_v36 = vpop.f32.mrb[129].mxu1  ;;  %v5466_v28 = vpop.permute.xlu1 %5465 }
0x101b   : > { %7951 = vtanh.f32 %v5329_v4  ;;  %v5420_v11 = vadd.f32 %v5419_v36, %v5232_v23 }
0x101c   : > { %7953 = vtanh.f32 %v5418_v35  ;;  %v5334_v62 = vpop.f32.mrb[130].mxu0 }
0x101d   : > { %7955 = vtanh.f32 %v5331_v50  ;;  %v5335_v2 = vadd.f32 %v5334_v62, %v10123_v30  ;;  %v5423_v17 = vpop.f32.mrb[130].mxu1  ;;  %v5336_v22 = vpop.f32.mrb[131].mxu0 }
0x101e   : > { %7957 = vtanh.f32 %v5420_v11  ;;  %v5424_v61 = vadd.f32 %v5423_v17, %v10123_v30  ;;  %v5337_v54 = vadd.f32 %v5336_v22, %v10123_v30  ;;  %v5425_v10 = vpop.f32.mrb[131].mxu1 }
0x101f   : > { %7959 = vtanh.f32 %v5335_v2  ;;  %v5426_v27 = vadd.f32 %v5425_v10, %v10123_v30 }
0x1020   : > { %7961 = vtanh.f32 %v5424_v61  ;;  %v5340_v16 = vpop.f32.mrb[132].mxu0  ;;  %v10125_v61 = vld [vmem:[#allocation14_spill] sm:$0xff] }
0x1021   : > { %v7944_v51 = vpop.eup %7943  ;;  %7963 = vtanh.f32 %v5337_v54  ;;  %v5341_v25 = vadd.f32 %v5340_v16, %v5242_v7  ;;  %v5429_v31 = vpop.f32.mrb[132].mxu1 }
0x1022   : > { %v5342_v39 = vpop.f32.mrb[133].mxu0  ;;  %v7946_v5 = vpop.eup %7945  ;;  %7965 = vtanh.f32 %v5426_v27  ;;  %v5430_v41 = vadd.f32 %v5429_v31, %v5242_v7 }
0x1023   : > { %v5343_v55 = vadd.f32 %v5342_v39, %v5242_v7  ;;  %v5431_v15 = vpop.f32.mrb[133].mxu1  ;;  %v7948_v46 = vpop.eup %7947  ;;  %7967 = vtanh.f32 %v5341_v25 }
0x1024   : > { %v5432_v21 = vadd.f32 %v5431_v15, %v5242_v7  ;;  %v7950_v29 = vpop.eup %7949  ;;  %7969 = vtanh.f32 %v5430_v41  ;;  %v5476_v31 = vpop.permute.xlu1 %5475 }
0x1025   : > { %v7952_v44 = vpop.eup %7951  ;;  %7971 = vtanh.f32 %v5343_v55 }
0x1026   : > { %v7954_v6 = vpop.eup %7953  ;;  %7973 = vtanh.f32 %v5432_v21  ;;  %v7236_v63 = vpack.c.bf16 %v7952_v44, %v7944_v51 }
0x1027   : > { %v7956_v32 = vpop.eup %7955  ;;  %v7244_v33 = vpack.c.bf16 %v7954_v6, %v7946_v5 }
0x1028   : > { %v7958_v9 = vpop.eup %7957  ;;  %v7234_v24 = vpack.c.bf16 %v7956_v32, %v7948_v46 }
0x1029   : > { %v7960_v53 = vpop.eup %7959  ;;  %v7242_v59 = vpack.c.bf16 %v7958_v9, %v7950_v29 }
0x102a   : > { %v7962_v60 = vpop.eup %7961  ;;  %7235 = vmatprep.subr.bf16.mxu0 %v7234_v24 }
0x102b   : > { %v7964_v43 = vpop.eup %7963  ;;  %7243 = vmatprep.subr.bf16.mxu1 %v7242_v59  ;;  %7237 = vmatpush1.bf16.msra.mxu0 %v7236_v63 }
0x102c   : > { %v7966_v20 = vpop.eup %7965  ;;  %7245 = vmatpush1.bf16.msra.mxu1 %v7244_v33 }
0x102d   : > { %v7968_v52 = vpop.eup %7967 }
0x102e   : > { %v7970_v13 = vpop.eup %7969  ;;  %v7240_v34 = vpack.c.bf16 %v7968_v52, %v7960_v53 }
0x102f   : > { %v7972_v8 = vpop.eup %7971  ;;  %v7248_v14 = vpack.c.bf16 %v7970_v13, %v7962_v60 }
0x1030   : > { %v7974_v38 = vpop.eup %7973  ;;  %v7238_v56 = vpack.c.bf16 %v7972_v8, %v7964_v43 }
0x1031   : > { %v7246_v3 = vpack.c.bf16 %v7974_v38, %v7966_v20 }
0x1032   : > { %7239 = vmatprep.subr.bf16.mxu0 %v7238_v56 }
0x1033   : > { %7247 = vmatprep.subr.bf16.mxu1 %v7246_v3  ;;  %7241 = vmatpush1.bf16.msra.mxu0 %v7240_v34 }
0x1034   : > { %7249 = vmatpush1.bf16.msra.mxu1 %v7248_v14 }
0x1036   : > { %6870 = vmatmul.mubr.msk.f32.vlgmr.msra.gmra.mrb[134].mxu0 %vm659_vm0, %v6862_v1 }
0x1037   : > { %6874 = vmatmul.mubr.msk.f32.vlgmr.msra.gmra.mrb[134].mxu1 %vm659_vm0, %v6862_v1  ;;  %5560 = vmatprep.mubr.f32.mxu0 %v10075_v47 }
0x1038   : > { %5649 = vmatprep.mubr.f32.mxu1 %v10075_v47 }
0x103a   : > { %6871 = vmatmul.mubr.msk.f32.gmra.mrb[136].mxu0 %vm659_vm0, %v6863_v57 }
0x103b   : > { %6875 = vmatmul.mubr.msk.f32.gmra.mrb[136].mxu1 %vm659_vm0, %v6863_v57  ;;  %5566 = vmatprep.mubr.f32.mxu0 %v10075_v47 }
0x103c   : > { %5655 = vmatprep.mubr.f32.mxu1 %v10075_v47 }
0x103e   : > { %6872 = vmatmul.mubr.msk.f32.gmra.mrb[138].mxu0 %vm659_vm0, %v6864_v58 }
0x103f   : > { %6876 = vmatmul.mubr.msk.f32.gmra.mrb[138].mxu1 %vm659_vm0, %v6864_v58  ;;  %5572 = vmatprep.mubr.f32.mxu0 %v10075_v47 }
0x1040   : > { %5661 = vmatprep.mubr.f32.mxu1 %v10075_v47 }
0x1042   : > { %6873 = vmatmul.mubr.msk.f32.gmra.mrb[140].mxu0 %vm659_vm0, %v6865_v26 }
0x1043   : > { %6877 = vmatmul.mubr.msk.f32.gmra.mrb[140].mxu1 %vm659_vm0, %v6865_v26  ;;  %5788 = vmatprep.mubr.f32.mxu0 %v10075_v47 }
0x1044   : > { %5877 = vmatprep.mubr.f32.mxu1 %v10075_v47 }
0x1109   : > { %v5556_v37 = vpop.f32.mrb[134].mxu0 }
0x110a   : > { %v5557_v12 = vadd.f32 %v5556_v37, %v10124_v0  ;;  %v5645_v48 = vpop.f32.mrb[134].mxu1  ;;  %v5558_v42 = vpop.f32.mrb[135].mxu0  ;;  %v6878_v37 = vld [vmem:[%s9983_s5 + $0x40] sm:$0xff] }
0x110b   : > { %v5646_v23 = vadd.f32 %v5645_v48, %v10124_v0  ;;  %v5559_v49 = vadd.f32 %v5558_v42, %v10124_v0  ;;  %v5647_v4 = vpop.f32.mrb[135].mxu1  ;;  %v6881_v48 = vld [vmem:[%s9983_s5 + $0x58] sm:$0xff] }
0x110c   : > { %7975 = vtanh.f32 %v5557_v12  ;;  %v5648_v18 = vadd.f32 %v5647_v4, %v10124_v0  ;;  %v6879_v0 = vld [vmem:[%s9983_s5 + $0x48] sm:$0xff]  ;;  %v6880_v12 = vld [vmem:[%s9983_s5 + $0x50] sm:$0xff] }
0x110d   : > { %7977 = vtanh.f32 %v5646_v23  ;;  %v5562_v35 = vpop.f32.mrb[136].mxu0  ;;  %v10126_v23 = vld [vmem:[#allocation24_spill] sm:$0xff] }
0x110e   : > { %7979 = vtanh.f32 %v5559_v49  ;;  %v5563_v50 = vadd.f32 %v5562_v35, %v5466_v28  ;;  %v5651_v36 = vpop.f32.mrb[136].mxu1  ;;  %v5564_v11 = vpop.f32.mrb[137].mxu0 }
0x110f   : > { %7981 = vtanh.f32 %v5648_v18  ;;  %v5652_v62 = vadd.f32 %v5651_v36, %v5466_v28  ;;  %v5565_v30 = vadd.f32 %v5564_v11, %v5466_v28  ;;  %v5653_v2 = vpop.f32.mrb[137].mxu1  ;;  %v5700_v11 = vpop.permute.xlu1 %5699 }
0x1110   : > { %7983 = vtanh.f32 %v5563_v50  ;;  %v5654_v17 = vadd.f32 %v5653_v2, %v5466_v28 }
0x1111   : > { %7985 = vtanh.f32 %v5652_v62  ;;  %v5568_v22 = vpop.f32.mrb[138].mxu0 }
0x1112   : > { %7987 = vtanh.f32 %v5565_v30  ;;  %v5569_v54 = vadd.f32 %v5568_v22, %v10125_v61  ;;  %v5657_v10 = vpop.f32.mrb[138].mxu1  ;;  %v5570_v27 = vpop.f32.mrb[139].mxu0 }
0x1113   : > { %7989 = vtanh.f32 %v5654_v17  ;;  %v5658_v7 = vadd.f32 %v5657_v10, %v10125_v61  ;;  %v5571_v16 = vadd.f32 %v5570_v27, %v10125_v61  ;;  %v5659_v51 = vpop.f32.mrb[139].mxu1 }
0x1114   : > { %7991 = vtanh.f32 %v5569_v54  ;;  %v5660_v25 = vadd.f32 %v5659_v51, %v10125_v61 }
0x1115   : > { %7993 = vtanh.f32 %v5658_v7  ;;  %v5574_v39 = vpop.f32.mrb[140].mxu0  ;;  %v10127_v7 = vld [vmem:[#allocation25_spill] sm:$0xff] }
0x1116   : > { %v7976_v5 = vpop.eup %7975  ;;  %7995 = vtanh.f32 %v5571_v16  ;;  %v5575_v41 = vadd.f32 %v5574_v39, %v5476_v31  ;;  %v5663_v55 = vpop.f32.mrb[140].mxu1 }
0x1117   : > { %v5576_v15 = vpop.f32.mrb[141].mxu0  ;;  %v7978_v46 = vpop.eup %7977  ;;  %7997 = vtanh.f32 %v5660_v25  ;;  %v5664_v21 = vadd.f32 %v5663_v55, %v5476_v31 }
0x1118   : > { %v5577_v29 = vadd.f32 %v5576_v15, %v5476_v31  ;;  %v5665_v44 = vpop.f32.mrb[141].mxu1  ;;  %v7980_v6 = vpop.eup %7979  ;;  %7999 = vtanh.f32 %v5575_v41 }
0x1119   : > { %v5666_v63 = vadd.f32 %v5665_v44, %v5476_v31  ;;  %v7982_v32 = vpop.eup %7981  ;;  %8001 = vtanh.f32 %v5664_v21  ;;  %v5710_v55 = vpop.permute.xlu1 %5709 }
0x111a   : > { %v7984_v33 = vpop.eup %7983  ;;  %8003 = vtanh.f32 %v5577_v29 }
0x111b   : > { %v7986_v9 = vpop.eup %7985  ;;  %8005 = vtanh.f32 %v5666_v63  ;;  %v7252_v24 = vpack.c.bf16 %v7984_v33, %v7976_v5 }
0x111c   : > { %v7988_v53 = vpop.eup %7987  ;;  %v7260_v59 = vpack.c.bf16 %v7986_v9, %v7978_v46 }
0x111d   : > { %v7990_v60 = vpop.eup %7989  ;;  %v7250_v43 = vpack.c.bf16 %v7988_v53, %v7980_v6 }
0x111e   : > { %v7992_v20 = vpop.eup %7991  ;;  %v7258_v52 = vpack.c.bf16 %v7990_v60, %v7982_v32 }
0x111f   : > { %v7994_v13 = vpop.eup %7993  ;;  %7251 = vmatprep.subr.bf16.mxu0 %v7250_v43 }
0x1120   : > { %v7996_v34 = vpop.eup %7995  ;;  %7259 = vmatprep.subr.bf16.mxu1 %v7258_v52  ;;  %7253 = vmatpush1.bf16.msra.mxu0 %v7252_v24 }
0x1121   : > { %v7998_v8 = vpop.eup %7997  ;;  %7261 = vmatpush1.bf16.msra.mxu1 %v7260_v59 }
0x1122   : > { %v8000_v14 = vpop.eup %7999 }
0x1123   : > { %v8002_v38 = vpop.eup %8001  ;;  %v7256_v56 = vpack.c.bf16 %v8000_v14, %v7992_v20 }
0x1124   : > { %v8004_v3 = vpop.eup %8003  ;;  %v7264_v1 = vpack.c.bf16 %v8002_v38, %v7994_v13 }
0x1125   : > { %v8006_v57 = vpop.eup %8005  ;;  %v7254_v58 = vpack.c.bf16 %v8004_v3, %v7996_v34 }
0x1126   : > { %v7262_v26 = vpack.c.bf16 %v8006_v57, %v7998_v8 }
0x1127   : > { %7255 = vmatprep.subr.bf16.mxu0 %v7254_v58 }
0x1128   : > { %7263 = vmatprep.subr.bf16.mxu1 %v7262_v26  ;;  %7257 = vmatpush1.bf16.msra.mxu0 %v7256_v56 }
0x1129   : > { %7265 = vmatpush1.bf16.msra.mxu1 %v7264_v1 }
0x112b   : > { %6886 = vmatmul.mubr.msk.f32.vlgmr.msra.gmra.mrb[142].mxu0 %vm659_vm0, %v6878_v37 }
0x112c   : > { %6890 = vmatmul.mubr.msk.f32.vlgmr.msra.gmra.mrb[142].mxu1 %vm659_vm0, %v6878_v37  ;;  %5794 = vmatprep.mubr.f32.mxu0 %v10075_v47 }
0x112d   : > { %5883 = vmatprep.mubr.f32.mxu1 %v10075_v47 }
0x112f   : > { %6887 = vmatmul.mubr.msk.f32.gmra.mrb[144].mxu0 %vm659_vm0, %v6879_v0 }
0x1130   : > { %6891 = vmatmul.mubr.msk.f32.gmra.mrb[144].mxu1 %vm659_vm0, %v6879_v0  ;;  %5800 = vmatprep.mubr.f32.mxu0 %v10075_v47 }
0x1131   : > { %5889 = vmatprep.mubr.f32.mxu1 %v10075_v47 }
0x1133   : > { %6888 = vmatmul.mubr.msk.f32.gmra.mrb[146].mxu0 %vm659_vm0, %v6880_v12 }
0x1134   : > { %6892 = vmatmul.mubr.msk.f32.gmra.mrb[146].mxu1 %vm659_vm0, %v6880_v12  ;;  %5806 = vmatprep.mubr.f32.mxu0 %v10075_v47 }
0x1135   : > { %5895 = vmatprep.mubr.f32.mxu1 %v10075_v47 }
0x1137   : > { %6889 = vmatmul.mubr.msk.f32.gmra.mrb[148].mxu0 %vm659_vm0, %v6881_v48 }
0x1138   : > { %6893 = vmatmul.mubr.msk.f32.gmra.mrb[148].mxu1 %vm659_vm0, %v6881_v48  ;;  %6022 = vmatprep.mubr.f32.mxu0 %v10075_v47 }
0x1139   : > { %6111 = vmatprep.mubr.f32.mxu1 %v10075_v47 }
0x11fe   : > { %v5790_v42 = vpop.f32.mrb[142].mxu0 }
0x11ff   : > { %v5791_v49 = vadd.f32 %v5790_v42, %v10126_v23  ;;  %v5879_v4 = vpop.f32.mrb[142].mxu1  ;;  %v5792_v18 = vpop.f32.mrb[143].mxu0  ;;  %v6894_v42 = vld [vmem:[%s9983_s5 + $0x60] sm:$0xff] }
0x1200   : > { %v5880_v28 = vadd.f32 %v5879_v4, %v10126_v23  ;;  %v5793_v35 = vadd.f32 %v5792_v18, %v10126_v23  ;;  %v5881_v50 = vpop.f32.mrb[143].mxu1  ;;  %v6897_v4 = vld [vmem:[%s9983_s5 + $0x78] sm:$0xff] }
0x1201   : > { %8007 = vtanh.f32 %v5791_v49  ;;  %v5882_v36 = vadd.f32 %v5881_v50, %v10126_v23  ;;  %v6895_v23 = vld [vmem:[%s9983_s5 + $0x68] sm:$0xff]  ;;  %v6896_v49 = vld [vmem:[%s9983_s5 + $0x70] sm:$0xff] }
0x1202   : > { %8009 = vtanh.f32 %v5880_v28  ;;  %v5796_v62 = vpop.f32.mrb[144].mxu0  ;;  %v10128_v28 = vld [vmem:[#allocation26_spill] sm:$0xff] }
0x1203   : > { %8011 = vtanh.f32 %v5793_v35  ;;  %v5797_v30 = vadd.f32 %v5796_v62, %v5700_v11  ;;  %v5885_v2 = vpop.f32.mrb[144].mxu1  ;;  %v5798_v17 = vpop.f32.mrb[145].mxu0 }
0x1204   : > { %8013 = vtanh.f32 %v5882_v36  ;;  %v5886_v22 = vadd.f32 %v5885_v2, %v5700_v11  ;;  %v5799_v61 = vadd.f32 %v5798_v17, %v5700_v11  ;;  %v5887_v54 = vpop.f32.mrb[145].mxu1  ;;  %v5934_v17 = vpop.permute.xlu1 %5933 }
0x1205   : > { %8015 = vtanh.f32 %v5797_v30  ;;  %v5888_v10 = vadd.f32 %v5887_v54, %v5700_v11 }
0x1206   : > { %8017 = vtanh.f32 %v5886_v22  ;;  %v5802_v27 = vpop.f32.mrb[146].mxu0 }
0x1207   : > { %8019 = vtanh.f32 %v5799_v61  ;;  %v5803_v16 = vadd.f32 %v5802_v27, %v10127_v7  ;;  %v5891_v51 = vpop.f32.mrb[146].mxu1  ;;  %v5804_v25 = vpop.f32.mrb[147].mxu0 }
0x1208   : > { %8021 = vtanh.f32 %v5888_v10  ;;  %v5892_v31 = vadd.f32 %v5891_v51, %v10127_v7  ;;  %v5805_v39 = vadd.f32 %v5804_v25, %v10127_v7  ;;  %v5893_v5 = vpop.f32.mrb[147].mxu1 }
0x1209   : > { %8023 = vtanh.f32 %v5803_v16  ;;  %v5894_v41 = vadd.f32 %v5893_v5, %v10127_v7 }
0x120a   : > { %8025 = vtanh.f32 %v5892_v31  ;;  %v5808_v15 = vpop.f32.mrb[148].mxu0  ;;  %v10129_v31 = vld [vmem:[#allocation27_spill] sm:$0xff] }
0x120b   : > { %v8008_v46 = vpop.eup %8007  ;;  %8027 = vtanh.f32 %v5805_v39  ;;  %v5809_v21 = vadd.f32 %v5808_v15, %v5710_v55  ;;  %v5897_v29 = vpop.f32.mrb[148].mxu1 }
0x120c   : > { %v5810_v44 = vpop.f32.mrb[149].mxu0  ;;  %v8010_v6 = vpop.eup %8009  ;;  %8029 = vtanh.f32 %v5894_v41  ;;  %v5898_v63 = vadd.f32 %v5897_v29, %v5710_v55 }
0x120d   : > { %v5811_v32 = vadd.f32 %v5810_v44, %v5710_v55  ;;  %v5899_v33 = vpop.f32.mrb[149].mxu1  ;;  %v8012_v9 = vpop.eup %8011  ;;  %8031 = vtanh.f32 %v5809_v21 }
0x120e   : > { %v5900_v24 = vadd.f32 %v5899_v33, %v5710_v55  ;;  %v8014_v53 = vpop.eup %8013  ;;  %8033 = vtanh.f32 %v5898_v63  ;;  %v5944_v29 = vpop.permute.xlu1 %5943 }
0x120f   : > { %v8016_v59 = vpop.eup %8015  ;;  %8035 = vtanh.f32 %v5811_v32 }
0x1210   : > { %v8018_v60 = vpop.eup %8017  ;;  %8037 = vtanh.f32 %v5900_v24  ;;  %v7268_v43 = vpack.c.bf16 %v8016_v59, %v8008_v46 }
0x1211   : > { %v8020_v20 = vpop.eup %8019  ;;  %v7276_v52 = vpack.c.bf16 %v8018_v60, %v8010_v6 }
0x1212   : > { %v8022_v13 = vpop.eup %8021  ;;  %v7266_v34 = vpack.c.bf16 %v8020_v20, %v8012_v9 }
0x1213   : > { %v8024_v8 = vpop.eup %8023  ;;  %v7274_v14 = vpack.c.bf16 %v8022_v13, %v8014_v53 }
0x1214   : > { %v8026_v38 = vpop.eup %8025  ;;  %7267 = vmatprep.subr.bf16.mxu0 %v7266_v34 }
0x1215   : > { %v8028_v56 = vpop.eup %8027  ;;  %7275 = vmatprep.subr.bf16.mxu1 %v7274_v14  ;;  %7269 = vmatpush1.bf16.msra.mxu0 %v7268_v43 }
0x1216   : > { %v8030_v3 = vpop.eup %8029  ;;  %7277 = vmatpush1.bf16.msra.mxu1 %v7276_v52 }
0x1217   : > { %v8032_v1 = vpop.eup %8031 }
0x1218   : > { %v8034_v57 = vpop.eup %8033  ;;  %v7272_v58 = vpack.c.bf16 %v8032_v1, %v8024_v8 }
0x1219   : > { %v8036_v26 = vpop.eup %8035  ;;  %v7280_v37 = vpack.c.bf16 %v8034_v57, %v8026_v38 }
0x121a   : > { %v8038_v0 = vpop.eup %8037  ;;  %v7270_v12 = vpack.c.bf16 %v8036_v26, %v8028_v56 }
0x121b   : > { %v7278_v48 = vpack.c.bf16 %v8038_v0, %v8030_v3 }
0x121c   : > { %7271 = vmatprep.subr.bf16.mxu0 %v7270_v12 }
0x121d   : > { %7279 = vmatprep.subr.bf16.mxu1 %v7278_v48  ;;  %7273 = vmatpush1.bf16.msra.mxu0 %v7272_v58 }
0x121e   : > { %7281 = vmatpush1.bf16.msra.mxu1 %v7280_v37 }
0x1220   : > { %6902 = vmatmul.mubr.msk.f32.vlgmr.msra.gmra.mrb[150].mxu0 %vm659_vm0, %v6894_v42 }
0x1221   : > { %6906 = vmatmul.mubr.msk.f32.vlgmr.msra.gmra.mrb[150].mxu1 %vm659_vm0, %v6894_v42  ;;  %6028 = vmatprep.mubr.f32.mxu0 %v10075_v47 }
0x1222   : > { %6117 = vmatprep.mubr.f32.mxu1 %v10075_v47 }
0x1224   : > { %6903 = vmatmul.mubr.msk.f32.gmra.mrb[152].mxu0 %vm659_vm0, %v6895_v23 }
0x1225   : > { %6907 = vmatmul.mubr.msk.f32.gmra.mrb[152].mxu1 %vm659_vm0, %v6895_v23  ;;  %6034 = vmatprep.mubr.f32.mxu0 %v10075_v47 }
0x1226   : > { %6123 = vmatprep.mubr.f32.mxu1 %v10075_v47 }
0x1228   : > { %6904 = vmatmul.mubr.msk.f32.gmra.mrb[154].mxu0 %vm659_vm0, %v6896_v49 }
0x1229   : > { %6908 = vmatmul.mubr.msk.f32.gmra.mrb[154].mxu1 %vm659_vm0, %v6896_v49  ;;  %6040 = vmatprep.mubr.f32.mxu0 %v10075_v47 }
0x122a   : > { %6129 = vmatprep.mubr.f32.mxu1 %v10075_v47 }
0x122c   : > { %6905 = vmatmul.mubr.msk.f32.gmra.mrb[156].mxu0 %vm659_vm0, %v6897_v4 }
0x122d   : > { %6909 = vmatmul.mubr.msk.f32.gmra.mrb[156].mxu1 %vm659_vm0, %v6897_v4  ;;  %6256 = vmatprep.mubr.f32.mxu0 %v10075_v47 }
0x122e   : > { %6345 = vmatprep.mubr.f32.mxu1 %v10075_v47 }
0x12f3   : > { %v6024_v18 = vpop.f32.mrb[150].mxu0 }
0x12f4   : > { %v6025_v35 = vadd.f32 %v6024_v18, %v10128_v28  ;;  %v6113_v50 = vpop.f32.mrb[150].mxu1  ;;  %v6026_v36 = vpop.f32.mrb[151].mxu0  ;;  %v6910_v18 = vld [vmem:[%s9983_s5 + $0x80] sm:$0xff] }
0x12f5   : > { %v6114_v11 = vadd.f32 %v6113_v50, %v10128_v28  ;;  %v6027_v62 = vadd.f32 %v6026_v36, %v10128_v28  ;;  %v6115_v30 = vpop.f32.mrb[151].mxu1  ;;  %v6913_v50 = vld [vmem:[%s9983_s5 + $0x98] sm:$0xff] }
0x12f6   : > { %8039 = vtanh.f32 %v6025_v35  ;;  %v6116_v2 = vadd.f32 %v6115_v30, %v10128_v28  ;;  %v6911_v28 = vld [vmem:[%s9983_s5 + $0x88] sm:$0xff]  ;;  %v6912_v35 = vld [vmem:[%s9983_s5 + $0x90] sm:$0xff] }
0x12f7   : > { %8041 = vtanh.f32 %v6114_v11  ;;  %v6030_v22 = vpop.f32.mrb[152].mxu0  ;;  %v10130_v11 = vld [vmem:[#allocation28_spill] sm:$0xff] }
0x12f8   : > { %8043 = vtanh.f32 %v6027_v62  ;;  %v6031_v61 = vadd.f32 %v6030_v22, %v5934_v17  ;;  %v6119_v54 = vpop.f32.mrb[152].mxu1  ;;  %v6032_v10 = vpop.f32.mrb[153].mxu0 }
0x12f9   : > { %8045 = vtanh.f32 %v6116_v2  ;;  %v6120_v27 = vadd.f32 %v6119_v54, %v5934_v17  ;;  %v6033_v7 = vadd.f32 %v6032_v10, %v5934_v17  ;;  %v6121_v16 = vpop.f32.mrb[153].mxu1  ;;  %v6168_v10 = vpop.permute.xlu1 %6167 }
0x12fa   : > { %8047 = vtanh.f32 %v6031_v61  ;;  %v6122_v51 = vadd.f32 %v6121_v16, %v5934_v17 }
0x12fb   : > { %8049 = vtanh.f32 %v6120_v27  ;;  %v6036_v25 = vpop.f32.mrb[154].mxu0 }
0x12fc   : > { %8051 = vtanh.f32 %v6033_v7  ;;  %v6037_v39 = vadd.f32 %v6036_v25, %v10129_v31  ;;  %v6125_v5 = vpop.f32.mrb[154].mxu1  ;;  %v6038_v41 = vpop.f32.mrb[155].mxu0 }
0x12fd   : > { %8053 = vtanh.f32 %v6122_v51  ;;  %v6126_v55 = vadd.f32 %v6125_v5, %v10129_v31  ;;  %v6039_v15 = vadd.f32 %v6038_v41, %v10129_v31  ;;  %v6127_v46 = vpop.f32.mrb[155].mxu1  ;;  %v10131_v41 = vld [vmem:[#allocation29_spill] sm:$0xff] }
0x12fe   : > { %8055 = vtanh.f32 %v6037_v39  ;;  %v6128_v21 = vadd.f32 %v6127_v46, %v10129_v31 }
0x12ff   : > { %8057 = vtanh.f32 %v6126_v55  ;;  %v6042_v44 = vpop.f32.mrb[156].mxu0 }
0x1300   : > { %v8040_v6 = vpop.eup %8039  ;;  %8059 = vtanh.f32 %v6039_v15  ;;  %v6043_v63 = vadd.f32 %v6042_v44, %v5944_v29  ;;  %v6131_v32 = vpop.f32.mrb[156].mxu1 }
0x1301   : > { %v6044_v33 = vpop.f32.mrb[157].mxu0  ;;  %v8042_v9 = vpop.eup %8041  ;;  %8061 = vtanh.f32 %v6128_v21  ;;  %v6132_v24 = vadd.f32 %v6131_v32, %v5944_v29 }
0x1302   : > { %v6045_v53 = vadd.f32 %v6044_v33, %v5944_v29  ;;  %v6133_v59 = vpop.f32.mrb[157].mxu1  ;;  %v8044_v60 = vpop.eup %8043  ;;  %8063 = vtanh.f32 %v6043_v63 }
0x1303   : > { %v6134_v43 = vadd.f32 %v6133_v59, %v5944_v29  ;;  %v8046_v20 = vpop.eup %8045  ;;  %8065 = vtanh.f32 %v6132_v24  ;;  %v6178_v63 = vpop.permute.xlu1 %6177 }
0x1304   : > { %v8048_v52 = vpop.eup %8047  ;;  %8067 = vtanh.f32 %v6045_v53 }
0x1305   : > { %v8050_v13 = vpop.eup %8049  ;;  %8069 = vtanh.f32 %v6134_v43  ;;  %v7284_v34 = vpack.c.bf16 %v8048_v52, %v8040_v6 }
0x1306   : > { %v8052_v8 = vpop.eup %8051  ;;  %v7292_v14 = vpack.c.bf16 %v8050_v13, %v8042_v9 }
0x1307   : > { %v8054_v38 = vpop.eup %8053  ;;  %v7282_v56 = vpack.c.bf16 %v8052_v8, %v8044_v60 }
0x1308   : > { %v8056_v3 = vpop.eup %8055  ;;  %v7290_v1 = vpack.c.bf16 %v8054_v38, %v8046_v20 }
0x1309   : > { %v8058_v57 = vpop.eup %8057  ;;  %7283 = vmatprep.subr.bf16.mxu0 %v7282_v56 }
0x130a   : > { %v8060_v58 = vpop.eup %8059  ;;  %7291 = vmatprep.subr.bf16.mxu1 %v7290_v1  ;;  %7285 = vmatpush1.bf16.msra.mxu0 %v7284_v34 }
0x130b   : > { %v8062_v26 = vpop.eup %8061  ;;  %7293 = vmatpush1.bf16.msra.mxu1 %v7292_v14 }
0x130c   : > { %v8064_v37 = vpop.eup %8063 }
0x130d   : > { %v8066_v0 = vpop.eup %8065  ;;  %v7288_v12 = vpack.c.bf16 %v8064_v37, %v8056_v3 }
0x130e   : > { %v8068_v48 = vpop.eup %8067  ;;  %v7296_v42 = vpack.c.bf16 %v8066_v0, %v8058_v57 }
0x130f   : > { %v8070_v23 = vpop.eup %8069  ;;  %v7286_v49 = vpack.c.bf16 %v8068_v48, %v8060_v58 }
0x1310   : > { %v7294_v4 = vpack.c.bf16 %v8070_v23, %v8062_v26 }
0x1311   : > { %7287 = vmatprep.subr.bf16.mxu0 %v7286_v49 }
0x1312   : > { %7295 = vmatprep.subr.bf16.mxu1 %v7294_v4  ;;  %7289 = vmatpush1.bf16.msra.mxu0 %v7288_v12 }
0x1313   : > { %7297 = vmatpush1.bf16.msra.mxu1 %v7296_v42 }
0x1315   : > { %6918 = vmatmul.mubr.msk.f32.vlgmr.msra.gmra.mrb[158].mxu0 %vm659_vm0, %v6910_v18 }
0x1316   : > { %6922 = vmatmul.mubr.msk.f32.vlgmr.msra.gmra.mrb[158].mxu1 %vm659_vm0, %v6910_v18  ;;  %6262 = vmatprep.mubr.f32.mxu0 %v10075_v47 }
0x1317   : > { %6351 = vmatprep.mubr.f32.mxu1 %v10075_v47 }
0x1319   : > { %6919 = vmatmul.mubr.msk.f32.gmra.mrb[160].mxu0 %vm659_vm0, %v6911_v28 }
0x131a   : > { %6923 = vmatmul.mubr.msk.f32.gmra.mrb[160].mxu1 %vm659_vm0, %v6911_v28  ;;  %6268 = vmatprep.mubr.f32.mxu0 %v10075_v47 }
0x131b   : > { %6357 = vmatprep.mubr.f32.mxu1 %v10075_v47 }
0x131d   : > { %6920 = vmatmul.mubr.msk.f32.gmra.mrb[162].mxu0 %vm659_vm0, %v6912_v35 }
0x131e   : > { %6924 = vmatmul.mubr.msk.f32.gmra.mrb[162].mxu1 %vm659_vm0, %v6912_v35  ;;  %6274 = vmatprep.mubr.f32.mxu0 %v10075_v47 }
0x131f   : > { %6363 = vmatprep.mubr.f32.mxu1 %v10075_v47 }
0x1321   : > { %6921 = vmatmul.mubr.msk.f32.gmra.mrb[164].mxu0 %vm659_vm0, %v6913_v50 }
0x1322   : > { %6925 = vmatmul.mubr.msk.f32.gmra.mrb[164].mxu1 %vm659_vm0, %v6913_v50  ;;  %6450 = vmatprep.mubr.f32.mxu0 %v10075_v47  ;;  %v8105_v50 = vld [vmem:[%s9985_s7] sm:$0x1] }
0x1323   : > { %6521 = vmatprep.mubr.f32.mxu1 %v10075_v47 }
0x13e8   : > { %v6258_v36 = vpop.f32.mrb[158].mxu0 }
0x13e9   : > { %v6259_v62 = vadd.f32 %v6258_v36, %v10130_v11  ;;  %v6347_v30 = vpop.f32.mrb[158].mxu1  ;;  %v6260_v2 = vpop.f32.mrb[159].mxu0 }
0x13ea   : > { %v6348_v17 = vadd.f32 %v6347_v30, %v10130_v11  ;;  %v6261_v22 = vadd.f32 %v6260_v2, %v10130_v11  ;;  %v6349_v61 = vpop.f32.mrb[159].mxu1 }
0x13eb   : > { %8071 = vtanh.f32 %v6259_v62  ;;  %v6350_v54 = vadd.f32 %v6349_v61, %v10130_v11 }
0x13ec   : > { %8073 = vtanh.f32 %v6348_v17  ;;  %v6264_v27 = vpop.f32.mrb[160].mxu0 }
0x13ed   : > { %8075 = vtanh.f32 %v6261_v22  ;;  %v6265_v7 = vadd.f32 %v6264_v27, %v6168_v10  ;;  %v6353_v16 = vpop.f32.mrb[160].mxu1  ;;  %v6266_v47 = vpop.f32.mrb[161].mxu0 }
0x13ee   : > { %8077 = vtanh.f32 %v6350_v54  ;;  %v6354_v51 = vadd.f32 %v6353_v16, %v6168_v10  ;;  %v6267_v25 = vadd.f32 %v6266_v47, %v6168_v10  ;;  %v6355_v31 = vpop.f32.mrb[161].mxu1 }
0x13ef   : > { %8079 = vtanh.f32 %v6265_v7  ;;  %v6356_v39 = vadd.f32 %v6355_v31, %v6168_v10 }
0x13f0   : > { %8081 = vtanh.f32 %v6354_v51  ;;  %v6270_v5 = vpop.f32.mrb[162].mxu0 }
0x13f1   : > { %8083 = vtanh.f32 %v6267_v25  ;;  %v6271_v55 = vadd.f32 %v6270_v5, %v10131_v41  ;;  %v6359_v15 = vpop.f32.mrb[162].mxu1  ;;  %v6272_v46 = vpop.f32.mrb[163].mxu0 }
0x13f2   : > { %8085 = vtanh.f32 %v6356_v39  ;;  %v6360_v21 = vadd.f32 %v6359_v15, %v10131_v41  ;;  %v6273_v29 = vadd.f32 %v6272_v46, %v10131_v41  ;;  %v6361_v44 = vpop.f32.mrb[163].mxu1 }
0x13f3   : > { %8087 = vtanh.f32 %v6271_v55  ;;  %v6362_v6 = vadd.f32 %v6361_v44, %v10131_v41 }
0x13f4   : > { %8089 = vtanh.f32 %v6360_v21  ;;  %v6276_v32 = vpop.f32.mrb[164].mxu0 }
0x13f5   : > { %v8072_v33 = vpop.eup %8071  ;;  %8091 = vtanh.f32 %v6273_v29  ;;  %v6277_v9 = vadd.f32 %v6276_v32, %v6178_v63  ;;  %v6365_v24 = vpop.f32.mrb[164].mxu1 }
0x13f6   : > { %v6278_v53 = vpop.f32.mrb[165].mxu0  ;;  %v8074_v59 = vpop.eup %8073  ;;  %8093 = vtanh.f32 %v6362_v6  ;;  %v6366_v60 = vadd.f32 %v6365_v24, %v6178_v63 }
0x13f7   : > { %v6279_v43 = vadd.f32 %v6278_v53, %v6178_v63  ;;  %v6367_v20 = vpop.f32.mrb[165].mxu1  ;;  %v8076_v52 = vpop.eup %8075  ;;  %8095 = vtanh.f32 %v6277_v9 }
0x13f8   : > { %v6368_v13 = vadd.f32 %v6367_v20, %v6178_v63  ;;  %v8078_v34 = vpop.eup %8077  ;;  %8097 = vtanh.f32 %v6366_v60 }
0x13f9   : > { %v8080_v8 = vpop.eup %8079  ;;  %8099 = vtanh.f32 %v6279_v43 }
0x13fa   : > { %v8082_v14 = vpop.eup %8081  ;;  %8101 = vtanh.f32 %v6368_v13  ;;  %v7300_v38 = vpack.c.bf16 %v8080_v8, %v8072_v33 }
0x13fb   : > { %v8084_v56 = vpop.eup %8083  ;;  %v7308_v3 = vpack.c.bf16 %v8082_v14, %v8074_v59 }
0x13fc   : > { %v8086_v1 = vpop.eup %8085  ;;  %v7298_v57 = vpack.c.bf16 %v8084_v56, %v8076_v52 }
0x13fd   : > { %v8088_v58 = vpop.eup %8087  ;;  %v7306_v26 = vpack.c.bf16 %v8086_v1, %v8078_v34 }
0x13fe   : > { %v8090_v37 = vpop.eup %8089  ;;  %7299 = vmatprep.subr.bf16.mxu0 %v7298_v57 }
0x13ff   : > { %v8092_v0 = vpop.eup %8091  ;;  %7307 = vmatprep.subr.bf16.mxu1 %v7306_v26  ;;  %7301 = vmatpush1.bf16.msra.mxu0 %v7300_v38 }
0x1400   : > { %v8094_v12 = vpop.eup %8093  ;;  %7309 = vmatpush1.bf16.msra.mxu1 %v7308_v3 }
0x1401   : > { %v8096_v48 = vpop.eup %8095 }
0x1402   : > { %v8098_v42 = vpop.eup %8097  ;;  %v7304_v23 = vpack.c.bf16 %v8096_v48, %v8088_v58 }
0x1403   : > { %v8100_v49 = vpop.eup %8099  ;;  %v7312_v4 = vpack.c.bf16 %v8098_v42, %v8090_v37 }
0x1404   : > { %v8102_v18 = vpop.eup %8101  ;;  %v7302_v28 = vpack.c.bf16 %v8100_v49, %v8092_v0 }
0x1405   : > { %v7310_v35 = vpack.c.bf16 %v8102_v18, %v8094_v12 }
0x1406   : > { %7303 = vmatprep.subr.bf16.mxu0 %v7302_v28 }
0x1407   : > { %7311 = vmatprep.subr.bf16.mxu1 %v7310_v35  ;;  %7305 = vmatpush1.bf16.msra.mxu0 %v7304_v23 }
0x1408   : > { %7313 = vmatpush1.bf16.msra.mxu1 %v7312_v4 }
0x140a   : > { %6926 = vmatmul.mubr.msk.f32.vlgmr.msra.gmra.mrb[166].mxu0 %vm659_vm0, %v8105_v50 }
0x140b   : > { %6927 = vmatmul.mubr.msk.f32.vlgmr.msra.gmra.mrb[166].mxu1 %vm659_vm0, %v8105_v50 }
0x14dd   : > { %v6452_v36 = vpop.f32.mrb[166].mxu0 }
0x14de   : > { %v6453_v11 = vadd.f32 %v6452_v36, %v9030_v45  ;;  %v6523_v62 = vpop.f32.mrb[166].mxu1  ;;  %v6454_v30 = vpop.f32.mrb[167].mxu0 }
0x14df   : > { %v6524_v2 = vadd.f32 %v6523_v62, %v9030_v45  ;;  %v6455_v17 = vadd.f32 %v6454_v30, %v9030_v45  ;;  %v6525_v22 = vpop.f32.mrb[167].mxu1 }
0x14e0   : > { %v6526_v61 = vadd.f32 %v6525_v22, %v9030_v45 }
0x14e1   : > { %v6532_v54 = vcombine.low %v6453_v11, %v6455_v17 }
0x14e2   : > { %v6533_v10 = vcombine.low %v6524_v2, %v6526_v61 }
0x14e3   : > { %v6540_v27 = vrot.slane %v6532_v54, %v9036_v40 }
0x14e4   : > { %v6547_v7 = vrot.slane %v6533_v10, %v9036_v40 }
0x14e6   : > { %v6548_v16 = vcombine.low %v6540_v27, %v6547_v7 }
0x14e8   : > { %v6555_v47 = vrot.slane %v6548_v16, %v9036_v40 }
0x14ea   : > { %6557 = vst.msk [vmem:[%s9045_s18 + $0xc] sm:$0xf] %vm9048_vm1, %v6555_v47 }
0x14eb PF: > { %s21_s11 = sadd.s32 1, %s8112_s11  }
0x14ec   : > { %p18_p4 = scmp.ge.s32.totalorder %s21_s11, 4  }
0x14ee   :  { %20 = sbr.rel (!%p18_p4) target bundleno = 3 (0x3), region = 100 }

</bundles_post_ra>
